<compile_context>
chip_gen: v6e
topology: v6e:2x2x1
jax: 0.10.0
libtpu: 0.0.40
codegen_flags: <defaults>
</compile_context>

<pallas_src>
import numpy as np
import jax
import jax.numpy as jnp
from jax import lax
from jax.experimental import pallas as pl
from jax.experimental.pallas import tpu as pltpu

H_IN, W_IN = 28, 28                    # implied by fc input 3*12*12 (conv 5 -> 24, pool 2 -> 12)
C_OUT = 3
K = 5
H_C, W_C = H_IN - K + 1, W_IN - K + 1  # 24, 24
H_P, W_P = H_C // 2, W_C // 2          # 12, 12
FLAT = C_OUT * H_P * W_P               # 432
N_CLASSES = 10

BLK = 40                               # per-(h-parity, w-parity) row block: 3*12=36 padded to 40 (8-aligned)
R_ROWS = 4 * BLK                       # 160 rows of the banded conv matrix
SLAB_ROWS = (K + 1) * W_IN             # 168 input rows (6 image rows) feeding one pooled output row
MAX_TILE_N = 512                       # lane-tile cap (working set ~3 MiB at 512, fine on all gens)


def _round_up(a, b):
    return (a + b - 1) // b * b


def _net_kernel(x_ref, wmat_ref, bconv_ref, wfc_ref, bfc_ref, out_ref):
    # x_ref:     VMEM (784, T) f32   -- (h*28 + w) on sublanes, batch on lanes
    # wmat_ref:  VMEM (160, 168) f32 -- banded conv matrix (rows: [hh, parity, c, q] in 40-blocks)
    # bconv_ref: VMEM (160, 1) f32   -- conv bias per row (0 on pad rows)
    # wfc_ref:   VMEM (12, 10, 40) f32 -- FC weights, column-permuted per pooled row p
    # bfc_ref:   VMEM (10, 1) f32
    # out_ref:   VMEM (10, T) f32    -- classes on sublanes, batch on lanes (lane-dense)
    t = out_ref.shape[-1]
    wmat = wmat_ref[...]
    bconv = bconv_ref[...]

    logits = jnp.zeros((N_CLASSES, t), jnp.float32)
    for p in range(H_P):                              # 12 pooled output rows, unrolled
        row0 = 2 * p * W_IN                           # 56*p: 8-aligned sublane offset
        slab = x_ref[row0:row0 + SLAB_ROWS, :]        # (168, T) aligned contiguous read
        # conv for output rows 2p, 2p+1, all channels, both w-parities: one MXU matmul
        res = jnp.dot(wmat, slab, preferred_element_type=jnp.float32)     # (160, T)
        res = jnp.maximum(res + bconv, 0.0)           # bias + ReLU (pad rows stay 0)
        # 2x2 max-pool: contiguous, 8-aligned half-slab maxes (no strided ops)
        hmax = jnp.maximum(res[:2 * BLK, :], res[2 * BLK:, :])            # (80, T)  H-pool
        pooled = jnp.maximum(hmax[:BLK, :], hmax[BLK:, :])                # (40, T)  W-pool
        # FC contribution of this pooled row: tiny MXU matmul, accumulate in registers
        logits = logits + jnp.dot(wfc_ref[p], pooled,
                                  preferred_element_type=jnp.float32)     # (10, T)

    logits = logits + bfc_ref[...]

    # softmax over classes (sublane axis); EUP reciprocal + Newton refinement
    m = jnp.max(logits, axis=0, keepdims=True)        # (1, T)
    e = jnp.exp(logits - m)
    denom = jnp.sum(e, axis=0, keepdims=True)
    r = pl.reciprocal(denom, approx=True)
    r = r * (2.0 - denom * r)
    r = r * (2.0 - denom * r)
    out_ref[...] = e * r


def _build_conv_matrix(w_conv, b_conv):
    """Banded conv->pool matrix (160, 168) and per-row bias (160, 1).

    Row index   r   = (hh*2 + parity)*40 + c*12 + q   (rows 36..39 of each 40-block are zero pad)
    Column index col = s*28 + j  over the 6x28 input slab, with s = hh + di, j = 2q + parity + dj.
    """
    rows, cols, cs, dis, djs = [], [], [], [], []
    for hh in range(2):
        for parity in range(2):
            for c in range(C_OUT):
                for q in range(W_P):
                    r = (hh * 2 + parity) * BLK + c * W_P + q
                    for di in range(K):
                        for dj in range(K):
                            rows.append(r)
                            cols.append((hh + di) * W_IN + 2 * q + parity + dj)
                            cs.append(c)
                            dis.append(di)
                            djs.append(dj)
    vals = w_conv.astype(jnp.float32)[np.array(cs), 0, np.array(dis), np.array(djs)]
    wmat = jnp.zeros((R_ROWS, SLAB_ROWS), jnp.float32)
    wmat = wmat.at[np.array(rows), np.array(cols)].set(vals)

    bias_blk = jnp.concatenate([jnp.repeat(b_conv.astype(jnp.float32), W_P),
                                jnp.zeros((BLK - C_OUT * W_P,), jnp.float32)])   # (40,)
    bconv = jnp.tile(bias_blk, 4).reshape(R_ROWS, 1)
    return wmat, bconv


def _build_fc_weights(w_fc):
    """Permute FC columns to the in-kernel pooled row order: wfc_pp[p, :, c*12+q] = w_fc[:, c*144 + p*12 + q]."""
    p_ = np.arange(H_P)[:, None, None]
    c_ = np.arange(C_OUT)[None, :, None]
    q_ = np.arange(W_P)[None, None, :]
    perm = (c_ * (H_P * W_P) + p_ * W_P + q_).reshape(H_P, C_OUT * W_P)   # (12, 36)
    w = w_fc.astype(jnp.float32)[:, perm]                                  # (10, 12, 36)
    w = jnp.transpose(w, (1, 0, 2))                                        # (12, 10, 36)
    return jnp.pad(w, ((0, 0), (0, 0), (0, BLK - C_OUT * W_P)))            # (12, 10, 40)


def net_forward(x_nchw, w_conv, b_conv, w_fc, b_fc, *, max_tile_n=MAX_TILE_N):
    """x_nchw: (N, 1, 28, 28). w_conv: (3,1,5,5). b_conv: (3,).
    w_fc: (10, 432) (PyTorch Linear layout). b_fc: (10,). Returns (N, 10) softmax."""
    n = x_nchw.shape[0]
    assert x_nchw.shape[1:] == (1, H_IN, W_IN)

    # Adaptive lane tiling: >=128 lanes, cap at max_tile_n, prefer >=2 grid steps (v7x megacore).
    n_lanes = _round_up(max(n, 1), 128)
    if n_lanes <= 128:
        tile_n = 128
    else:
        tile_n = min(max_tile_n, _round_up((n_lanes + 1) // 2, 128))
    n_pad = _round_up(n_lanes, tile_n)
    grid = (n_pad // tile_n,)

    # (N,1,28,28) -> (784, N_pad): (h*28 + w) on sublanes, batch on lanes.
    # NOTE: this host-side transpose is one extra HBM round trip of the input; store
    # activations batch-minor upstream to remove it (kernel itself is unchanged).
    x = x_nchw.reshape(n, H_IN * W_IN).astype(jnp.float32)
    x = jnp.transpose(x, (1, 0))
    if n_pad != n:
        x = jnp.pad(x, ((0, 0), (0, n_pad - n)))

    wmat, bconv = _build_conv_matrix(w_conv, b_conv)           # (160, 168), (160, 1)
    wfc_pp = _build_fc_weights(w_fc)                            # (12, 10, 40)
    bfc = b_fc.astype(jnp.float32).reshape(N_CLASSES, 1)        # (10, 1)

    flops = int((2 * R_ROWS * SLAB_ROWS + 2 * N_CLASSES * BLK) * H_P) * int(n_pad)
    bytes_accessed = int((H_IN * W_IN + N_CLASSES) * 4 * n_pad
                         + 4 * (wmat.size + bconv.size + wfc_pp.size + bfc.size))

    out = pl.pallas_call(
        _net_kernel,
        out_shape=jax.ShapeDtypeStruct((N_CLASSES, n_pad), jnp.float32),
        grid=grid,
        in_specs=[
            pl.BlockSpec((H_IN * W_IN, tile_n), lambda i: (0, i)),   # x: batch-tiled, lane-dense
            pl.BlockSpec((R_ROWS, SLAB_ROWS), lambda i: (0, 0)),     # banded conv matrix, VMEM-pinned
            pl.BlockSpec((R_ROWS, 1), lambda i: (0, 0)),             # conv bias rows
            pl.BlockSpec((H_P, N_CLASSES, BLK), lambda i: (0, 0, 0)),# permuted FC weights
            pl.BlockSpec((N_CLASSES, 1), lambda i: (0, 0)),          # fc bias
        ],
        out_specs=pl.BlockSpec((N_CLASSES, tile_n), lambda i: (0, i)),   # lane-dense output
        compiler_params=pltpu.CompilerParams(
            dimension_semantics=("parallel",)),                          # megacore sharding on v7x
        cost_estimate=pl.CostEstimate(
            flops=flops,
            transcendentals=(N_CLASSES + 1) * int(n_pad),
            bytes_accessed=bytes_accessed),
    )(x, wmat, bconv, wfc_pp, bfc)

    return out[:, :n].T                                                  # (N, 10)


def _reference_forward(x_nchw, w_conv, b_conv, w_fc, b_fc):
    """Pure-JAX reference mirroring the PyTorch forward (NCHW), full f32 precision."""
    y = lax.conv_general_dilated(
        x_nchw, w_conv, window_strides=(1, 1), padding="VALID",
        dimension_numbers=("NCHW", "OIHW", "NCHW"),
        precision=lax.Precision.HIGHEST)
    y = y + b_conv.reshape(1, C_OUT, 1, 1)
    y = jnp.maximum(y, 0.0)
    y = lax.reduce_window(y, -jnp.inf, lax.max,
                          window_dimensions=(1, 1, 2, 2),
                          window_strides=(1, 1, 2, 2), padding="VALID")
    y = y.reshape(y.shape[0], -1)                                        # (N, 432), torch.flatten order
    logits = jnp.dot(y, w_fc.T, precision=lax.Precision.HIGHEST) + b_fc
    return jax.nn.softmax(logits, axis=1)


if __name__ == "__main__":
    key = jax.random.PRNGKey(0)
    k_x, k_wc, k_bc, k_wf, k_bf = jax.random.split(key, 5)

    batch = 2
    x = jax.random.normal(k_x, (batch, 1, H_IN, W_IN), dtype=jnp.float32)

    # Deterministic parameter init (PyTorch-style uniform(-1/sqrt(fan_in), 1/sqrt(fan_in)))
    fan_conv = 1 * K * K
    bound_c = 1.0 / (fan_conv ** 0.5)
    w_conv = jax.random.uniform(k_wc, (C_OUT, 1, K, K), jnp.float32, -bound_c, bound_c)
    b_conv = jax.random.uniform(k_bc, (C_OUT,), jnp.float32, -bound_c, bound_c)

    bound_f = 1.0 / (FLAT ** 0.5)
    w_fc = jax.random.uniform(k_wf, (N_CLASSES, FLAT), jnp.float32, -bound_f, bound_f)
    b_fc = jax.random.uniform(k_bf, (N_CLASSES,), jnp.float32, -bound_f, bound_f)

    out = jax.block_until_ready(net_forward(x, w_conv, b_conv, w_fc, b_fc))
    ref = jax.block_until_ready(_reference_forward(x, w_conv, b_conv, w_fc, b_fc))

    assert out.shape == (batch, N_CLASSES)
    if not bool(jnp.allclose(out, ref, atol=2e-5, rtol=2e-5)):
        raise AssertionError(f"mismatch: max abs err {float(jnp.max(jnp.abs(out - ref)))}")

    print("KERNEL_OK")
</pallas_src>

<mosaic_0001>
module attributes {stable_mosaic.version = 11 : i64} {
  func.func @_net_kernel(%arg0: i32, %arg1: memref<784x128xf32, #tpu.memory_space<vmem>>, %arg2: memref<160x168xf32, #tpu.memory_space<vmem>>, %arg3: memref<160x1xf32, #tpu.memory_space<vmem>>, %arg4: memref<12x10x40xf32, #tpu.memory_space<vmem>>, %arg5: memref<10x1xf32, #tpu.memory_space<vmem>>, %arg6: memref<10x128xf32, #tpu.memory_space<vmem>>) attributes {dimension_semantics = [#tpu.dimension_semantics<parallel>], iteration_bounds = array<i64: 1>, scalar_prefetch = 0 : i64, scratch_operands = 0 : i64, tpu.core_type = #tpu.core_type<tc>, window_params = [{transform_indices = @transform_0, window_bounds = array<i64: 784, 128>}, {pipeline_mode = #tpu.pipeline_mode<synchronous>, transform_indices = @transform_1, window_bounds = array<i64: 160, 168>}, {pipeline_mode = #tpu.pipeline_mode<synchronous>, transform_indices = @transform_2, window_bounds = array<i64: 160, 1>}, {pipeline_mode = #tpu.pipeline_mode<synchronous>, transform_indices = @transform_3, window_bounds = array<i64: 12, 10, 40>}, {pipeline_mode = #tpu.pipeline_mode<synchronous>, transform_indices = @transform_4, window_bounds = array<i64: 10, 1>}, {transform_indices = @transform_5, window_bounds = array<i64: 10, 128>}]} {
    %c0 = arith.constant 0 : index
    %c0_0 = arith.constant 0 : index
    %0 = vector.load %arg2[%c0, %c0_0] : memref<160x168xf32, #tpu.memory_space<vmem>>, vector<160x168xf32>
    %c0_1 = arith.constant 0 : index
    %c0_2 = arith.constant 0 : index
    %1 = vector.load %arg3[%c0_1, %c0_2] : memref<160x1xf32, #tpu.memory_space<vmem>>, vector<160x1xf32>
    %cst = arith.constant 0.000000e+00 : f32
    %2 = vector.broadcast %cst : f32 to vector<10x128xf32>
    %c0_3 = arith.constant 0 : index
    %c0_4 = arith.constant 0 : index
    %3 = vector.load %arg1[%c0_3, %c0_4] : memref<784x128xf32, #tpu.memory_space<vmem>>, vector<168x128xf32>
    %cst_5 = arith.constant dense<0.000000e+00> : vector<160x128xf32>
    %4 = tpu.matmul %0, %3, %cst_5 {dimension_numbers = #tpu.dot_dimension_numbers<[1], [0], [0], [1], [0, 0, 1, 1], [], []>} : vector<160x168xf32>, vector<168x128xf32>, vector<160x128xf32> -> vector<160x128xf32>
    %5 = vector.broadcast %1 : vector<160x1xf32> to vector<160x128xf32>
    %6 = arith.addf %4, %5 : vector<160x128xf32>
    %cst_6 = arith.constant 0.000000e+00 : f32
    %7 = vector.broadcast %cst_6 : f32 to vector<160x128xf32>
    %8 = arith.maximumf %6, %7 : vector<160x128xf32>
    %9 = vector.extract_strided_slice %8 {offsets = [0, 0], sizes = [80, 128], strides = [1, 1]} : vector<160x128xf32> to vector<80x128xf32>
    %10 = vector.extract_strided_slice %8 {offsets = [80, 0], sizes = [80, 128], strides = [1, 1]} : vector<160x128xf32> to vector<80x128xf32>
    %11 = arith.maximumf %9, %10 : vector<80x128xf32>
    %12 = vector.extract_strided_slice %11 {offsets = [0, 0], sizes = [40, 128], strides = [1, 1]} : vector<80x128xf32> to vector<40x128xf32>
    %13 = vector.extract_strided_slice %11 {offsets = [40, 0], sizes = [40, 128], strides = [1, 1]} : vector<80x128xf32> to vector<40x128xf32>
    %14 = arith.maximumf %12, %13 : vector<40x128xf32>
    %c0_7 = arith.constant 0 : index
    %c0_8 = arith.constant 0 : index
    %c0_9 = arith.constant 0 : index
    %15 = vector.load %arg4[%c0_7, %c0_8, %c0_9] : memref<12x10x40xf32, #tpu.memory_space<vmem>>, vector<1x10x40xf32>
    %16 = vector.shape_cast %15 : vector<1x10x40xf32> to vector<10x40xf32>
    %cst_10 = arith.constant dense<0.000000e+00> : vector<10x128xf32>
    %17 = tpu.matmul %16, %14, %cst_10 {dimension_numbers = #tpu.dot_dimension_numbers<[1], [0], [0], [1], [0, 0, 1, 1], [], []>} : vector<10x40xf32>, vector<40x128xf32>, vector<10x128xf32> -> vector<10x128xf32>
    %18 = arith.addf %2, %17 : vector<10x128xf32>
    %c56 = arith.constant 56 : index
    %c0_11 = arith.constant 0 : index
    %19 = vector.load %arg1[%c56, %c0_11] : memref<784x128xf32, #tpu.memory_space<vmem>>, vector<168x128xf32>
    %cst_12 = arith.constant dense<0.000000e+00> : vector<160x128xf32>
    %20 = tpu.matmul %0, %19, %cst_12 {dimension_numbers = #tpu.dot_dimension_numbers<[1], [0], [0], [1], [0, 0, 1, 1], [], []>} : vector<160x168xf32>, vector<168x128xf32>, vector<160x128xf32> -> vector<160x128xf32>
    %21 = vector.broadcast %1 : vector<160x1xf32> to vector<160x128xf32>
    %22 = arith.addf %20, %21 : vector<160x128xf32>
    %cst_13 = arith.constant 0.000000e+00 : f32
    %23 = vector.broadcast %cst_13 : f32 to vector<160x128xf32>
    %24 = arith.maximumf %22, %23 : vector<160x128xf32>
    %25 = vector.extract_strided_slice %24 {offsets = [0, 0], sizes = [80, 128], strides = [1, 1]} : vector<160x128xf32> to vector<80x128xf32>
    %26 = vector.extract_strided_slice %24 {offsets = [80, 0], sizes = [80, 128], strides = [1, 1]} : vector<160x128xf32> to vector<80x128xf32>
    %27 = arith.maximumf %25, %26 : vector<80x128xf32>
    %28 = vector.extract_strided_slice %27 {offsets = [0, 0], sizes = [40, 128], strides = [1, 1]} : vector<80x128xf32> to vector<40x128xf32>
    %29 = vector.extract_strided_slice %27 {offsets = [40, 0], sizes = [40, 128], strides = [1, 1]} : vector<80x128xf32> to vector<40x128xf32>
    %30 = arith.maximumf %28, %29 : vector<40x128xf32>
    %c1 = arith.constant 1 : index
    %c0_14 = arith.constant 0 : index
    %c0_15 = arith.constant 0 : index
    %31 = vector.load %arg4[%c1, %c0_14, %c0_15] : memref<12x10x40xf32, #tpu.memory_space<vmem>>, vector<1x10x40xf32>
    %32 = vector.shape_cast %31 : vector<1x10x40xf32> to vector<10x40xf32>
    %cst_16 = arith.constant dense<0.000000e+00> : vector<10x128xf32>
    %33 = tpu.matmul %32, %30, %cst_16 {dimension_numbers = #tpu.dot_dimension_numbers<[1], [0], [0], [1], [0, 0, 1, 1], [], []>} : vector<10x40xf32>, vector<40x128xf32>, vector<10x128xf32> -> vector<10x128xf32>
    %34 = arith.addf %18, %33 : vector<10x128xf32>
    %c112 = arith.constant 112 : index
    %c0_17 = arith.constant 0 : index
    %35 = vector.load %arg1[%c112, %c0_17] : memref<784x128xf32, #tpu.memory_space<vmem>>, vector<168x128xf32>
    %cst_18 = arith.constant dense<0.000000e+00> : vector<160x128xf32>
    %36 = tpu.matmul %0, %35, %cst_18 {dimension_numbers = #tpu.dot_dimension_numbers<[1], [0], [0], [1], [0, 0, 1, 1], [], []>} : vector<160x168xf32>, vector<168x128xf32>, vector<160x128xf32> -> vector<160x128xf32>
    %37 = vector.broadcast %1 : vector<160x1xf32> to vector<160x128xf32>
    %38 = arith.addf %36, %37 : vector<160x128xf32>
    %cst_19 = arith.constant 0.000000e+00 : f32
    %39 = vector.broadcast %cst_19 : f32 to vector<160x128xf32>
    %40 = arith.maximumf %38, %39 : vector<160x128xf32>
    %41 = vector.extract_strided_slice %40 {offsets = [0, 0], sizes = [80, 128], strides = [1, 1]} : vector<160x128xf32> to vector<80x128xf32>
    %42 = vector.extract_strided_slice %40 {offsets = [80, 0], sizes = [80, 128], strides = [1, 1]} : vector<160x128xf32> to vector<80x128xf32>
    %43 = arith.maximumf %41, %42 : vector<80x128xf32>
    %44 = vector.extract_strided_slice %43 {offsets = [0, 0], sizes = [40, 128], strides = [1, 1]} : vector<80x128xf32> to vector<40x128xf32>
    %45 = vector.extract_strided_slice %43 {offsets = [40, 0], sizes = [40, 128], strides = [1, 1]} : vector<80x128xf32> to vector<40x128xf32>
    %46 = arith.maximumf %44, %45 : vector<40x128xf32>
    %c2 = arith.constant 2 : index
    %c0_20 = arith.constant 0 : index
    %c0_21 = arith.constant 0 : index
    %47 = vector.load %arg4[%c2, %c0_20, %c0_21] : memref<12x10x40xf32, #tpu.memory_space<vmem>>, vector<1x10x40xf32>
    %48 = vector.shape_cast %47 : vector<1x10x40xf32> to vector<10x40xf32>
    %cst_22 = arith.constant dense<0.000000e+00> : vector<10x128xf32>
    %49 = tpu.matmul %48, %46, %cst_22 {dimension_numbers = #tpu.dot_dimension_numbers<[1], [0], [0], [1], [0, 0, 1, 1], [], []>} : vector<10x40xf32>, vector<40x128xf32>, vector<10x128xf32> -> vector<10x128xf32>
    %50 = arith.addf %34, %49 : vector<10x128xf32>
    %c168 = arith.constant 168 : index
    %c0_23 = arith.constant 0 : index
    %51 = vector.load %arg1[%c168, %c0_23] : memref<784x128xf32, #tpu.memory_space<vmem>>, vector<168x128xf32>
    %cst_24 = arith.constant dense<0.000000e+00> : vector<160x128xf32>
    %52 = tpu.matmul %0, %51, %cst_24 {dimension_numbers = #tpu.dot_dimension_numbers<[1], [0], [0], [1], [0, 0, 1, 1], [], []>} : vector<160x168xf32>, vector<168x128xf32>, vector<160x128xf32> -> vector<160x128xf32>
    %53 = vector.broadcast %1 : vector<160x1xf32> to vector<160x128xf32>
    %54 = arith.addf %52, %53 : vector<160x128xf32>
    %cst_25 = arith.constant 0.000000e+00 : f32
    %55 = vector.broadcast %cst_25 : f32 to vector<160x128xf32>
    %56 = arith.maximumf %54, %55 : vector<160x128xf32>
    %57 = vector.extract_strided_slice %56 {offsets = [0, 0], sizes = [80, 128], strides = [1, 1]} : vector<160x128xf32> to vector<80x128xf32>
    %58 = vector.extract_strided_slice %56 {offsets = [80, 0], sizes = [80, 128], strides = [1, 1]} : vector<160x128xf32> to vector<80x128xf32>
    %59 = arith.maximumf %57, %58 : vector<80x128xf32>
    %60 = vector.extract_strided_slice %59 {offsets = [0, 0], sizes = [40, 128], strides = [1, 1]} : vector<80x128xf32> to vector<40x128xf32>
    %61 = vector.extract_strided_slice %59 {offsets = [40, 0], sizes = [40, 128], strides = [1, 1]} : vector<80x128xf32> to vector<40x128xf32>
    %62 = arith.maximumf %60, %61 : vector<40x128xf32>
    %c3 = arith.constant 3 : index
    %c0_26 = arith.constant 0 : index
    %c0_27 = arith.constant 0 : index
    %63 = vector.load %arg4[%c3, %c0_26, %c0_27] : memref<12x10x40xf32, #tpu.memory_space<vmem>>, vector<1x10x40xf32>
    %64 = vector.shape_cast %63 : vector<1x10x40xf32> to vector<10x40xf32>
    %cst_28 = arith.constant dense<0.000000e+00> : vector<10x128xf32>
    %65 = tpu.matmul %64, %62, %cst_28 {dimension_numbers = #tpu.dot_dimension_numbers<[1], [0], [0], [1], [0, 0, 1, 1], [], []>} : vector<10x40xf32>, vector<40x128xf32>, vector<10x128xf32> -> vector<10x128xf32>
    %66 = arith.addf %50, %65 : vector<10x128xf32>
    %c224 = arith.constant 224 : index
    %c0_29 = arith.constant 0 : index
    %67 = vector.load %arg1[%c224, %c0_29] : memref<784x128xf32, #tpu.memory_space<vmem>>, vector<168x128xf32>
    %cst_30 = arith.constant dense<0.000000e+00> : vector<160x128xf32>
    %68 = tpu.matmul %0, %67, %cst_30 {dimension_numbers = #tpu.dot_dimension_numbers<[1], [0], [0], [1], [0, 0, 1, 1], [], []>} : vector<160x168xf32>, vector<168x128xf32>, vector<160x128xf32> -> vector<160x128xf32>
    %69 = vector.broadcast %1 : vector<160x1xf32> to vector<160x128xf32>
    %70 = arith.addf %68, %69 : vector<160x128xf32>
    %cst_31 = arith.constant 0.000000e+00 : f32
    %71 = vector.broadcast %cst_31 : f32 to vector<160x128xf32>
    %72 = arith.maximumf %70, %71 : vector<160x128xf32>
    %73 = vector.extract_strided_slice %72 {offsets = [0, 0], sizes = [80, 128], strides = [1, 1]} : vector<160x128xf32> to vector<80x128xf32>
    %74 = vector.extract_strided_slice %72 {offsets = [80, 0], sizes = [80, 128], strides = [1, 1]} : vector<160x128xf32> to vector<80x128xf32>
    %75 = arith.maximumf %73, %74 : vector<80x128xf32>
    %76 = vector.extract_strided_slice %75 {offsets = [0, 0], sizes = [40, 128], strides = [1, 1]} : vector<80x128xf32> to vector<40x128xf32>
    %77 = vector.extract_strided_slice %75 {offsets = [40, 0], sizes = [40, 128], strides = [1, 1]} : vector<80x128xf32> to vector<40x128xf32>
    %78 = arith.maximumf %76, %77 : vector<40x128xf32>
    %c4 = arith.constant 4 : index
    %c0_32 = arith.constant 0 : index
    %c0_33 = arith.constant 0 : index
    %79 = vector.load %arg4[%c4, %c0_32, %c0_33] : memref<12x10x40xf32, #tpu.memory_space<vmem>>, vector<1x10x40xf32>
    %80 = vector.shape_cast %79 : vector<1x10x40xf32> to vector<10x40xf32>
    %cst_34 = arith.constant dense<0.000000e+00> : vector<10x128xf32>
    %81 = tpu.matmul %80, %78, %cst_34 {dimension_numbers = #tpu.dot_dimension_numbers<[1], [0], [0], [1], [0, 0, 1, 1], [], []>} : vector<10x40xf32>, vector<40x128xf32>, vector<10x128xf32> -> vector<10x128xf32>
    %82 = arith.addf %66, %81 : vector<10x128xf32>
    %c280 = arith.constant 280 : index
    %c0_35 = arith.constant 0 : index
    %83 = vector.load %arg1[%c280, %c0_35] : memref<784x128xf32, #tpu.memory_space<vmem>>, vector<168x128xf32>
    %cst_36 = arith.constant dense<0.000000e+00> : vector<160x128xf32>
    %84 = tpu.matmul %0, %83, %cst_36 {dimension_numbers = #tpu.dot_dimension_numbers<[1], [0], [0], [1], [0, 0, 1, 1], [], []>} : vector<160x168xf32>, vector<168x128xf32>, vector<160x128xf32> -> vector<160x128xf32>
    %85 = vector.broadcast %1 : vector<160x1xf32> to vector<160x128xf32>
    %86 = arith.addf %84, %85 : vector<160x128xf32>
    %cst_37 = arith.constant 0.000000e+00 : f32
    %87 = vector.broadcast %cst_37 : f32 to vector<160x128xf32>
    %88 = arith.maximumf %86, %87 : vector<160x128xf32>
    %89 = vector.extract_strided_slice %88 {offsets = [0, 0], sizes = [80, 128], strides = [1, 1]} : vector<160x128xf32> to vector<80x128xf32>
    %90 = vector.extract_strided_slice %88 {offsets = [80, 0], sizes = [80, 128], strides = [1, 1]} : vector<160x128xf32> to vector<80x128xf32>
    %91 = arith.maximumf %89, %90 : vector<80x128xf32>
    %92 = vector.extract_strided_slice %91 {offsets = [0, 0], sizes = [40, 128], strides = [1, 1]} : vector<80x128xf32> to vector<40x128xf32>
    %93 = vector.extract_strided_slice %91 {offsets = [40, 0], sizes = [40, 128], strides = [1, 1]} : vector<80x128xf32> to vector<40x128xf32>
    %94 = arith.maximumf %92, %93 : vector<40x128xf32>
    %c5 = arith.constant 5 : index
    %c0_38 = arith.constant 0 : index
    %c0_39 = arith.constant 0 : index
    %95 = vector.load %arg4[%c5, %c0_38, %c0_39] : memref<12x10x40xf32, #tpu.memory_space<vmem>>, vector<1x10x40xf32>
    %96 = vector.shape_cast %95 : vector<1x10x40xf32> to vector<10x40xf32>
    %cst_40 = arith.constant dense<0.000000e+00> : vector<10x128xf32>
    %97 = tpu.matmul %96, %94, %cst_40 {dimension_numbers = #tpu.dot_dimension_numbers<[1], [0], [0], [1], [0, 0, 1, 1], [], []>} : vector<10x40xf32>, vector<40x128xf32>, vector<10x128xf32> -> vector<10x128xf32>
    %98 = arith.addf %82, %97 : vector<10x128xf32>
    %c336 = arith.constant 336 : index
    %c0_41 = arith.constant 0 : index
    %99 = vector.load %arg1[%c336, %c0_41] : memref<784x128xf32, #tpu.memory_space<vmem>>, vector<168x128xf32>
    %cst_42 = arith.constant dense<0.000000e+00> : vector<160x128xf32>
    %100 = tpu.matmul %0, %99, %cst_42 {dimension_numbers = #tpu.dot_dimension_numbers<[1], [0], [0], [1], [0, 0, 1, 1], [], []>} : vector<160x168xf32>, vector<168x128xf32>, vector<160x128xf32> -> vector<160x128xf32>
    %101 = vector.broadcast %1 : vector<160x1xf32> to vector<160x128xf32>
    %102 = arith.addf %100, %101 : vector<160x128xf32>
    %cst_43 = arith.constant 0.000000e+00 : f32
    %103 = vector.broadcast %cst_43 : f32 to vector<160x128xf32>
    %104 = arith.maximumf %102, %103 : vector<160x128xf32>
    %105 = vector.extract_strided_slice %104 {offsets = [0, 0], sizes = [80, 128], strides = [1, 1]} : vector<160x128xf32> to vector<80x128xf32>
    %106 = vector.extract_strided_slice %104 {offsets = [80, 0], sizes = [80, 128], strides = [1, 1]} : vector<160x128xf32> to vector<80x128xf32>
    %107 = arith.maximumf %105, %106 : vector<80x128xf32>
    %108 = vector.extract_strided_slice %107 {offsets = [0, 0], sizes = [40, 128], strides = [1, 1]} : vector<80x128xf32> to vector<40x128xf32>
    %109 = vector.extract_strided_slice %107 {offsets = [40, 0], sizes = [40, 128], strides = [1, 1]} : vector<80x128xf32> to vector<40x128xf32>
    %110 = arith.maximumf %108, %109 : vector<40x128xf32>
    %c6 = arith.constant 6 : index
    %c0_44 = arith.constant 0 : index
    %c0_45 = arith.constant 0 : index
    %111 = vector.load %arg4[%c6, %c0_44, %c0_45] : memref<12x10x40xf32, #tpu.memory_space<vmem>>, vector<1x10x40xf32>
    %112 = vector.shape_cast %111 : vector<1x10x40xf32> to vector<10x40xf32>
    %cst_46 = arith.constant dense<0.000000e+00> : vector<10x128xf32>
    %113 = tpu.matmul %112, %110, %cst_46 {dimension_numbers = #tpu.dot_dimension_numbers<[1], [0], [0], [1], [0, 0, 1, 1], [], []>} : vector<10x40xf32>, vector<40x128xf32>, vector<10x128xf32> -> vector<10x128xf32>
    %114 = arith.addf %98, %113 : vector<10x128xf32>
    %c392 = arith.constant 392 : index
    %c0_47 = arith.constant 0 : index
    %115 = vector.load %arg1[%c392, %c0_47] : memref<784x128xf32, #tpu.memory_space<vmem>>, vector<168x128xf32>
    %cst_48 = arith.constant dense<0.000000e+00> : vector<160x128xf32>
    %116 = tpu.matmul %0, %115, %cst_48 {dimension_numbers = #tpu.dot_dimension_numbers<[1], [0], [0], [1], [0, 0, 1, 1], [], []>} : vector<160x168xf32>, vector<168x128xf32>, vector<160x128xf32> -> vector<160x128xf32>
    %117 = vector.broadcast %1 : vector<160x1xf32> to vector<160x128xf32>
    %118 = arith.addf %116, %117 : vector<160x128xf32>
    %cst_49 = arith.constant 0.000000e+00 : f32
    %119 = vector.broadcast %cst_49 : f32 to vector<160x128xf32>
    %120 = arith.maximumf %118, %119 : vector<160x128xf32>
    %121 = vector.extract_strided_slice %120 {offsets = [0, 0], sizes = [80, 128], strides = [1, 1]} : vector<160x128xf32> to vector<80x128xf32>
    %122 = vector.extract_strided_slice %120 {offsets = [80, 0], sizes = [80, 128], strides = [1, 1]} : vector<160x128xf32> to vector<80x128xf32>
    %123 = arith.maximumf %121, %122 : vector<80x128xf32>
    %124 = vector.extract_strided_slice %123 {offsets = [0, 0], sizes = [40, 128], strides = [1, 1]} : vector<80x128xf32> to vector<40x128xf32>
    %125 = vector.extract_strided_slice %123 {offsets = [40, 0], sizes = [40, 128], strides = [1, 1]} : vector<80x128xf32> to vector<40x128xf32>
    %126 = arith.maximumf %124, %125 : vector<40x128xf32>
    %c7 = arith.constant 7 : index
    %c0_50 = arith.constant 0 : index
    %c0_51 = arith.constant 0 : index
    %127 = vector.load %arg4[%c7, %c0_50, %c0_51] : memref<12x10x40xf32, #tpu.memory_space<vmem>>, vector<1x10x40xf32>
    %128 = vector.shape_cast %127 : vector<1x10x40xf32> to vector<10x40xf32>
    %cst_52 = arith.constant dense<0.000000e+00> : vector<10x128xf32>
    %129 = tpu.matmul %128, %126, %cst_52 {dimension_numbers = #tpu.dot_dimension_numbers<[1], [0], [0], [1], [0, 0, 1, 1], [], []>} : vector<10x40xf32>, vector<40x128xf32>, vector<10x128xf32> -> vector<10x128xf32>
    %130 = arith.addf %114, %129 : vector<10x128xf32>
    %c448 = arith.constant 448 : index
    %c0_53 = arith.constant 0 : index
    %131 = vector.load %arg1[%c448, %c0_53] : memref<784x128xf32, #tpu.memory_space<vmem>>, vector<168x128xf32>
    %cst_54 = arith.constant dense<0.000000e+00> : vector<160x128xf32>
    %132 = tpu.matmul %0, %131, %cst_54 {dimension_numbers = #tpu.dot_dimension_numbers<[1], [0], [0], [1], [0, 0, 1, 1], [], []>} : vector<160x168xf32>, vector<168x128xf32>, vector<160x128xf32> -> vector<160x128xf32>
    %133 = vector.broadcast %1 : vector<160x1xf32> to vector<160x128xf32>
    %134 = arith.addf %132, %133 : vector<160x128xf32>
    %cst_55 = arith.constant 0.000000e+00 : f32
    %135 = vector.broadcast %cst_55 : f32 to vector<160x128xf32>
    %136 = arith.maximumf %134, %135 : vector<160x128xf32>
    %137 = vector.extract_strided_slice %136 {offsets = [0, 0], sizes = [80, 128], strides = [1, 1]} : vector<160x128xf32> to vector<80x128xf32>
    %138 = vector.extract_strided_slice %136 {offsets = [80, 0], sizes = [80, 128], strides = [1, 1]} : vector<160x128xf32> to vector<80x128xf32>
    %139 = arith.maximumf %137, %138 : vector<80x128xf32>
    %140 = vector.extract_strided_slice %139 {offsets = [0, 0], sizes = [40, 128], strides = [1, 1]} : vector<80x128xf32> to vector<40x128xf32>
    %141 = vector.extract_strided_slice %139 {offsets = [40, 0], sizes = [40, 128], strides = [1, 1]} : vector<80x128xf32> to vector<40x128xf32>
    %142 = arith.maximumf %140, %141 : vector<40x128xf32>
    %c8 = arith.constant 8 : index
    %c0_56 = arith.constant 0 : index
    %c0_57 = arith.constant 0 : index
    %143 = vector.load %arg4[%c8, %c0_56, %c0_57] : memref<12x10x40xf32, #tpu.memory_space<vmem>>, vector<1x10x40xf32>
    %144 = vector.shape_cast %143 : vector<1x10x40xf32> to vector<10x40xf32>
    %cst_58 = arith.constant dense<0.000000e+00> : vector<10x128xf32>
    %145 = tpu.matmul %144, %142, %cst_58 {dimension_numbers = #tpu.dot_dimension_numbers<[1], [0], [0], [1], [0, 0, 1, 1], [], []>} : vector<10x40xf32>, vector<40x128xf32>, vector<10x128xf32> -> vector<10x128xf32>
    %146 = arith.addf %130, %145 : vector<10x128xf32>
    %c504 = arith.constant 504 : index
    %c0_59 = arith.constant 0 : index
    %147 = vector.load %arg1[%c504, %c0_59] : memref<784x128xf32, #tpu.memory_space<vmem>>, vector<168x128xf32>
    %cst_60 = arith.constant dense<0.000000e+00> : vector<160x128xf32>
    %148 = tpu.matmul %0, %147, %cst_60 {dimension_numbers = #tpu.dot_dimension_numbers<[1], [0], [0], [1], [0, 0, 1, 1], [], []>} : vector<160x168xf32>, vector<168x128xf32>, vector<160x128xf32> -> vector<160x128xf32>
    %149 = vector.broadcast %1 : vector<160x1xf32> to vector<160x128xf32>
    %150 = arith.addf %148, %149 : vector<160x128xf32>
    %cst_61 = arith.constant 0.000000e+00 : f32
    %151 = vector.broadcast %cst_61 : f32 to vector<160x128xf32>
    %152 = arith.maximumf %150, %151 : vector<160x128xf32>
    %153 = vector.extract_strided_slice %152 {offsets = [0, 0], sizes = [80, 128], strides = [1, 1]} : vector<160x128xf32> to vector<80x128xf32>
    %154 = vector.extract_strided_slice %152 {offsets = [80, 0], sizes = [80, 128], strides = [1, 1]} : vector<160x128xf32> to vector<80x128xf32>
    %155 = arith.maximumf %153, %154 : vector<80x128xf32>
    %156 = vector.extract_strided_slice %155 {offsets = [0, 0], sizes = [40, 128], strides = [1, 1]} : vector<80x128xf32> to vector<40x128xf32>
    %157 = vector.extract_strided_slice %155 {offsets = [40, 0], sizes = [40, 128], strides = [1, 1]} : vector<80x128xf32> to vector<40x128xf32>
    %158 = arith.maximumf %156, %157 : vector<40x128xf32>
    %c9 = arith.constant 9 : index
    %c0_62 = arith.constant 0 : index
    %c0_63 = arith.constant 0 : index
    %159 = vector.load %arg4[%c9, %c0_62, %c0_63] : memref<12x10x40xf32, #tpu.memory_space<vmem>>, vector<1x10x40xf32>
    %160 = vector.shape_cast %159 : vector<1x10x40xf32> to vector<10x40xf32>
    %cst_64 = arith.constant dense<0.000000e+00> : vector<10x128xf32>
    %161 = tpu.matmul %160, %158, %cst_64 {dimension_numbers = #tpu.dot_dimension_numbers<[1], [0], [0], [1], [0, 0, 1, 1], [], []>} : vector<10x40xf32>, vector<40x128xf32>, vector<10x128xf32> -> vector<10x128xf32>
    %162 = arith.addf %146, %161 : vector<10x128xf32>
    %c560 = arith.constant 560 : index
    %c0_65 = arith.constant 0 : index
    %163 = vector.load %arg1[%c560, %c0_65] : memref<784x128xf32, #tpu.memory_space<vmem>>, vector<168x128xf32>
    %cst_66 = arith.constant dense<0.000000e+00> : vector<160x128xf32>
    %164 = tpu.matmul %0, %163, %cst_66 {dimension_numbers = #tpu.dot_dimension_numbers<[1], [0], [0], [1], [0, 0, 1, 1], [], []>} : vector<160x168xf32>, vector<168x128xf32>, vector<160x128xf32> -> vector<160x128xf32>
    %165 = vector.broadcast %1 : vector<160x1xf32> to vector<160x128xf32>
    %166 = arith.addf %164, %165 : vector<160x128xf32>
    %cst_67 = arith.constant 0.000000e+00 : f32
    %167 = vector.broadcast %cst_67 : f32 to vector<160x128xf32>
    %168 = arith.maximumf %166, %167 : vector<160x128xf32>
    %169 = vector.extract_strided_slice %168 {offsets = [0, 0], sizes = [80, 128], strides = [1, 1]} : vector<160x128xf32> to vector<80x128xf32>
    %170 = vector.extract_strided_slice %168 {offsets = [80, 0], sizes = [80, 128], strides = [1, 1]} : vector<160x128xf32> to vector<80x128xf32>
    %171 = arith.maximumf %169, %170 : vector<80x128xf32>
    %172 = vector.extract_strided_slice %171 {offsets = [0, 0], sizes = [40, 128], strides = [1, 1]} : vector<80x128xf32> to vector<40x128xf32>
    %173 = vector.extract_strided_slice %171 {offsets = [40, 0], sizes = [40, 128], strides = [1, 1]} : vector<80x128xf32> to vector<40x128xf32>
    %174 = arith.maximumf %172, %173 : vector<40x128xf32>
    %c10 = arith.constant 10 : index
    %c0_68 = arith.constant 0 : index
    %c0_69 = arith.constant 0 : index
    %175 = vector.load %arg4[%c10, %c0_68, %c0_69] : memref<12x10x40xf32, #tpu.memory_space<vmem>>, vector<1x10x40xf32>
    %176 = vector.shape_cast %175 : vector<1x10x40xf32> to vector<10x40xf32>
    %cst_70 = arith.constant dense<0.000000e+00> : vector<10x128xf32>
    %177 = tpu.matmul %176, %174, %cst_70 {dimension_numbers = #tpu.dot_dimension_numbers<[1], [0], [0], [1], [0, 0, 1, 1], [], []>} : vector<10x40xf32>, vector<40x128xf32>, vector<10x128xf32> -> vector<10x128xf32>
    %178 = arith.addf %162, %177 : vector<10x128xf32>
    %c616 = arith.constant 616 : index
    %c0_71 = arith.constant 0 : index
    %179 = vector.load %arg1[%c616, %c0_71] : memref<784x128xf32, #tpu.memory_space<vmem>>, vector<168x128xf32>
    %cst_72 = arith.constant dense<0.000000e+00> : vector<160x128xf32>
    %180 = tpu.matmul %0, %179, %cst_72 {dimension_numbers = #tpu.dot_dimension_numbers<[1], [0], [0], [1], [0, 0, 1, 1], [], []>} : vector<160x168xf32>, vector<168x128xf32>, vector<160x128xf32> -> vector<160x128xf32>
    %181 = vector.broadcast %1 : vector<160x1xf32> to vector<160x128xf32>
    %182 = arith.addf %180, %181 : vector<160x128xf32>
    %cst_73 = arith.constant 0.000000e+00 : f32
    %183 = vector.broadcast %cst_73 : f32 to vector<160x128xf32>
    %184 = arith.maximumf %182, %183 : vector<160x128xf32>
    %185 = vector.extract_strided_slice %184 {offsets = [0, 0], sizes = [80, 128], strides = [1, 1]} : vector<160x128xf32> to vector<80x128xf32>
    %186 = vector.extract_strided_slice %184 {offsets = [80, 0], sizes = [80, 128], strides = [1, 1]} : vector<160x128xf32> to vector<80x128xf32>
    %187 = arith.maximumf %185, %186 : vector<80x128xf32>
    %188 = vector.extract_strided_slice %187 {offsets = [0, 0], sizes = [40, 128], strides = [1, 1]} : vector<80x128xf32> to vector<40x128xf32>
    %189 = vector.extract_strided_slice %187 {offsets = [40, 0], sizes = [40, 128], strides = [1, 1]} : vector<80x128xf32> to vector<40x128xf32>
    %190 = arith.maximumf %188, %189 : vector<40x128xf32>
    %c11 = arith.constant 11 : index
    %c0_74 = arith.constant 0 : index
    %c0_75 = arith.constant 0 : index
    %191 = vector.load %arg4[%c11, %c0_74, %c0_75] : memref<12x10x40xf32, #tpu.memory_space<vmem>>, vector<1x10x40xf32>
    %192 = vector.shape_cast %191 : vector<1x10x40xf32> to vector<10x40xf32>
    %cst_76 = arith.constant dense<0.000000e+00> : vector<10x128xf32>
    %193 = tpu.matmul %192, %190, %cst_76 {dimension_numbers = #tpu.dot_dimension_numbers<[1], [0], [0], [1], [0, 0, 1, 1], [], []>} : vector<10x40xf32>, vector<40x128xf32>, vector<10x128xf32> -> vector<10x128xf32>
    %194 = arith.addf %178, %193 : vector<10x128xf32>
    %c0_77 = arith.constant 0 : index
    %c0_78 = arith.constant 0 : index
    %195 = vector.load %arg5[%c0_77, %c0_78] : memref<10x1xf32, #tpu.memory_space<vmem>>, vector<10x1xf32>
    %196 = vector.broadcast %195 : vector<10x1xf32> to vector<10x128xf32>
    %197 = arith.addf %194, %196 : vector<10x128xf32>
    %cst_79 = arith.constant dense<0xFF800000> : vector<128xf32>
    %198 = vector.multi_reduction <maximumf>, %197, %cst_79 [0] : vector<10x128xf32> to vector<128xf32>
    %199 = vector.shape_cast %198 : vector<128xf32> to vector<1x128xf32>
    %200 = vector.broadcast %199 : vector<1x128xf32> to vector<10x128xf32>
    %201 = arith.subf %197, %200 : vector<10x128xf32>
    %202 = math.exp %201 : vector<10x128xf32>
    %cst_80 = arith.constant dense<0.000000e+00> : vector<128xf32>
    %203 = vector.multi_reduction <add>, %202, %cst_80 [0] : vector<10x128xf32> to vector<128xf32>
    %204 = vector.shape_cast %203 : vector<128xf32> to vector<1x128xf32>
    %205 = tpu.reciprocal %204 {approx = true} : vector<1x128xf32> -> vector<1x128xf32>
    %206 = arith.mulf %204, %205 : vector<1x128xf32>
    %cst_81 = arith.constant 2.000000e+00 : f32
    %207 = vector.broadcast %cst_81 : f32 to vector<1x128xf32>
    %208 = arith.subf %207, %206 : vector<1x128xf32>
    %209 = arith.mulf %205, %208 : vector<1x128xf32>
    %210 = arith.mulf %204, %209 : vector<1x128xf32>
    %cst_82 = arith.constant 2.000000e+00 : f32
    %211 = vector.broadcast %cst_82 : f32 to vector<1x128xf32>
    %212 = arith.subf %211, %210 : vector<1x128xf32>
    %213 = arith.mulf %209, %212 : vector<1x128xf32>
    %214 = vector.broadcast %213 : vector<1x128xf32> to vector<10x128xf32>
    %215 = arith.mulf %202, %214 : vector<10x128xf32>
    %c0_83 = arith.constant 0 : index
    %c0_84 = arith.constant 0 : index
    %216 = vector.load %arg6[%c0_83, %c0_84] : memref<10x128xf32, #tpu.memory_space<vmem>>, vector<10x128xf32>
    tpu.vector_store %arg6[%c0_83, %c0_84], %215 {strides = array<i32>} : memref<10x128xf32, #tpu.memory_space<vmem>>, vector<10x128xf32>,
    return
  }
  func.func @transform_0(%arg0: i32) -> (i32, i32) {
    %c0_i32 = arith.constant 0 : i32
    %c0_i32_0 = arith.constant 0 : i32
    return %c0_i32, %arg0 : i32, i32
  }
  func.func @transform_1(%arg0: i32) -> (i32, i32) {
    %c0_i32 = arith.constant 0 : i32
    %c0_i32_0 = arith.constant 0 : i32
    %c0_i32_1 = arith.constant 0 : i32
    return %c0_i32, %c0_i32_0 : i32, i32
  }
  func.func @transform_2(%arg0: i32) -> (i32, i32) {
    %c0_i32 = arith.constant 0 : i32
    %c0_i32_0 = arith.constant 0 : i32
    %c0_i32_1 = arith.constant 0 : i32
    return %c0_i32, %c0_i32_0 : i32, i32
  }
  func.func @transform_3(%arg0: i32) -> (i32, i32, i32) {
    %c0_i32 = arith.constant 0 : i32
    %c0_i32_0 = arith.constant 0 : i32
    %c0_i32_1 = arith.constant 0 : i32
    %c0_i32_2 = arith.constant 0 : i32
    return %c0_i32, %c0_i32_0, %c0_i32_1 : i32, i32, i32
  }
  func.func @transform_4(%arg0: i32) -> (i32, i32) {
    %c0_i32 = arith.constant 0 : i32
    %c0_i32_0 = arith.constant 0 : i32
    %c0_i32_1 = arith.constant 0 : i32
    return %c0_i32, %c0_i32_0 : i32, i32
  }
  func.func @transform_5(%arg0: i32) -> (i32, i32) {
    %c0_i32 = arith.constant 0 : i32
    %c0_i32_0 = arith.constant 0 : i32
    return %c0_i32, %arg0 : i32, i32
  }
}

</mosaic_0001>

<bundles_post_ra>
// kernel: tpu_custom_call.1
= control target key start
LH: loop header
LB: loop body
LE: loop exit
PB: predicated region body
PF: predicated region fallthrough
CT: control target
= control target key end

     0   :  { %10 = vsyncpa [#allocation3], 0  ;;  %s7449_s0 = inlined_call_operand.hbm [shape: f32[784,128], index: 0, kind: input, shape index: {}]   ;;  %s7450_s1 = inlined_call_operand.vmem [shape: f32[160,168], index: 1, kind: input, shape index: {}]   ;;  %s7451_s2 = inlined_call_operand.vmem [shape: f32[160,1], index: 2, kind: input, shape index: {}]   ;;  %s7452_s3 = inlined_call_operand.vmem [shape: f32[12,10,40], index: 3, kind: input, shape index: {}]   ;;  %s7453_s4 = inlined_call_operand.vmem [shape: f32[10,1], index: 4, kind: input, shape index: {}]   ;;  %s7454_s5 = inlined_call_operand.hbm [shape: f32[10,128], index: 5, kind: output, shape index: {}]  }
   0x1   :  { %11 = vsyncpa [#allocation4], 0  ;;  %s4704_s18 = smov [#allocation2]  }
   0x2   :  { %s17_s19 = sshll.u32 %s4704_s18, 4  ;;  %s18_s19 = int_to_ptr.vmem [resolvable:$true] %s17_s19 }
   0x3   :  { %s4668_s20 = scalar_lea.vmem %s18_s19, 12544  ;;  %p4673_p1 = scmp.lt.s32.totalorder %s18_s19, %s18_s19 }
   0x4   :  { %p4669_p0 = scmp.ne.s32.totalorder %s18_s19, %s4668_s20  ;;  %p4674_p2 = scmp.lt.s32.totalorder %s4668_s20, %s4668_s20 }
   0x6   :  { %p4675_p3 = por %p4674_p2, %p4673_p1 }
   0x8   :  { %p4676_p4 = pnand %p4675_p3, %p4669_p0 }
   0xa   :  { %4679 = shalt.err (!%p4676_p4)
}
   0xb   :  { %s4705_s21 = smov 128   ;;  %s4706_s22 = smov 8  }
   0xc   :  { %23 = dma.hbm_to_vmem [thread:$0]  %s7449_s0, 12544, %s18_s19, [#allocation3], %s4705_s21, %s4705_s21, %s4706_s22  }
   0xd   :  { %4700 = dma.done.wait [#allocation3], 12544  }
   0xe   :  { %4701 = vsyncadd [#allocation3], 4294954752  ;;  %v7455_v0 = vmov 0.0   ;;  %v4708_v1 = vmov 0   ;;  %v110_v2 = vld [vmem:[#allocation2 + $0x78] sm:$0xff]  ;;  %v494_v3 = vld [vmem:[#allocation2 + $0xb0] sm:$0xff] }
   0xf   :  { %277 = vmatprep.subr.mxu0 %v7455_v0  ;;  %500 = vmatprep.subr.mxu1 %v7455_v0  ;;  %v109_v4 = vld [vmem:[#allocation2 + $0x70] sm:$0xff]  ;;  %v493_v5 = vld [vmem:[#allocation2 + $0xa8] sm:$0xff]  ;;  %v4750_v7 = vld [vmem:[#allocation2 + $0xa0] sm:$0xff]  ;;  %vm216_vm0 = vcmask 326656   ;;  %vm3949_vm1 = vcmask 1041408  }
  0x10   :  { %4532 = vset.pattern.permute.xlu0 %v4708_v1  ;;  %4533 = vset.pattern.permute.xlu1 %v4708_v1  ;;  %v108_v6 = vld [vmem:[#allocation2 + $0x68] sm:$0xff]  ;;  %v107_v8 = vld [vmem:[#allocation2 + $0x60] sm:$0xff]  ;;  %v4754_v9 = vld [vmem:[#allocation2 + $0x98] sm:$0xff] }
  0x11   :  { %278 = vmatpush1.msra.mxu0 %v110_v2  ;;  %501 = vmatpush1.msra.mxu1 %v494_v3  ;;  %v106_v10 = vld [vmem:[#allocation2 + $0x58] sm:$0xff]  ;;  %v4759_v11 = vld [vmem:[#allocation2 + $0x90] sm:$0xff]  ;;  %v4764_v13 = vld [vmem:[#allocation2 + $0x88] sm:$0xff] }
  0x12   :  { %279 = vmatprep.subr.mxu0 %v7455_v0  ;;  %502 = vmatprep.subr.mxu1 %v7455_v0  ;;  %v105_v12 = vld [vmem:[#allocation2 + $0x50] sm:$0xff]  ;;  %v104_v14 = vld [vmem:[#allocation2 + $0x48] sm:$0xff]  ;;  %v4769_v15 = vld [vmem:[#allocation2 + $0x80] sm:$0xff] }
  0x13   :  { %280 = vmatpush1.msra.mxu0 %v109_v4  ;;  %503 = vmatpush1.msra.mxu1 %v493_v5  ;;  %v103_v16 = vld [vmem:[#allocation2 + $0x40] sm:$0xff]  ;;  %v102_v17 = vld [vmem:[#allocation2 + $0x38] sm:$0xff]  ;;  %v101_v18 = vld [vmem:[#allocation2 + $0x30] sm:$0xff] }
  0x14   :  { %281 = vmatprep.subr.mxu0 %v7455_v0  ;;  %504 = vmatprep.subr.mxu1 %v7455_v0  ;;  %v100_v19 = vld [vmem:[#allocation2 + $0x28] sm:$0xff]  ;;  %v99_v20 = vld [vmem:[#allocation2 + $0x20] sm:$0xff]  ;;  %v98_v21 = vld [vmem:[#allocation2 + $0x18] sm:$0xff] }
  0x15   :  { %282 = vmatpush1.msra.mxu0 %v108_v6  ;;  %505 = vmatpush1.msra.mxu1 %v4750_v7  ;;  %v97_v22 = vld [vmem:[#allocation2 + $0x10] sm:$0xff]  ;;  %v96_v23 = vld [vmem:[#allocation2 + $0x8] sm:$0xff]  ;;  %v95_v24 = vld [vmem:[#allocation2] sm:$0xff] }
  0x16   :  { %283 = vmatprep.subr.mxu0 %v7455_v0  ;;  %506 = vmatprep.subr.mxu1 %v7455_v0  ;;  %v4793_v25 = vld [vmem:[#allocation2 + $0xd8] sm:$0xff]  ;;  %v4797_v26 = vld [vmem:[#allocation2 + $0xd0] sm:$0xff]  ;;  %v4803_v27 = vld [vmem:[#allocation2 + $0xc8] sm:$0xff] }
  0x17   :  { %284 = vmatpush1.msra.mxu0 %v107_v8  ;;  %507 = vmatpush1.msra.mxu1 %v4754_v9  ;;  %7733 = vst [vmem:[#allocation8_spill] sm:$0xff] %v4797_v26  ;;  %7734 = vst [vmem:[#allocation9_spill] sm:$0xff] %v4803_v27  ;;  %v4809_v28 = vld [vmem:[#allocation2 + $0xc0] sm:$0xff]  ;;  %v4818_v29 = vld [vmem:[%s7450_s1 + $0x8] sm:$0xff] }
  0x18   :  { %285 = vmatprep.subr.mxu0 %v7455_v0  ;;  %508 = vmatprep.subr.mxu1 %v7455_v0  ;;  %7735 = vst [vmem:[#allocation10_spill] sm:$0xff] %v4809_v28  ;;  %v4822_v30 = vld [vmem:[#allocation2 + $0xb8] sm:$0xff]  ;;  %v4829_v31 = vld [vmem:[%s7450_s1] sm:$0xff]  ;;  %v89_v34 = vld [vmem:[%s7451_s2 + $0x70] sm:$0xff] }
  0x19   :  { %286 = vmatpush1.msra.mxu0 %v106_v10  ;;  %509 = vmatpush1.msra.mxu1 %v4759_v11  ;;  %7736 = vst [vmem:[#allocation11_spill] sm:$0xff] %v4822_v30  ;;  %7737 = vst [vmem:[#allocation12_spill] sm:$0xff] %v4829_v31  ;;  %v4837_v32 = vld [vmem:[%s7450_s1 + $0x18] sm:$0xff]  ;;  %v79_v33 = vld [vmem:[%s7451_s2 + $0x20] sm:$0xff] }
  0x1a   :  { %287 = vmatprep.subr.mxu0 %v7455_v0  ;;  %510 = vmatprep.subr.mxu1 %v7455_v0  ;;  %7738 = vst [vmem:[#allocation13_spill] sm:$0xff] %v4837_v32  ;;  %v4857_v35 = vld [vmem:[%s7450_s1 + $0x10] sm:$0xff]  ;;  %v4862_v36 = vld [vmem:[%s7450_s1 + $0x28] sm:$0xff]  ;;  %v94_v38 = vld [vmem:[%s7451_s2 + $0x98] sm:$0xff] }
  0x1b   :  { %288 = vmatpush1.msra.mxu0 %v105_v12  ;;  %511 = vmatpush1.msra.mxu1 %v4764_v13  ;;  %7739 = vst [vmem:[#allocation14_spill] sm:$0xff] %v4857_v35  ;;  %7740 = vst [vmem:[#allocation15_spill] sm:$0xff] %v4862_v36  ;;  %v84_v37 = vld [vmem:[%s7451_s2 + $0x48] sm:$0xff]  ;;  %v4879_v39 = vld [vmem:[%s7450_s1 + $0x20] sm:$0xff] }
  0x1c   :  { %289 = vmatprep.subr.mxu0 %v7455_v0  ;;  %512 = vmatprep.subr.mxu1 %v7455_v0  ;;  %7741 = vst [vmem:[#allocation16_spill] sm:$0xff] %v4879_v39  ;;  %v4884_v40 = vld [vmem:[%s7450_s1 + $0x38] sm:$0xff]  ;;  %v83_v42 = vld [vmem:[%s7451_s2 + $0x40] sm:$0xff]  ;;  %v4901_v43 = vld [vmem:[%s7450_s1 + $0x30] sm:$0xff] }
  0x1d   :  { %290 = vmatpush1.msra.mxu0 %v104_v14  ;;  %513 = vmatpush1.msra.mxu1 %v4769_v15  ;;  %7742 = vst [vmem:[#allocation17_spill] sm:$0xff] %v4884_v40  ;;  %v78_v41 = vld [vmem:[%s7451_s2 + $0x18] sm:$0xff]  ;;  %7743 = vst [vmem:[#allocation18_spill] sm:$0xff] %v4901_v43  ;;  %v4906_v44 = vld [vmem:[%s7450_s1 + $0x48] sm:$0xff] }
  0x1e   :  { %291 = vmatprep.subr.mxu0 %v7455_v0  ;;  %514 = vmatprep.subr.mxu1 %v7455_v0  ;;  %7744 = vst [vmem:[#allocation19_spill] sm:$0xff] %v4906_v44  ;;  %v88_v45 = vld [vmem:[%s7451_s2 + $0x68] sm:$0xff]  ;;  %v93_v46 = vld [vmem:[%s7451_s2 + $0x90] sm:$0xff]  ;;  %v4923_v47 = vld [vmem:[%s7450_s1 + $0x40] sm:$0xff] }
  0x1f   :  { %292 = vmatpush1.msra.mxu0 %v103_v16  ;;  %515 = vmatpush1.msra.mxu1 %v110_v2  ;;  %7745 = vst [vmem:[#allocation20_spill] sm:$0xff] %v4923_v47  ;;  %v4928_v48 = vld [vmem:[%s7450_s1 + $0x58] sm:$0xff]  ;;  %v77_v49 = vld [vmem:[%s7451_s2 + $0x10] sm:$0xff]  ;;  %v4950_v52 = vld [vmem:[%s7450_s1 + $0x68] sm:$0xff] }
  0x20   :  { %293 = vmatprep.subr.mxu0 %v7455_v0  ;;  %516 = vmatprep.subr.mxu1 %v7455_v0  ;;  %7746 = vst [vmem:[#allocation21_spill] sm:$0xff] %v4928_v48  ;;  %v82_v50 = vld [vmem:[%s7451_s2 + $0x38] sm:$0xff]  ;;  %v4945_v51 = vld [vmem:[%s7450_s1 + $0x50] sm:$0xff]  ;;  %7748 = vst [vmem:[#allocation23_spill] sm:$0xff] %v4950_v52 }
  0x21   :  { %294 = vmatpush1.msra.mxu0 %v102_v17  ;;  %517 = vmatpush1.msra.mxu1 %v109_v4  ;;  %7747 = vst [vmem:[#allocation22_spill] sm:$0xff] %v4945_v51  ;;  %v87_v53 = vld [vmem:[%s7451_s2 + $0x60] sm:$0xff]  ;;  %v92_v54 = vld [vmem:[%s7451_s2 + $0x88] sm:$0xff]  ;;  %v4972_v56 = vld [vmem:[%s7450_s1 + $0x78] sm:$0xff] }
  0x22   :  { %295 = vmatprep.subr.mxu0 %v7455_v0  ;;  %518 = vmatprep.subr.mxu1 %v7455_v0  ;;  %v4967_v55 = vld [vmem:[%s7450_s1 + $0x60] sm:$0xff]  ;;  %7750 = vst [vmem:[#allocation25_spill] sm:$0xff] %v4972_v56  ;;  %v76_v57 = vld [vmem:[%s7451_s2 + $0x8] sm:$0xff]  ;;  %v81_v58 = vld [vmem:[%s7451_s2 + $0x30] sm:$0xff] }
  0x23   :  { %296 = vmatpush1.msra.mxu0 %v101_v18  ;;  %519 = vmatpush1.msra.mxu1 %v108_v6  ;;  %7749 = vst [vmem:[#allocation24_spill] sm:$0xff] %v4967_v55  ;;  %v4989_v59 = vld [vmem:[%s7450_s1 + $0x70] sm:$0xff]  ;;  %v4994_v60 = vld [vmem:[%s7450_s1 + $0x88] sm:$0xff]  ;;  %v86_v61 = vld [vmem:[%s7451_s2 + $0x58] sm:$0xff] }
  0x24   :  { %297 = vmatprep.subr.mxu0 %v7455_v0  ;;  %520 = vmatprep.subr.mxu1 %v7455_v0  ;;  %7751 = vst [vmem:[#allocation26_spill] sm:$0xff] %v4989_v59  ;;  %7752 = vst [vmem:[#allocation27_spill] sm:$0xff] %v4994_v60  ;;  %v91_v62 = vld [vmem:[%s7451_s2 + $0x80] sm:$0xff]  ;;  %v5016_v1 = vld [vmem:[%s7450_s1 + $0x98] sm:$0xff] }
  0x25   :  { %298 = vmatpush1.msra.mxu0 %v100_v19  ;;  %521 = vmatpush1.msra.mxu1 %v107_v8  ;;  %v5011_v63 = vld [vmem:[%s7450_s1 + $0x80] sm:$0xff]  ;;  %7754 = vst [vmem:[#allocation29_spill] sm:$0xff] %v5016_v1  ;;  %v80_v3 = vld [vmem:[%s7451_s2 + $0x28] sm:$0xff]  ;;  %v5033_v4 = vld [vmem:[%s7450_s1 + $0x90] sm:$0xff] }
  0x26   :  { %299 = vmatprep.subr.mxu0 %v7455_v0  ;;  %522 = vmatprep.subr.mxu1 %v7455_v0  ;;  %7753 = vst [vmem:[#allocation28_spill] sm:$0xff] %v5011_v63  ;;  %v75_v2 = vld [vmem:[%s7451_s2] sm:$0xff]  ;;  %7755 = vst [vmem:[#allocation30_spill] sm:$0xff] %v5033_v4  ;;  %v5038_v5 = vld [vmem:[%s7450_s1 + $0xa8] sm:$0xff] }
  0x27   :  { %300 = vmatpush1.msra.mxu0 %v99_v20  ;;  %523 = vmatpush1.msra.mxu1 %v106_v10  ;;  %7756 = vst [vmem:[#allocation31_spill] sm:$0xff] %v5038_v5  ;;  %v85_v6 = vld [vmem:[%s7451_s2 + $0x50] sm:$0xff]  ;;  %v5055_v8 = vld [vmem:[%s7450_s1 + $0xa0] sm:$0xff]  ;;  %v5130_v19 = vld [vmem:[%s7450_s1 + $0xf8] sm:$0xff] }
  0x28   :  { %301 = vmatprep.subr.mxu0 %v7455_v0  ;;  %524 = vmatprep.subr.mxu1 %v7455_v0  ;;  %7757 = vst [vmem:[#allocation32_spill] sm:$0xff] %v5055_v8  ;;  %v3935_v10 = vld [vmem:[%s7453_s4] sm:$0xff]  ;;  %7766 = vst [vmem:[#allocation41_spill] sm:$0xff] %v5130_v19  ;;  %v5141_v20 = vld [vmem:[%s7450_s1 + $0xf0] sm:$0xff] }
  0x29   :  { %302 = vmatpush1.msra.mxu0 %v98_v21  ;;  %525 = vmatpush1.msra.mxu1 %v105_v12  ;;  %v5077_v12 = vld [vmem:[%s7450_s1 + $0xb0] sm:$0xff]  ;;  %v5125_v18 = vld [vmem:[%s7450_s1 + $0xe0] sm:$0xff]  ;;  %7767 = vst [vmem:[#allocation42_spill] sm:$0xff] %v5141_v20  ;;  %v5146_v21 = vld [vmem:[%s7450_s1 + $0x108] sm:$0xff] }
  0x2a   :  { %303 = vmatprep.subr.mxu0 %v7455_v0  ;;  %526 = vmatprep.subr.mxu1 %v7455_v0  ;;  %7759 = vst [vmem:[#allocation34_spill] sm:$0xff] %v5077_v12  ;;  %7765 = vst [vmem:[#allocation40_spill] sm:$0xff] %v5125_v18 }
  0x2b   :  { %304 = vmatpush1.msra.mxu0 %v97_v22  ;;  %527 = vmatpush1.msra.mxu1 %v104_v14  ;;  %v5093_v14 = vld [vmem:[%s7450_s1 + $0xc0] sm:$0xff]  ;;  %7768 = vst [vmem:[#allocation43_spill] sm:$0xff] %v5146_v21 }
  0x2c   :  { %305 = vmatprep.subr.mxu0 %v7455_v0  ;;  %528 = vmatprep.subr.mxu1 %v7455_v0  ;;  %7761 = vst [vmem:[#allocation36_spill] sm:$0xff] %v5093_v14  ;;  %v5157_v22 = vld [vmem:[%s7450_s1 + $0x100] sm:$0xff] }
  0x2d   :  { %306 = vmatpush1.msra.mxu0 %v96_v23  ;;  %529 = vmatpush1.msra.mxu1 %v103_v16  ;;  %v5109_v16 = vld [vmem:[%s7450_s1 + $0xd0] sm:$0xff]  ;;  %7769 = vst [vmem:[#allocation44_spill] sm:$0xff] %v5157_v22  ;;  %v5162_v23 = vld [vmem:[%s7450_s1 + $0x118] sm:$0xff] }
  0x2e   :  { %307 = vmatprep.subr.mxu0 %v7455_v0  ;;  %530 = vmatprep.subr.mxu1 %v7455_v0  ;;  %7763 = vst [vmem:[#allocation38_spill] sm:$0xff] %v5109_v16  ;;  %7770 = vst [vmem:[#allocation45_spill] sm:$0xff] %v5162_v23 }
  0x2f   :  { %308 = vmatpush1.msra.mxu0 %v95_v24  ;;  %531 = vmatpush1.msra.mxu1 %v102_v17  ;;  %v5114_v17 = vld [vmem:[%s7450_s1 + $0xe8] sm:$0xff]  ;;  %v5173_v24 = vld [vmem:[%s7450_s1 + $0x110] sm:$0xff] }
  0x30   :  { %331 = vmatprep.subr.mxu0 %v7455_v0  ;;  %554 = vmatprep.subr.mxu1 %v7455_v0  ;;  %7764 = vst [vmem:[#allocation39_spill] sm:$0xff] %v5114_v17  ;;  %7771 = vst [vmem:[#allocation46_spill] sm:$0xff] %v5173_v24 }
  0x31   :  { %332 = vmatpush2.msra.mxu0 %v4750_v7  ;;  %555 = vmatpush2.msra.mxu1 %v4793_v25  ;;  %v90_v7 = vld [vmem:[%s7451_s2 + $0x78] sm:$0xff] }
  0x32   :  { %333 = vmatprep.subr.mxu0 %v7455_v0  ;;  %556 = vmatprep.subr.mxu1 %v7455_v0 }
  0x33   :  { %334 = vmatpush2.msra.mxu0 %v4754_v9  ;;  %557 = vmatpush2.msra.mxu1 %v4797_v26  ;;  %v5060_v9 = vld [vmem:[%s7450_s1 + $0xb8] sm:$0xff] }
  0x34   :  { %335 = vmatprep.subr.mxu0 %v7455_v0  ;;  %558 = vmatprep.subr.mxu1 %v7455_v0  ;;  %7758 = vst [vmem:[#allocation33_spill] sm:$0xff] %v5060_v9 }
  0x35   :  { %336 = vmatpush2.msra.mxu0 %v4759_v11  ;;  %559 = vmatpush2.msra.mxu1 %v4803_v27  ;;  %v3936_v11 = vld [vmem:[%s7453_s4 + $0x8] sm:$0x3] }
  0x36   :  { %337 = vmatprep.subr.mxu0 %v7455_v0  ;;  %560 = vmatprep.subr.mxu1 %v7455_v0 }
  0x37   :  { %338 = vmatpush2.msra.mxu0 %v4764_v13  ;;  %561 = vmatpush2.msra.mxu1 %v4809_v28  ;;  %v5082_v13 = vld [vmem:[%s7450_s1 + $0xc8] sm:$0xff] }
  0x38   :  { %339 = vmatprep.subr.mxu0 %v7455_v0  ;;  %562 = vmatprep.subr.mxu1 %v7455_v0  ;;  %7760 = vst [vmem:[#allocation35_spill] sm:$0xff] %v5082_v13 }
  0x39   :  { %340 = vmatpush2.msra.mxu0 %v4769_v15  ;;  %4000 = vmatprep.mubr.msk.f32.mxu0 %vm216_vm0, %v4818_v29  ;;  %v5098_v15 = vld [vmem:[%s7450_s1 + $0xd8] sm:$0xff] }
  0x3a   :  { %563 = vmatpush2.msra.mxu1 %v4822_v30  ;;  %4020 = vmatprep.mubr.msk.f32.mxu1 %vm216_vm0, %v4818_v29  ;;  %7762 = vst [vmem:[#allocation37_spill] sm:$0xff] %v5098_v15 }
  0x3b   :  { %342 = vmatmul.mubr.f32.vlgmr.msra.gmra.mxu0 %v4829_v31  ;;  %565 = vmatmul.mubr.f32.vlgmr.msra.gmra.mxu1 %v4829_v31 }
  0x3c   :  { %4001 = vmatprep.mubr.msk.f32.mxu0 %vm216_vm0, %v4837_v32  ;;  %4021 = vmatprep.mubr.msk.f32.mxu1 %vm216_vm0, %v4837_v32 }
  0x3d   :  { %138 = vperm.xlu0 %4532, %v79_v33   ;;  %188 = vperm.xlu1 %4533, %v89_v34   ;;  %v5178_v33 = vld [vmem:[%s7450_s1 + $0x128] sm:$0xff]  ;;  %v5189_v34 = vld [vmem:[%s7450_s1 + $0x120] sm:$0xff] }
  0x3e   :  { %7772 = vst [vmem:[#allocation47_spill] sm:$0xff] %v5178_v33  ;;  %7773 = vst [vmem:[#allocation48_spill] sm:$0xff] %v5189_v34 }
  0x3f   :  { %347 = vmatmul.mubr.f32.gmra.mxu0 %v4857_v35  ;;  %570 = vmatmul.mubr.f32.gmra.mxu1 %v4857_v35 }
  0x40   :  { %4002 = vmatprep.mubr.msk.f32.mxu0 %vm216_vm0, %v4862_v36  ;;  %4022 = vmatprep.mubr.msk.f32.mxu1 %vm216_vm0, %v4862_v36 }
  0x41   :  { %163 = vperm.xlu0 %4532, %v84_v37   ;;  %213 = vperm.xlu1 %4533, %v94_v38   ;;  %v5194_v37 = vld [vmem:[%s7450_s1 + $0x138] sm:$0xff]  ;;  %v5205_v38 = vld [vmem:[%s7450_s1 + $0x130] sm:$0xff] }
  0x42   :  { %7774 = vst [vmem:[#allocation49_spill] sm:$0xff] %v5194_v37  ;;  %7775 = vst [vmem:[#allocation50_spill] sm:$0xff] %v5205_v38 }
  0x43   :  { %352 = vmatmul.mubr.f32.gmra.mxu0 %v4879_v39  ;;  %575 = vmatmul.mubr.f32.gmra.mxu1 %v4879_v39 }
  0x44   :  { %4003 = vmatprep.mubr.msk.f32.mxu0 %vm216_vm0, %v4884_v40  ;;  %4023 = vmatprep.mubr.msk.f32.mxu1 %vm216_vm0, %v4884_v40 }
  0x45   :  { %133 = vperm.xlu0 %4532, %v78_v41   ;;  %158 = vperm.xlu1 %4533, %v83_v42   ;;  %v4040_v41 = vld [vmem:[%s7452_s3 + $0x10] sm:$0xff]  ;;  %v477_v42 = vld [vmem:[%s7452_s3] sm:$0xff] }
  0x47   :  { %357 = vmatmul.mubr.f32.gmra.mxu0 %v4901_v43  ;;  %580 = vmatmul.mubr.f32.gmra.mxu1 %v4901_v43 }
  0x48   :  { %4004 = vmatprep.mubr.msk.f32.mxu0 %vm216_vm0, %v4906_v44  ;;  %4024 = vmatprep.mubr.msk.f32.mxu1 %vm216_vm0, %v4906_v44 }
  0x49   :  { %183 = vperm.xlu0 %4532, %v88_v45   ;;  %208 = vperm.xlu1 %4533, %v93_v46  }
  0x4b   :  { %362 = vmatmul.mubr.f32.gmra.mxu0 %v4923_v47  ;;  %585 = vmatmul.mubr.f32.gmra.mxu1 %v4923_v47 }
  0x4c   :  { %4005 = vmatprep.mubr.msk.f32.mxu0 %vm216_vm0, %v4928_v48  ;;  %4025 = vmatprep.mubr.msk.f32.mxu1 %vm216_vm0, %v4928_v48 }
  0x4d   :  { %128 = vperm.xlu0 %4532, %v77_v49   ;;  %153 = vperm.xlu1 %4533, %v82_v50  }
  0x4f   :  { %367 = vmatmul.mubr.f32.gmra.mxu0 %v4945_v51  ;;  %590 = vmatmul.mubr.f32.gmra.mxu1 %v4945_v51 }
  0x50   :  { %4006 = vmatprep.mubr.msk.f32.mxu0 %vm216_vm0, %v4950_v52  ;;  %4026 = vmatprep.mubr.msk.f32.mxu1 %vm216_vm0, %v4950_v52 }
  0x51   :  { %178 = vperm.xlu0 %4532, %v87_v53   ;;  %203 = vperm.xlu1 %4533, %v92_v54  }
  0x53   :  { %372 = vmatmul.mubr.f32.gmra.mxu0 %v4967_v55  ;;  %595 = vmatmul.mubr.f32.gmra.mxu1 %v4967_v55 }
  0x54   :  { %4007 = vmatprep.mubr.msk.f32.mxu0 %vm216_vm0, %v4972_v56  ;;  %4027 = vmatprep.mubr.msk.f32.mxu1 %vm216_vm0, %v4972_v56 }
  0x55   :  { %123 = vperm.xlu0 %4532, %v76_v57   ;;  %148 = vperm.xlu1 %4533, %v81_v58  }
  0x57   :  { %377 = vmatmul.mubr.f32.gmra.mxu0 %v4989_v59  ;;  %600 = vmatmul.mubr.f32.gmra.mxu1 %v4989_v59 }
  0x58   :  { %4008 = vmatprep.mubr.msk.f32.mxu0 %vm216_vm0, %v4994_v60  ;;  %4028 = vmatprep.mubr.msk.f32.mxu1 %vm216_vm0, %v4994_v60 }
  0x59   :  { %173 = vperm.xlu0 %4532, %v86_v61   ;;  %198 = vperm.xlu1 %4533, %v91_v62  }
  0x5b   :  { %382 = vmatmul.mubr.f32.gmra.mxu0 %v5011_v63  ;;  %605 = vmatmul.mubr.f32.gmra.mxu1 %v5011_v63 }
  0x5c   :  { %4009 = vmatprep.mubr.msk.f32.mxu0 %vm216_vm0, %v5016_v1  ;;  %4029 = vmatprep.mubr.msk.f32.mxu1 %vm216_vm0, %v5016_v1 }
  0x5d   :  { %118 = vperm.xlu0 %4532, %v75_v2   ;;  %143 = vperm.xlu1 %4533, %v80_v3  }
  0x5f   :  { %387 = vmatmul.mubr.f32.gmra.mxu0 %v5033_v4  ;;  %610 = vmatmul.mubr.f32.gmra.mxu1 %v5033_v4 }
  0x60   :  { %4010 = vmatprep.mubr.msk.f32.mxu0 %vm216_vm0, %v5038_v5  ;;  %4030 = vmatprep.mubr.msk.f32.mxu1 %vm216_vm0, %v5038_v5 }
  0x61   :  { %168 = vperm.xlu0 %4532, %v85_v6   ;;  %193 = vperm.xlu1 %4533, %v90_v7  }
  0x63   :  { %392 = vmatmul.mubr.f32.gmra.mxu0 %v5055_v8  ;;  %615 = vmatmul.mubr.f32.gmra.mxu1 %v5055_v8 }
  0x64   :  { %4011 = vmatprep.mubr.msk.f32.mxu0 %vm216_vm0, %v5060_v9  ;;  %4031 = vmatprep.mubr.msk.f32.mxu1 %vm216_vm0, %v5060_v9 }
  0x65   :  { %3939 = vperm.xlu1 %4533, %v3935_v10   ;;  %3944 = vperm.xlu0 %4532, %v3936_v11  }
  0x67   :  { %397 = vmatmul.mubr.f32.gmra.mxu0 %v5077_v12  ;;  %620 = vmatmul.mubr.f32.gmra.mxu1 %v5077_v12 }
  0x68   :  { %4012 = vmatprep.mubr.msk.f32.mxu0 %vm216_vm0, %v5082_v13  ;;  %4032 = vmatprep.mubr.msk.f32.mxu1 %vm216_vm0, %v5082_v13 }
  0x6b   :  { %402 = vmatmul.mubr.f32.gmra.mxu0 %v5093_v14  ;;  %625 = vmatmul.mubr.f32.gmra.mxu1 %v5093_v14 }
  0x6c   :  { %4013 = vmatprep.mubr.msk.f32.mxu0 %vm216_vm0, %v5098_v15  ;;  %4033 = vmatprep.mubr.msk.f32.mxu1 %vm216_vm0, %v5098_v15 }
  0x6f   :  { %407 = vmatmul.mubr.f32.gmra.mxu0 %v5109_v16  ;;  %630 = vmatmul.mubr.f32.gmra.mxu1 %v5109_v16 }
  0x70   :  { %4014 = vmatprep.mubr.msk.f32.mxu0 %vm216_vm0, %v5114_v17  ;;  %4034 = vmatprep.mubr.msk.f32.mxu1 %vm216_vm0, %v5114_v17 }
  0x73   :  { %412 = vmatmul.mubr.f32.gmra.mxu0 %v5125_v18  ;;  %635 = vmatmul.mubr.f32.gmra.mxu1 %v5125_v18 }
  0x74   :  { %4015 = vmatprep.mubr.msk.f32.mxu0 %vm216_vm0, %v5130_v19  ;;  %4035 = vmatprep.mubr.msk.f32.mxu1 %vm216_vm0, %v5130_v19 }
  0x77   :  { %417 = vmatmul.mubr.f32.gmra.mxu0 %v5141_v20  ;;  %640 = vmatmul.mubr.f32.gmra.mxu1 %v5141_v20 }
  0x78   :  { %4016 = vmatprep.mubr.msk.f32.mxu0 %vm216_vm0, %v5146_v21  ;;  %4036 = vmatprep.mubr.msk.f32.mxu1 %vm216_vm0, %v5146_v21 }
  0x7b   :  { %422 = vmatmul.mubr.f32.gmra.mxu0 %v5157_v22  ;;  %645 = vmatmul.mubr.f32.gmra.mxu1 %v5157_v22 }
  0x7c   :  { %4017 = vmatprep.mubr.msk.f32.mxu0 %vm216_vm0, %v5162_v23  ;;  %4037 = vmatprep.mubr.msk.f32.mxu1 %vm216_vm0, %v5162_v23 }
  0x7f   :  { %427 = vmatmul.mubr.f32.gmra.mxu0 %v5173_v24  ;;  %650 = vmatmul.mubr.f32.gmra.mxu1 %v5173_v24 }
  0x80   :  { %4018 = vmatprep.mubr.msk.f32.mxu0 %vm216_vm0, %v5178_v33  ;;  %4038 = vmatprep.mubr.msk.f32.mxu1 %vm216_vm0, %v5178_v33 }
  0x83   :  { %432 = vmatmul.mubr.f32.gmra.mxu0 %v5189_v34  ;;  %655 = vmatmul.mubr.f32.gmra.mxu1 %v5189_v34 }
  0x84   :  { %4019 = vmatprep.mubr.msk.f32.mxu0 %vm216_vm0, %v5194_v37  ;;  %4039 = vmatprep.mubr.msk.f32.mxu1 %vm216_vm0, %v5194_v37 }
  0x87   :  { %437 = vmatmul.mubr.f32.gmra.mxu0 %v5205_v38  ;;  %660 = vmatmul.mubr.f32.gmra.mxu1 %v5205_v38 }
  0x88   :  { %4380 = vmatprep.mubr.msk.f32.mxu0 %vm216_vm0, %v4040_v41  ;;  %4393 = vmatprep.mubr.msk.f32.mxu1 %vm216_vm0, %v477_v42 }
  0xb8   :  { %v5221_v49 = vpop.permute.xlu0 %138  ;;  %v5229_v2 = vpop.permute.xlu1 %188 }
  0xbc   :  { %v5227_v62 = vpop.permute.xlu0 %163 }
  0xc0   :  { %v5239_v42 = vpop.permute.xlu0 %133 }
  0xc1   :  { %7776 = vst [vmem:[#allocation51_spill] sm:$0xff] %v5239_v42 }
  0xc4   :  { %v5247_v34 = vpop.permute.xlu0 %183 }
  0xfb   :  { %v5217_v45 = vpop.f32.mrf.mxu0  ;;  %v5219_v46 = vpop.f32.mrf.mxu1 }
  0xfd   :  { %v345_v50 = vpop.f32.mrf.mxu0  ;;  %v568_v53 = vpop.f32.mrf.mxu1 }
  0xfe   :  { %v5241_v50 = vpop.permute.xlu1 %213 }
  0xff   :  { %v5223_v54 = vpop.f32.mrf.mxu0  ;;  %v5225_v57 = vpop.f32.mrf.mxu1  ;;  %7777 = vst [vmem:[#allocation52_spill] sm:$0xff] %v5241_v50 }
 0x101   :  { %v350_v58 = vpop.f32.mrf.mxu0  ;;  %v573_v61 = vpop.f32.mrf.mxu1 }
 0x103   :  { %v5231_v3 = vpop.f32.mrf.mxu0  ;;  %v5233_v6 = vpop.f32.mrf.mxu1 }
 0x105   :  { %v355_v7 = vpop.f32.mrf.mxu0  ;;  %v578_v10 = vpop.f32.mrf.mxu1 }
 0x106   :  { %v5249_v7 = vpop.permute.xlu1 %158 }
 0x107   :  { %v5235_v11 = vpop.f32.mrf.mxu0  ;;  %v5237_v41 = vpop.f32.mrf.mxu1 }
 0x109   :  { %v360_v53 = vpop.f32.mrf.mxu0  ;;  %v583_v58 = vpop.f32.mrf.mxu1 }
 0x10a   :  { %v5255_v53 = vpop.permute.xlu0 %128  ;;  %v5257_v58 = vpop.permute.xlu1 %208 }
 0x10b   :  { %v5243_v61 = vpop.f32.mrf.mxu0  ;;  %v5245_v0 = vpop.f32.mrf.mxu1  ;;  %7778 = vst [vmem:[#allocation53_spill] sm:$0xff] %v5255_v53 }
 0x10d   :  { %v365_v38 = vpop.f32.mrf.mxu0  ;;  %v588_v37 = vpop.f32.mrf.mxu1 }
 0x10e   :  { %v5263_v16 = vpop.permute.xlu0 %178 }
 0x10f   :  { %v368_v10 = vpop.f32.mrf.mxu0  ;;  %v591_v33 = vpop.f32.mrf.mxu1  ;;  %7779 = vst [vmem:[#allocation54_spill] sm:$0xff] %v5263_v16 }
 0x111   :  { %v370_v24 = vpop.f32.mrf.mxu0  ;;  %v593_v23 = vpop.f32.mrf.mxu1 }
 0x112   :  { %v5265_v24 = vpop.permute.xlu1 %153 }
 0x113   :  { %v5251_v22 = vpop.f32.mrf.mxu0  ;;  %v5253_v21 = vpop.f32.mrf.mxu1  ;;  %7780 = vst [vmem:[#allocation55_spill] sm:$0xff] %v5265_v24 }
 0x115   :  { %v375_v20 = vpop.f32.mrf.mxu0  ;;  %v598_v19 = vpop.f32.mrf.mxu1 }
 0x116   :  { %v5275_v19 = vpop.permute.xlu0 %123  ;;  %v5277_v9 = vpop.permute.xlu1 %203 }
 0x117   :  { %v5259_v38 = vpop.f32.mrf.mxu0  ;;  %v5261_v37 = vpop.f32.mrf.mxu1  ;;  %7781 = vst [vmem:[#allocation56_spill] sm:$0xff] %v5275_v19  ;;  %7782 = vst [vmem:[#allocation57_spill] sm:$0xff] %v5277_v9 }
 0x119   :  { %v380_v18 = vpop.f32.mrf.mxu0  ;;  %v603_v17 = vpop.f32.mrf.mxu1 }
 0x11a   :  { %v5279_v63 = vpop.permute.xlu0 %173  ;;  %v5281_v60 = vpop.permute.xlu1 %148 }
 0x11b   :  { %v5267_v23 = vpop.f32.mrf.mxu0  ;;  %v5269_v15 = vpop.f32.mrf.mxu1  ;;  %7783 = vst [vmem:[#allocation58_spill] sm:$0xff] %v5279_v63  ;;  %7784 = vst [vmem:[#allocation59_spill] sm:$0xff] %v5281_v60 }
 0x11d   :  { %v385_v14 = vpop.f32.mrf.mxu0  ;;  %v608_v13 = vpop.f32.mrf.mxu1 }
 0x11f   :  { %v5271_v12 = vpop.f32.mrf.mxu0  ;;  %v5273_v20 = vpop.f32.mrf.mxu1 }
 0x121   :  { %v390_v18 = vpop.f32.mrf.mxu0  ;;  %v613_v17 = vpop.f32.mrf.mxu1 }
 0x122   :  { %v5291_v18 = vpop.permute.xlu0 %118  ;;  %v5293_v17 = vpop.permute.xlu1 %198 }
 0x123   :  { %v393_v8 = vpop.f32.mrf.mxu0  ;;  %v616_v5 = vpop.f32.mrf.mxu1  ;;  %7785 = vst [vmem:[#allocation60_spill] sm:$0xff] %v5291_v18  ;;  %7786 = vst [vmem:[#allocation61_spill] sm:$0xff] %v5293_v17  ;;  %v567_v36 = vadd.f32 %v5219_v46, %v5291_v18 }
 0x125   :  { %v395_v4 = vpop.f32.mrf.mxu0  ;;  %v618_v1 = vpop.f32.mrf.mxu1 }
 0x126   :  { %v5299_v47 = vpop.permute.xlu0 %168 }
 0x127   :  { %v5283_v14 = vpop.f32.mrf.mxu0  ;;  %v5285_v13 = vpop.f32.mrf.mxu1  ;;  %7787 = vst [vmem:[#allocation62_spill] sm:$0xff] %v5299_v47 }
 0x129   :  { %v400_v59 = vpop.f32.mrf.mxu0  ;;  %v623_v56 = vpop.f32.mrf.mxu1 }
 0x12a   :  { %v5301_v59 = vpop.permute.xlu1 %143  ;;  %v344_v56 = vadd.f32 %v5217_v45, %v5291_v18 }
 0x12b   :  { %v5287_v55 = vpop.f32.mrf.mxu0  ;;  %v5289_v52 = vpop.f32.mrf.mxu1  ;;  %7788 = vst [vmem:[#allocation63_spill] sm:$0xff] %v5301_v59 }
 0x12c   :  { %v442_v45 = vmax.f32 %v344_v56, 0.0  ;;  %v5325_v56 = vadd.f32 %v5231_v3, %v5255_v53  ;;  %v5341_v3 = vadd.f32 %v5243_v61, %v5221_v49  ;;  %v5361_v61 = vadd.f32 %v5261_v37, %v5265_v24 }
 0x12d   :  { %v405_v4 = vpop.f32.mrf.mxu0  ;;  %v628_v1 = vpop.f32.mrf.mxu1 }
 0x12e   :  { %v394_v4 = vadd.f32 %v393_v8, %v5299_v47  ;;  %v617_v1 = vadd.f32 %v616_v5, %v5299_v47  ;;  %v5315_v31 = vpop.permute.xlu1 %193  ;;  %v665_v47 = vmax.f32 %v567_v36, 0.0  ;;  %v5337_v36 = vadd.f32 %v5237_v41, %v5239_v42 }
 0x12f   :  { %v5295_v51 = vpop.f32.mrf.mxu0  ;;  %v5297_v48 = vpop.f32.mrf.mxu1  ;;  %v5353_v41 = vadd.f32 %v5253_v21, %v5281_v60  ;;  %v5370_v21 = vadd.f32 %v5225_v57, %v5275_v19  ;;  %v612_v57 = vadd.f32 %v5273_v20, %v5227_v62 }
 0x130   :  { %v452_v27 = vmax.f32 %v394_v4, 0.0  ;;  %v675_v26 = vmax.f32 %v617_v1, 0.0 }
 0x131   :  { %v410_v44 = vpop.f32.mrf.mxu0  ;;  %v633_v43 = vpop.f32.mrf.mxu1 }
 0x132   :  { %v369_v43 = vadd.f32 %v368_v10, %v5301_v59  ;;  %v592_v44 = vadd.f32 %v591_v33, %v5301_v59  ;;  %v462_v1 = vmax.f32 %v442_v45, %v452_v27 }
 0x133   :  { %v5305_v40 = vpop.f32.mrf.mxu0  ;;  %v5307_v39 = vpop.f32.mrf.mxu1 }
 0x134   :  { %v447_v10 = vmax.f32 %v369_v43, 0.0  ;;  %v670_v33 = vmax.f32 %v592_v44, 0.0  ;;  %v685_v43 = vmax.f32 %v665_v47, %v675_v26  ;;  %v5357_v47 = vadd.f32 %v5259_v38, %v5265_v24 }
 0x135   :  { %v415_v35 = vpop.f32.mrf.mxu0  ;;  %v638_v32 = vpop.f32.mrf.mxu1  ;;  %v5378_v38 = vadd.f32 %v5269_v15, %v5249_v7 }
 0x136   :  { %v5321_v35 = vadd.f32 %v5223_v54, %v5275_v19 }
 0x137   :  { %v418_v30 = vpop.f32.mrf.mxu0  ;;  %v641_v28 = vpop.f32.mrf.mxu1 }
 0x138   :  { %v419_v8 = vadd.f32 %v418_v30, %v5315_v31  ;;  %v642_v5 = vadd.f32 %v641_v28, %v5315_v31  ;;  %v5329_v30 = vadd.f32 %v5233_v6, %v5255_v53  ;;  %v5333_v28 = vadd.f32 %v5235_v11, %v5239_v42 }
 0x139   :  { %v420_v32 = vpop.f32.mrf.mxu0  ;;  %v643_v46 = vpop.f32.mrf.mxu1  ;;  %v5345_v6 = vadd.f32 %v5245_v0, %v5221_v49  ;;  %v5349_v11 = vadd.f32 %v5251_v22, %v5281_v60 }
 0x13a   :  { %v457_v59 = vmax.f32 %v419_v8, 0.0  ;;  %v680_v18 = vmax.f32 %v642_v5, 0.0  ;;  %v389_v46 = vadd.f32 %v5271_v12, %v5227_v62  ;;  %v672_v12 = vmax.f32 %v5361_v61, 0.0 }
 0x13b   :  { %v423_v54 = vpop.f32.mrf.mxu0  ;;  %v646_v4 = vpop.f32.mrf.mxu1  ;;  %v669_v15 = vmax.f32 %v5345_v6, 0.0  ;;  %v404_v61 = vadd.f32 %v5287_v55, %v5263_v16 }
 0x13c   :  { %v467_v44 = vmax.f32 %v447_v10, %v457_v59  ;;  %v690_v8 = vmax.f32 %v670_v33, %v680_v18  ;;  %v5374_v59 = vadd.f32 %v5267_v23, %v5249_v7  ;;  %v445_v10 = vmax.f32 %v5333_v28, 0.0 }
 0x13d   :  { %v425_v27 = vpop.f32.mrf.mxu0  ;;  %v648_v26 = vpop.f32.mrf.mxu1  ;;  %v668_v23 = vmax.f32 %v5337_v36, 0.0  ;;  %v446_v33 = vmax.f32 %v5341_v3, 0.0  ;;  %v673_v28 = vmax.f32 %v5378_v38, 0.0  ;;  %v414_v36 = vadd.f32 %v5305_v40, %v5229_v2 }
 0x13e   :  { %v5363_v0 = vmax.f32 %v685_v43, %v690_v8  ;;  %v5365_v18 = vmax.f32 %v462_v1, %v467_v44  ;;  %v448_v44 = vmax.f32 %v5349_v11, 0.0  ;;  %v449_v27 = vmax.f32 %v5357_v47, 0.0 }
 0x13f   :  { %v428_v37 = vpop.f32.mrf.mxu0  ;;  %v651_v45 = vpop.f32.mrf.mxu1  ;;  %v450_v20 = vmax.f32 %v5374_v59, 0.0  ;;  %v637_v3 = vadd.f32 %v5307_v39, %v5229_v2  ;;  %v674_v11 = vmax.f32 %v612_v57, 0.0  ;;  %v627_v59 = vadd.f32 %v5289_v52, %v5263_v16 }
 0x140   :  { %v409_v40 = vadd.f32 %v5295_v51, %v5247_v34  ;;  %v632_v39 = vadd.f32 %v5297_v48, %v5247_v34  ;;  %v622_v57 = vadd.f32 %v5285_v13, %v5279_v63  ;;  %v652_v55 = vadd.f32 %v651_v45, %v5277_v9 }
 0x141   :  { %v430_v1 = vpop.f32.mrf.mxu0  ;;  %v653_v43 = vpop.f32.mrf.mxu1  ;;  %v679_v52 = vmax.f32 %v637_v3, 0.0  ;;  %v424_v8 = vadd.f32 %v423_v54, %v5293_v17  ;;  %v647_v51 = vadd.f32 %v646_v4, %v5293_v17  ;;  %v454_v19 = vmax.f32 %v404_v61, 0.0 }
 0x142   :  { %v451_v1 = vmax.f32 %v389_v46, 0.0  ;;  %v399_v46 = vadd.f32 %v5283_v14, %v5279_v63  ;;  %v677_v13 = vmax.f32 %v627_v59, 0.0  ;;  %v455_v63 = vmax.f32 %v409_v40, 0.0 }
 0x143   :  { %v433_v6 = vpop.f32.mrf.mxu0  ;;  %v656_v26 = vpop.f32.mrf.mxu1  ;;  %v682_v3 = vmax.f32 %v652_v55, 0.0  ;;  %v689_v4 = vmax.f32 %v669_v15, %v679_v52  ;;  %v458_v17 = vmax.f32 %v424_v8, 0.0  ;;  %v681_v42 = vmax.f32 %v647_v51, 0.0  ;;  %v866_v55 = vld [vmem:[#allocation2 + $0x78] sm:$0xff]  ;;  %v5476_v52 = vld [vmem:[#allocation2 + $0x110] sm:$0xff]  ;;  %v5479_v51 = vld [vmem:[#allocation2 + $0x108] sm:$0xff] }
 0x144   :  { %v434_v43 = vadd.f32 %v433_v6, %v5257_v58  ;;  %v657_v47 = vadd.f32 %v656_v26, %v5257_v58  ;;  %v429_v6 = vadd.f32 %v428_v37, %v5277_v9  ;;  %v456_v26 = vmax.f32 %v414_v36, 0.0 }
 0x145   :  { %v435_v38 = vpop.f32.mrf.mxu0  ;;  %v658_v22 = vpop.f32.mrf.mxu1  ;;  %v678_v37 = vmax.f32 %v632_v39, 0.0  ;;  %v453_v9 = vmax.f32 %v399_v46, 0.0  ;;  %v465_v61 = vmax.f32 %v445_v10, %v455_v63  ;;  %v692_v39 = vmax.f32 %v672_v12, %v682_v3  ;;  %v871_v12 = vld [vmem:[#allocation2 + $0xa0] sm:$0xff]  ;;  %v868_v46 = vld [vmem:[#allocation2 + $0x88] sm:$0xff]  ;;  %v7801_v3 = vld [vmem:[#allocation15_spill] sm:$0xff] }
 0x146   :  { %v460_v38 = vmax.f32 %v434_v43, 0.0  ;;  %v683_v22 = vmax.f32 %v657_v47, 0.0  ;;  %v459_v36 = vmax.f32 %v429_v6, 0.0  ;;  %v466_v24 = vmax.f32 %v446_v33, %v456_v26  ;;  %v865_v26 = vld [vmem:[#allocation2 + $0x70] sm:$0xff] }
 0x147   :  { %v438_v32 = vpop.f32.mrf.mxu0  ;;  %v661_v48 = vpop.f32.mrf.mxu1  ;;  %v688_v59 = vmax.f32 %v668_v23, %v678_v37  ;;  %v7789_v6 = vmax.f32 %v5325_v56, 0.0  ;;  %v7790_v33 = vmax.f32 %v5329_v30, 0.0  ;;  %v468_v8 = vmax.f32 %v448_v44, %v458_v17  ;;  %v5439_v56 = vld [vmem:[#allocation2 + $0xe8] sm:$0xff]  ;;  %v7797_v44 = vld [vmem:[#allocation11_spill] sm:$0xff] }
 0x148   :  { %v439_v5 = vadd.f32 %v438_v32, %v5241_v50  ;;  %v662_v14 = vadd.f32 %v661_v48, %v5241_v50  ;;  %v470_v43 = vmax.f32 %v450_v20, %v460_v38  ;;  %v693_v47 = vmax.f32 %v673_v28, %v683_v22  ;;  %v5483_v38 = vld [vmem:[#allocation2 + $0x100] sm:$0xff]  ;;  %v5487_v22 = vld [vmem:[#allocation2 + $0xf8] sm:$0xff]  ;;  %v7799_v37 = vld [vmem:[#allocation13_spill] sm:$0xff] }
 0x149   :  { %v663_v60 = vpop.f32.mrf.mxu1  ;;  %v440_v45 = vpop.f32.mrf.mxu0  ;;  %v676_v48 = vmax.f32 %v622_v57, 0.0  ;;  %v469_v40 = vmax.f32 %v449_v27, %v459_v36  ;;  %v687_v15 = vmax.f32 %v7790_v33, %v677_v13  ;;  %v666_v20 = vmax.f32 %v5370_v21, 0.0  ;;  %v5460_v21 = vld [vmem:[#allocation2 + $0xb0] sm:$0xff]  ;;  %v867_v57 = vld [vmem:[#allocation2 + $0x80] sm:$0xff] }
 0x14a   :  { %v461_v16 = vmax.f32 %v439_v5, 0.0  ;;  %v684_v54 = vmax.f32 %v662_v14, 0.0  ;;  %v464_v5 = vmax.f32 %v7789_v6, %v454_v19  ;;  %v698_v63 = vmax.f32 %v688_v59, %v693_v47  ;;  %v5491_v14 = vld [vmem:[#allocation2 + $0xf0] sm:$0xff]  ;;  %v7798_v13 = vld [vmem:[#allocation12_spill] sm:$0xff]  ;;  %v7805_v47 = vld [vmem:[#allocation19_spill] sm:$0xff] }
 0x14b   :  { %v475_v10 = vmax.f32 %v465_v61, %v470_v43  ;;  %v7792_v23 = vmax.f32 %v5321_v35, 0.0  ;;  %v478_v35 = vld [vmem:[%s7452_s3 + $0x8] sm:$0x3]  ;;  %v7793_v30 = vmov 0.0   ;;  %v7800_v36 = vld [vmem:[#allocation14_spill] sm:$0xff]  ;;  %v7809_v59 = vld [vmem:[#allocation23_spill] sm:$0xff] }
 0x14c   :  { %v471_v53 = vmax.f32 %v451_v1, %v461_v16  ;;  %v694_v32 = vmax.f32 %v674_v11, %v684_v54  ;;  %v7791_v16 = vmax.f32 %v5353_v41, 0.0  ;;  %v474_v19 = vmax.f32 %v464_v5, %v469_v40  ;;  %v5444_v41 = vld [vmem:[#allocation2 + $0xe0] sm:$0xff]  ;;  %v870_v1 = vld [vmem:[#allocation2 + $0x98] sm:$0xff]  ;;  %v869_v11 = vld [vmem:[#allocation2 + $0x90] sm:$0xff] }
 0x14d   :  { %v463_v27 = vmax.f32 %v7792_v23, %v453_v9  ;;  %v4041_v9 = vld [vmem:[%s7452_s3 + $0x18] sm:$0x3]  ;;  %v7802_v54 = vld [vmem:[#allocation16_spill] sm:$0xff]  ;;  %v7804_v43 = vld [vmem:[#allocation18_spill] sm:$0xff] }
 0x14e   :  { %v699_v60 = vmax.f32 %v689_v4, %v694_v32  ;;  %v476_v45 = vmax.f32 %v466_v24, %v471_v53  ;;  %v691_v28 = vmax.f32 %v7791_v16, %v681_v42  ;;  %v686_v53 = vmax.f32 %v666_v20, %v676_v48  ;;  %v7803_v4 = vld [vmem:[#allocation17_spill] sm:$0xff]  ;;  %v7806_v32 = vld [vmem:[#allocation20_spill] sm:$0xff]  ;;  %v7808_v61 = vld [vmem:[#allocation22_spill] sm:$0xff] }
 0x14f   :  { %v697_v24 = vmax.f32 %v687_v15, %v692_v39  ;;  %v473_v42 = vmax.f32 %v463_v27, %v468_v8  ;;  %v7807_v48 = vld [vmem:[#allocation21_spill] sm:$0xff]  ;;  %v7810_v40 = vld [vmem:[#allocation24_spill] sm:$0xff]  ;;  %v7816_v33 = vld [vmem:[#allocation30_spill] sm:$0xff] }
 0x150   :  { %4370 = vmatprep.subr.mxu0 %v699_v60  ;;  %4383 = vmatprep.subr.mxu1 %v476_v45  ;;  %v696_v17 = vmax.f32 %v686_v53, %v691_v28  ;;  %v7811_v39 = vld [vmem:[#allocation25_spill] sm:$0xff]  ;;  %v7814_v6 = vld [vmem:[#allocation28_spill] sm:$0xff]  ;;  %v7817_v15 = vld [vmem:[#allocation31_spill] sm:$0xff] }
 0x151   :  { %4371 = vmatpush3.msra.mxu0 %v699_v60  ;;  %4384 = vmatpush3.msra.mxu1 %v476_v45  ;;  %v7812_v60 = vld [vmem:[#allocation26_spill] sm:$0xff]  ;;  %v7813_v45 = vld [vmem:[#allocation27_spill] sm:$0xff]  ;;  %v7815_v5 = vld [vmem:[#allocation29_spill] sm:$0xff] }
 0x152   :  { %4372 = vmatprep.subr.mxu0 %v698_v63  ;;  %4385 = vmatprep.subr.mxu1 %v475_v10  ;;  %v7818_v8 = vld [vmem:[#allocation32_spill] sm:$0xff]  ;;  %v7819_v20 = vld [vmem:[#allocation33_spill] sm:$0xff]  ;;  %v7820_v16 = vld [vmem:[#allocation34_spill] sm:$0xff] }
 0x153   :  { %4373 = vmatpush3.msra.mxu0 %v698_v63  ;;  %4386 = vmatpush3.msra.mxu1 %v475_v10  ;;  %v7821_v28 = vld [vmem:[#allocation35_spill] sm:$0xff]  ;;  %v7822_v63 = vld [vmem:[#allocation36_spill] sm:$0xff]  ;;  %v7823_v10 = vld [vmem:[#allocation37_spill] sm:$0xff] }
 0x154   :  { %4374 = vmatprep.subr.mxu0 %v697_v24  ;;  %4387 = vmatprep.subr.mxu1 %v474_v19  ;;  %v7824_v23 = vld [vmem:[#allocation38_spill] sm:$0xff]  ;;  %v7825_v27 = vld [vmem:[#allocation39_spill] sm:$0xff]  ;;  %v7826_v53 = vld [vmem:[#allocation40_spill] sm:$0xff] }
 0x155   :  { %4375 = vmatpush3.msra.mxu0 %v697_v24  ;;  %4388 = vmatpush3.msra.mxu1 %v474_v19  ;;  %v7827_v24 = vld [vmem:[#allocation41_spill] sm:$0xff]  ;;  %v7828_v19 = vld [vmem:[#allocation42_spill] sm:$0xff] }
 0x156   :  { %4376 = vmatprep.subr.mxu0 %v696_v17  ;;  %4389 = vmatprep.subr.mxu1 %v473_v42 }
 0x157   :  { %4377 = vmatpush3.msra.mxu0 %v696_v17  ;;  %4390 = vmatpush3.msra.mxu1 %v473_v42  ;;  %v7829_v17 = vld [vmem:[#allocation43_spill] sm:$0xff]  ;;  %v7830_v42 = vld [vmem:[#allocation44_spill] sm:$0xff] }
 0x158   :  { %4378 = vmatprep.subr.mxu0 %v5363_v0  ;;  %4391 = vmatprep.subr.mxu1 %v5365_v18 }
 0x159   :  { %4379 = vmatpush3.msra.mxu0 %v5363_v0  ;;  %4392 = vmatpush3.msra.mxu1 %v5365_v18  ;;  %v7794_v0 = vld [vmem:[#allocation8_spill] sm:$0xff]  ;;  %v7795_v18 = vld [vmem:[#allocation9_spill] sm:$0xff] }
 0x15a   :  { %4381 = vmatmul.mubr.msk.f32.vlgmr.msra.gmra.mxu0 %vm216_vm0, %v4041_v9  ;;  %4394 = vmatmul.mubr.msk.f32.vlgmr.msra.gmra.mxu1 %vm216_vm0, %v478_v35  ;;  %v7831_v9 = vld [vmem:[#allocation45_spill] sm:$0xff]  ;;  %v7832_v35 = vld [vmem:[#allocation46_spill] sm:$0xff] }
 0x15b   :  { %886 = vmatprep.subr.mxu0 %v7793_v30  ;;  %4046 = vmatprep.mubr.msk.f32.mxu0 %vm216_vm0, %v4818_v29  ;;  %v7796_v29 = vld [vmem:[#allocation10_spill] sm:$0xff] }
 0x15c   :  { %887 = vmatpush1.msra.mxu0 %v5439_v56 }
 0x15d   :  { %888 = vmatprep.subr.mxu0 %v7793_v30 }
 0x15e   :  { %889 = vmatpush1.msra.mxu0 %v5444_v41 }
 0x15f   :  { %890 = vmatprep.subr.mxu0 %v7793_v30 }
 0x160   :  { %891 = vmatpush1.msra.mxu0 %v4793_v25  ;;  %v5464_v25 = vld [vmem:[#allocation2 + $0xa8] sm:$0xff] }
 0x161   :  { %892 = vmatprep.subr.mxu0 %v7793_v30 }
 0x162   :  { %893 = vmatpush1.msra.mxu0 %v7794_v0  ;;  %v7833_v0 = vld [vmem:[#allocation47_spill] sm:$0xff] }
 0x163   :  { %894 = vmatprep.subr.mxu0 %v7793_v30 }
 0x164   :  { %895 = vmatpush1.msra.mxu0 %v7795_v18  ;;  %v7834_v18 = vld [vmem:[#allocation48_spill] sm:$0xff] }
 0x165   :  { %896 = vmatprep.subr.mxu0 %v7793_v30 }
 0x166   :  { %897 = vmatpush1.msra.mxu0 %v7796_v29  ;;  %v7835_v29 = vld [vmem:[#allocation49_spill] sm:$0xff] }
 0x167   :  { %898 = vmatprep.subr.mxu0 %v7793_v30 }
 0x168   :  { %899 = vmatpush1.msra.mxu0 %v7797_v44  ;;  %v7836_v44 = vld [vmem:[#allocation50_spill] sm:$0xff] }
 0x169   :  { %900 = vmatprep.subr.mxu0 %v7793_v30 }
 0x16a   :  { %901 = vmatpush1.msra.mxu0 %v5460_v21 }
 0x16b   :  { %902 = vmatprep.subr.mxu0 %v7793_v30 }
 0x16c   :  { %903 = vmatpush1.msra.mxu0 %v5464_v25 }
 0x16d   :  { %904 = vmatprep.subr.mxu0 %v7793_v30 }
 0x16e   :  { %905 = vmatpush1.msra.mxu0 %v871_v12 }
 0x16f   :  { %906 = vmatprep.subr.mxu0 %v7793_v30 }
 0x170   :  { %907 = vmatpush1.msra.mxu0 %v870_v1 }
 0x171   :  { %908 = vmatprep.subr.mxu0 %v7793_v30 }
 0x172   :  { %909 = vmatpush1.msra.mxu0 %v869_v11 }
 0x173   :  { %910 = vmatprep.subr.mxu0 %v7793_v30 }
 0x174   :  { %911 = vmatpush1.msra.mxu0 %v868_v46  ;;  %v4066_v46 = vld [vmem:[%s7452_s3 + $0x20] sm:$0xff] }
 0x175   :  { %912 = vmatprep.subr.mxu0 %v7793_v30  ;;  %4406 = vmatprep.mubr.msk.f32.mxu1 %vm216_vm0, %v4066_v46 }
 0x176   :  { %913 = vmatpush1.msra.mxu0 %v867_v57 }
 0x177   :  { %914 = vmatprep.subr.mxu0 %v7793_v30 }
 0x178   :  { %915 = vmatpush1.msra.mxu0 %v866_v55 }
 0x179   :  { %916 = vmatprep.subr.mxu0 %v7793_v30 }
 0x17a   :  { %917 = vmatpush1.msra.mxu0 %v865_v26 }
 0x17b   :  { %940 = vmatprep.subr.mxu0 %v7793_v30 }
 0x17c   :  { %941 = vmatpush2.msra.mxu0 %v5476_v52 }
 0x17d   :  { %942 = vmatprep.subr.mxu0 %v7793_v30 }
 0x17e   :  { %943 = vmatpush2.msra.mxu0 %v5479_v51 }
 0x17f   :  { %944 = vmatprep.subr.mxu0 %v7793_v30 }
 0x180   :  { %945 = vmatpush2.msra.mxu0 %v5483_v38 }
 0x181   :  { %946 = vmatprep.subr.mxu0 %v7793_v30 }
 0x182   :  { %947 = vmatpush2.msra.mxu0 %v5487_v22 }
 0x183   :  { %948 = vmatprep.subr.mxu0 %v7793_v30 }
 0x184   :  { %949 = vmatpush2.msra.mxu0 %v5491_v14 }
 0x185   :  { %951 = vmatmul.mubr.f32.vlgmr.msra.gmra.mxu0 %v7798_v13 }
 0x186   :  { %4047 = vmatprep.mubr.msk.f32.mxu0 %vm216_vm0, %v7799_v37 }
 0x189   :  { %956 = vmatmul.mubr.f32.gmra.mxu0 %v7800_v36 }
 0x18a   :  { %4048 = vmatprep.mubr.msk.f32.mxu0 %vm216_vm0, %v7801_v3 }
 0x18d   :  { %961 = vmatmul.mubr.f32.gmra.mxu0 %v7802_v54 }
 0x18e   :  { %4049 = vmatprep.mubr.msk.f32.mxu0 %vm216_vm0, %v7803_v4 }
 0x191   :  { %966 = vmatmul.mubr.f32.gmra.mxu0 %v7804_v43 }
 0x192   :  { %4050 = vmatprep.mubr.msk.f32.mxu0 %vm216_vm0, %v7805_v47 }
 0x195   :  { %971 = vmatmul.mubr.f32.gmra.mxu0 %v7806_v32 }
 0x196   :  { %4051 = vmatprep.mubr.msk.f32.mxu0 %vm216_vm0, %v7807_v48 }
 0x199   :  { %976 = vmatmul.mubr.f32.gmra.mxu0 %v7808_v61 }
 0x19a   :  { %4052 = vmatprep.mubr.msk.f32.mxu0 %vm216_vm0, %v7809_v59 }
 0x19d   :  { %981 = vmatmul.mubr.f32.gmra.mxu0 %v7810_v40 }
 0x19e   :  { %4053 = vmatprep.mubr.msk.f32.mxu0 %vm216_vm0, %v7811_v39 }
 0x1a1   :  { %986 = vmatmul.mubr.f32.gmra.mxu0 %v7812_v60 }
 0x1a2   :  { %4054 = vmatprep.mubr.msk.f32.mxu0 %vm216_vm0, %v7813_v45 }
 0x1a5   :  { %991 = vmatmul.mubr.f32.gmra.mxu0 %v7814_v6 }
 0x1a6   :  { %4055 = vmatprep.mubr.msk.f32.mxu0 %vm216_vm0, %v7815_v5 }
 0x1a9   :  { %996 = vmatmul.mubr.f32.gmra.mxu0 %v7816_v33 }
 0x1aa   :  { %4056 = vmatprep.mubr.msk.f32.mxu0 %vm216_vm0, %v7817_v15 }
 0x1ad   :  { %1001 = vmatmul.mubr.f32.gmra.mxu0 %v7818_v8 }
 0x1ae   :  { %4057 = vmatprep.mubr.msk.f32.mxu0 %vm216_vm0, %v7819_v20 }
 0x1b1   :  { %1006 = vmatmul.mubr.f32.gmra.mxu0 %v7820_v16 }
 0x1b2   :  { %4058 = vmatprep.mubr.msk.f32.mxu0 %vm216_vm0, %v7821_v28 }
 0x1b5   :  { %1011 = vmatmul.mubr.f32.gmra.mxu0 %v7822_v63 }
 0x1b6   :  { %4059 = vmatprep.mubr.msk.f32.mxu0 %vm216_vm0, %v7823_v10 }
 0x1b9   :  { %1016 = vmatmul.mubr.f32.gmra.mxu0 %v7824_v23 }
 0x1ba   :  { %4060 = vmatprep.mubr.msk.f32.mxu0 %vm216_vm0, %v7825_v27  ;;  %v7838_v27 = vld [vmem:[#allocation62_spill] sm:$0xff] }
 0x1bd   :  { %1021 = vmatmul.mubr.f32.gmra.mxu0 %v7826_v53 }
 0x1be   :  { %4061 = vmatprep.mubr.msk.f32.mxu0 %vm216_vm0, %v7827_v24 }
 0x1c1   :  { %1026 = vmatmul.mubr.f32.gmra.mxu0 %v7828_v19  ;;  %v7839_v19 = vld [vmem:[#allocation60_spill] sm:$0xff] }
 0x1c2   :  { %4062 = vmatprep.mubr.msk.f32.mxu0 %vm216_vm0, %v7829_v17 }
 0x1c5   :  { %1031 = vmatmul.mubr.f32.gmra.mxu0 %v7830_v42  ;;  %v7840_v42 = vld [vmem:[#allocation63_spill] sm:$0xff] }
 0x1c6   :  { %4063 = vmatprep.mubr.msk.f32.mxu0 %vm216_vm0, %v7831_v9 }
 0x1c9   :  { %1036 = vmatmul.mubr.f32.gmra.mxu0 %v7832_v35 }
 0x1ca   :  { %4064 = vmatprep.mubr.msk.f32.mxu0 %vm216_vm0, %v7833_v0 }
 0x1cd   :  { %1041 = vmatmul.mubr.f32.gmra.mxu0 %v7834_v18 }
 0x1ce   :  { %4065 = vmatprep.mubr.msk.f32.mxu0 %vm216_vm0, %v7835_v29 }
 0x1d1   :  { %1046 = vmatmul.mubr.f32.gmra.mxu0 %v7836_v44 }
 0x21a   :  { %v4382_v12 = vpop.f32.mrf.mxu0  ;;  %v4395_v1 = vpop.f32.mrf.mxu1 }
 0x21b   :  { %v5554_v11 = vadd.f32 %v4395_v1, %v4382_v12 }
 0x21c   :  { %v5560_v57 = vpop.f32.mrf.mxu0 }
 0x21d   :  { %7837 = vst [vmem:[#allocation8_spill] sm:$0xff] %v5560_v57 }
 0x245   :  { %v952_v55 = vpop.f32.mrf.mxu0 }
 0x246   :  { %v953_v17 = vadd.f32 %v952_v55, %v7839_v19 }
 0x247   :  { %v954_v26 = vpop.f32.mrf.mxu0 }
 0x248   :  { %v1051_v44 = vmax.f32 %v953_v17, 0.0 }
 0x249   :  { %v5562_v13 = vpop.f32.mrf.mxu0 }
 0x24b   :  { %v959_v37 = vpop.f32.mrf.mxu0 }
 0x24d   :  { %v962_v36 = vpop.f32.mrf.mxu0 }
 0x24f   :  { %v964_v3 = vpop.f32.mrf.mxu0 }
 0x251   :  { %v967_v54 = vpop.f32.mrf.mxu0 }
 0x253   :  { %v969_v4 = vpop.f32.mrf.mxu0 }
 0x255   :  { %v972_v43 = vpop.f32.mrf.mxu0 }
 0x257   :  { %v974_v47 = vpop.f32.mrf.mxu0 }
 0x259   :  { %v977_v32 = vpop.f32.mrf.mxu0 }
 0x25a   :  { %v978_v9 = vadd.f32 %v977_v32, %v7840_v42 }
 0x25b   :  { %v979_v48 = vpop.f32.mrf.mxu0 }
 0x25c   :  { %v1056_v12 = vmax.f32 %v978_v9, 0.0  ;;  %v7844_v9 = vld [vmem:[#allocation55_spill] sm:$0xff] }
 0x25d   :  { %v982_v61 = vpop.f32.mrf.mxu0 }
 0x25f   :  { %v984_v59 = vpop.f32.mrf.mxu0 }
 0x261   :  { %v987_v40 = vpop.f32.mrf.mxu0 }
 0x263   :  { %v989_v39 = vpop.f32.mrf.mxu0 }
 0x264   :  { %v973_v39 = vadd.f32 %v972_v43, %v5221_v49  ;;  %v7846_v43 = vld [vmem:[#allocation61_spill] sm:$0xff] }
 0x265   :  { %v992_v60 = vpop.f32.mrf.mxu0 }
 0x267   :  { %v994_v45 = vpop.f32.mrf.mxu0 }
 0x268   :  { %v993_v45 = vadd.f32 %v992_v60, %v5249_v7 }
 0x269   :  { %v997_v6 = vpop.f32.mrf.mxu0 }
 0x26b   :  { %v999_v5 = vpop.f32.mrf.mxu0 }
 0x26c   :  { %v998_v5 = vadd.f32 %v997_v6, %v5227_v62 }
 0x26d   :  { %v1002_v33 = vpop.f32.mrf.mxu0 }
 0x26e   :  { %v1003_v53 = vadd.f32 %v1002_v33, %v7838_v27 }
 0x26f   :  { %v1004_v15 = vpop.f32.mrf.mxu0 }
 0x270   :  { %v1061_v0 = vmax.f32 %v1003_v53, 0.0 }
 0x271   :  { %v1007_v8 = vpop.f32.mrf.mxu0 }
 0x272   :  { %v1071_v26 = vmax.f32 %v1051_v44, %v1061_v0 }
 0x273   :  { %v1009_v20 = vpop.f32.mrf.mxu0 }
 0x274   :  { %v7841_v20 = vld [vmem:[#allocation57_spill] sm:$0xff] }
 0x275   :  { %v1012_v16 = vpop.f32.mrf.mxu0 }
 0x277   :  { %v1014_v28 = vpop.f32.mrf.mxu0 }
 0x279   :  { %v1017_v63 = vpop.f32.mrf.mxu0 }
 0x27a   :  { %v1018_v15 = vadd.f32 %v1017_v63, %v5247_v34 }
 0x27b   :  { %v1019_v10 = vpop.f32.mrf.mxu0 }
 0x27c   :  { %v7842_v10 = vld [vmem:[#allocation53_spill] sm:$0xff] }
 0x27d   :  { %v1022_v23 = vpop.f32.mrf.mxu0  ;;  %v963_v53 = vadd.f32 %v962_v36, %v7842_v10  ;;  %v7848_v36 = vld [vmem:[#allocation58_spill] sm:$0xff] }
 0x27e   :  { %v1023_v55 = vadd.f32 %v1022_v23, %v5229_v2  ;;  %v7845_v23 = vld [vmem:[#allocation54_spill] sm:$0xff] }
 0x27f   :  { %v1024_v24 = vpop.f32.mrf.mxu0  ;;  %v1013_v0 = vadd.f32 %v1012_v16, %v7845_v23 }
 0x280   :  { %v7843_v24 = vld [vmem:[#allocation51_spill] sm:$0xff] }
 0x281   :  { %v1027_v35 = vpop.f32.mrf.mxu0  ;;  %v968_v17 = vadd.f32 %v967_v54, %v7843_v24  ;;  %v1064_v54 = vmax.f32 %v1018_v15, 0.0 }
 0x282   :  { %v1028_v18 = vadd.f32 %v1027_v35, %v5315_v31  ;;  %v988_v35 = vadd.f32 %v987_v40, %v7844_v9 }
 0x283   :  { %v1029_v29 = vpop.f32.mrf.mxu0 }
 0x284   :  { %v1066_v1 = vmax.f32 %v1028_v18, 0.0  ;;  %v1065_v29 = vmax.f32 %v1023_v55, 0.0  ;;  %v1054_v55 = vmax.f32 %v968_v17, 0.0 }
 0x285   :  { %v1032_v46 = vpop.f32.mrf.mxu0 }
 0x286   :  { %v1076_v37 = vmax.f32 %v1056_v12, %v1066_v1  ;;  %v1033_v44 = vadd.f32 %v1032_v46, %v7846_v43  ;;  %v1055_v12 = vmax.f32 %v973_v39, 0.0  ;;  %v7847_v1 = vld [vmem:[#allocation59_spill] sm:$0xff]  ;;  %v1063_v46 = vmax.f32 %v1013_v0, 0.0  ;;  %v5588_v0 = vld [vmem:[#allocation2 + $0x120] sm:$0xff] }
 0x287   :  { %v1034_v3 = vpop.f32.mrf.mxu0  ;;  %v983_v63 = vadd.f32 %v982_v61, %v7847_v1  ;;  %7850 = vst [vmem:[#allocation9_spill] sm:$0xff] %v5588_v0 }
 0x288   :  { %v1081_v4 = vmax.f32 %v1071_v26, %v1076_v37  ;;  %v1059_v26 = vmax.f32 %v993_v45, 0.0  ;;  %v1060_v37 = vmax.f32 %v998_v5, 0.0  ;;  %v1067_v57 = vmax.f32 %v1033_v44, 0.0  ;;  %v1176_v44 = vld [vmem:[#allocation2 + $0xc8] sm:$0xff] }
 0x289   :  { %v1037_v47 = vpop.f32.mrf.mxu0  ;;  %v1057_v61 = vmax.f32 %v983_v63, 0.0  ;;  %v1074_v5 = vmax.f32 %v1054_v55, %v1064_v54  ;;  %v5630_v63 = vld [vmem:[#allocation2 + $0x140] sm:$0xff]  ;;  %v5656_v54 = vld [vmem:[#allocation2 + $0x150] sm:$0xff] }
 0x28a   :  { %v1038_v28 = vadd.f32 %v1037_v47, %v7841_v20  ;;  %v1008_v47 = vadd.f32 %v1007_v8, %v7848_v36  ;;  %7853 = vst [vmem:[#allocation12_spill] sm:$0xff] %v5630_v63  ;;  %7858 = vst [vmem:[#allocation17_spill] sm:$0xff] %v5656_v54  ;;  %v5688_v55 = vld [vmem:[%s7450_s1 + $0x20] sm:$0xff] }
 0x28b   :  { %v1039_v48 = vpop.f32.mrf.mxu0  ;;  %7861 = vst [vmem:[#allocation20_spill] sm:$0xff] %v5688_v55 }
 0x28c   :  { %v1068_v48 = vmax.f32 %v1038_v28, 0.0  ;;  %v1062_v45 = vmax.f32 %v1008_v47, 0.0  ;;  %v1077_v28 = vmax.f32 %v1057_v61, %v1067_v57  ;;  %v5598_v57 = vld [vmem:[%s7450_s1 + $0x8] sm:$0xff]  ;;  %v5652_v47 = vld [vmem:[%s7450_s1] sm:$0xff]  ;;  %v5739_v61 = vld [vmem:[%s7450_s1 + $0x50] sm:$0xff] }
 0x28d   :  { %v1042_v59 = vpop.f32.mrf.mxu0  ;;  %7867 = vst [vmem:[#allocation26_spill] sm:$0xff] %v5739_v61 }
 0x28e   :  { %v1043_v32 = vadd.f32 %v1042_v59, %v5257_v58  ;;  %v7849_v59 = vld [vmem:[#allocation56_spill] sm:$0xff] }
 0x28f   :  { %v1044_v33 = vpop.f32.mrf.mxu0  ;;  %v958_v16 = vadd.f32 %v5562_v13, %v7849_v59 }
 0x290   :  { %v1069_v60 = vmax.f32 %v1043_v32, 0.0  ;;  %v1058_v33 = vmax.f32 %v988_v35, 0.0  ;;  %v1075_v32 = vmax.f32 %v1055_v12, %v1065_v29  ;;  %v1177_v29 = vld [vmem:[#allocation2 + $0xd0] sm:$0xff]  ;;  %v1174_v12 = vld [vmem:[#allocation2 + $0xb8] sm:$0xff] }
 0x291   :  { %v1047_v18 = vpop.f32.mrf.mxu0  ;;  %v1052_v8 = vmax.f32 %v958_v16, 0.0  ;;  %v5678_v16 = vld [vmem:[%s7450_s1 + $0x28] sm:$0xff] }
 0x292   :  { %v1048_v6 = vadd.f32 %v1047_v18, %v5241_v50  ;;  %v1079_v18 = vmax.f32 %v1059_v26, %v1069_v60  ;;  %v1053_v50 = vmax.f32 %v963_v53, 0.0  ;;  %v4067_v53 = vld [vmem:[%s7452_s3 + $0x28] sm:$0x3]  ;;  %v1175_v60 = vld [vmem:[#allocation2 + $0xc0] sm:$0xff]  ;;  %v5634_v26 = vld [vmem:[#allocation2 + $0x138] sm:$0xff]  ;;  %7860 = vst [vmem:[#allocation19_spill] sm:$0xff] %v5678_v16 }
 0x293   :  { %v1049_v3 = vpop.f32.mrf.mxu0  ;;  %v1072_v13 = vmax.f32 %v1052_v8, %v1062_v45  ;;  %7854 = vst [vmem:[#allocation13_spill] sm:$0xff] %v5634_v26  ;;  %v5746_v45 = vld [vmem:[%s7450_s1 + $0x68] sm:$0xff]  ;;  %v5813_v8 = vld [vmem:[%s7450_s1 + $0x90] sm:$0xff] }
 0x294   :  { %v1070_v40 = vmax.f32 %v1048_v6, 0.0  ;;  %v1078_v3 = vmax.f32 %v1058_v33, %v1068_v48  ;;  %v1073_v15 = vmax.f32 %v1053_v50, %v1063_v46  ;;  %v1084_v6 = vmax.f32 %v1074_v5, %v1079_v18  ;;  %v5592_v50 = vld [vmem:[#allocation2 + $0x118] sm:$0xff]  ;;  %v5705_v46 = vld [vmem:[%s7450_s1 + $0x30] sm:$0xff]  ;;  %v5722_v18 = vld [vmem:[%s7450_s1 + $0x40] sm:$0xff]  ;;  %7868 = vst [vmem:[#allocation27_spill] sm:$0xff] %v5746_v45 }
 0x295   :  { %v1082_v35 = vmax.f32 %v1072_v13, %v1077_v28  ;;  %7851 = vst [vmem:[#allocation10_spill] sm:$0xff] %v5592_v50  ;;  %v5661_v48 = vld [vmem:[%s7450_s1 + $0x18] sm:$0xff]  ;;  %7863 = vst [vmem:[#allocation22_spill] sm:$0xff] %v5705_v46  ;;  %v5822_v28 = vld [vmem:[%s7450_s1 + $0xa8] sm:$0xff] }
 0x296   :  { %v1080_v39 = vmax.f32 %v1060_v37, %v1070_v40  ;;  %v1083_v17 = vmax.f32 %v1073_v15, %v1078_v3  ;;  %v5646_v37 = vld [vmem:[#allocation2 + $0x158] sm:$0xff]  ;;  %v5671_v40 = vld [vmem:[%s7450_s1 + $0x10] sm:$0xff]  ;;  %7865 = vst [vmem:[#allocation24_spill] sm:$0xff] %v5722_v18  ;;  %7875 = vst [vmem:[#allocation34_spill] sm:$0xff] %v5813_v8 }
 0x297   :  { %7857 = vst [vmem:[#allocation16_spill] sm:$0xff] %v5646_v37  ;;  %7859 = vst [vmem:[#allocation18_spill] sm:$0xff] %v5671_v40  ;;  %v5695_v33 = vld [vmem:[%s7450_s1 + $0x38] sm:$0xff]  ;;  %v5817_v15 = vld [vmem:[#allocation2 + $0x168] sm:$0xff] }
 0x298   :  { %v1085_v1 = vmax.f32 %v1075_v32, %v1080_v39  ;;  %7862 = vst [vmem:[#allocation21_spill] sm:$0xff] %v5695_v33  ;;  %v5712_v32 = vld [vmem:[%s7450_s1 + $0x48] sm:$0xff]  ;;  %v5729_v39 = vld [vmem:[%s7450_s1 + $0x58] sm:$0xff]  ;;  %7876 = vst [vmem:[#allocation35_spill] sm:$0xff] %v5822_v28 }
 0x299   :  { %7864 = vst [vmem:[#allocation23_spill] sm:$0xff] %v5712_v32  ;;  %7866 = vst [vmem:[#allocation25_spill] sm:$0xff] %v5729_v39  ;;  %v5763_v5 = vld [vmem:[%s7450_s1 + $0x78] sm:$0xff]  ;;  %v5834_v13 = vld [vmem:[%s7450_s1 + $0xa0] sm:$0xff] }
 0x29a   :  { %4396 = vmatprep.subr.mxu1 %v1085_v1  ;;  %7870 = vst [vmem:[#allocation29_spill] sm:$0xff] %v5763_v5  ;;  %v5796_v3 = vld [vmem:[#allocation2 + $0x178] sm:$0xff]  ;;  %7878 = vst [vmem:[#allocation37_spill] sm:$0xff] %v5834_v13 }
 0x29b   :  { %4397 = vmatpush3.msra.mxu1 %v1085_v1  ;;  %v5626_v1 = vld [vmem:[#allocation2 + $0x148] sm:$0xff] }
 0x29c   :  { %4398 = vmatprep.subr.mxu1 %v1084_v6  ;;  %7852 = vst [vmem:[#allocation11_spill] sm:$0xff] %v5626_v1 }
 0x29d   :  { %4399 = vmatpush3.msra.mxu1 %v1084_v6  ;;  %v5828_v6 = vld [vmem:[#allocation2 + $0x160] sm:$0xff] }
 0x29e   :  { %4400 = vmatprep.subr.mxu1 %v1083_v17  ;;  %7877 = vst [vmem:[#allocation36_spill] sm:$0xff] %v5828_v6 }
 0x29f   :  { %4401 = vmatpush3.msra.mxu1 %v1083_v17  ;;  %v5841_v17 = vld [vmem:[%s7450_s1 + $0xb8] sm:$0xff] }
 0x2a0   :  { %4402 = vmatprep.subr.mxu1 %v1082_v35  ;;  %7879 = vst [vmem:[#allocation38_spill] sm:$0xff] %v5841_v17 }
 0x2a1   :  { %4403 = vmatpush3.msra.mxu1 %v1082_v35  ;;  %v5849_v35 = vld [vmem:[%s7450_s1 + $0xb0] sm:$0xff] }
 0x2a2   :  { %4404 = vmatprep.subr.mxu1 %v1081_v4  ;;  %7880 = vst [vmem:[#allocation39_spill] sm:$0xff] %v5849_v35 }
 0x2a3   :  { %4405 = vmatpush3.msra.mxu1 %v1081_v4  ;;  %v1178_v4 = vld [vmem:[#allocation2 + $0xd8] sm:$0xff] }
 0x2a4   :  { %4407 = vmatmul.mubr.msk.f32.vlgmr.msra.gmra.mxu1 %vm216_vm0, %v4067_v53  ;;  %1193 = vmatprep.subr.mxu1 %v7793_v30  ;;  %v5855_v53 = vld [vmem:[%s7450_s1 + $0xc8] sm:$0xff] }
 0x2a5   :  { %1194 = vmatpush1.msra.mxu1 %v5588_v0  ;;  %4070 = vmatprep.mubr.msk.f32.mxu1 %vm216_vm0, %v5598_v57  ;;  %7881 = vst [vmem:[#allocation40_spill] sm:$0xff] %v5855_v53 }
 0x2a6   :  { %1195 = vmatprep.subr.mxu1 %v7793_v30 }
 0x2a7   :  { %1196 = vmatpush1.msra.mxu1 %v5592_v50 }
 0x2a8   :  { %1197 = vmatprep.subr.mxu1 %v7793_v30 }
 0x2a9   :  { %1198 = vmatpush1.msra.mxu1 %v5476_v52 }
 0x2aa   :  { %1199 = vmatprep.subr.mxu1 %v7793_v30 }
 0x2ab   :  { %1200 = vmatpush1.msra.mxu1 %v5479_v51 }
 0x2ac   :  { %1201 = vmatprep.subr.mxu1 %v7793_v30 }
 0x2ad   :  { %1202 = vmatpush1.msra.mxu1 %v5483_v38 }
 0x2ae   :  { %1203 = vmatprep.subr.mxu1 %v7793_v30 }
 0x2af   :  { %1204 = vmatpush1.msra.mxu1 %v5487_v22 }
 0x2b0   :  { %1205 = vmatprep.subr.mxu1 %v7793_v30 }
 0x2b1   :  { %1206 = vmatpush1.msra.mxu1 %v5491_v14 }
 0x2b2   :  { %1207 = vmatprep.subr.mxu1 %v7793_v30 }
 0x2b3   :  { %1208 = vmatpush1.msra.mxu1 %v5439_v56 }
 0x2b4   :  { %1209 = vmatprep.subr.mxu1 %v7793_v30 }
 0x2b5   :  { %1210 = vmatpush1.msra.mxu1 %v5444_v41 }
 0x2b6   :  { %1211 = vmatprep.subr.mxu1 %v7793_v30 }
 0x2b7   :  { %1212 = vmatpush1.msra.mxu1 %v1178_v4  ;;  %v5862_v4 = vld [vmem:[%s7450_s1 + $0xc0] sm:$0xff] }
 0x2b8   :  { %1213 = vmatprep.subr.mxu1 %v7793_v30  ;;  %7882 = vst [vmem:[#allocation41_spill] sm:$0xff] %v5862_v4 }
 0x2b9   :  { %1214 = vmatpush1.msra.mxu1 %v1177_v29  ;;  %v5868_v29 = vld [vmem:[%s7450_s1 + $0xd8] sm:$0xff] }
 0x2ba   :  { %1215 = vmatprep.subr.mxu1 %v7793_v30  ;;  %7883 = vst [vmem:[#allocation42_spill] sm:$0xff] %v5868_v29 }
 0x2bb   :  { %1216 = vmatpush1.msra.mxu1 %v1176_v44  ;;  %v5875_v44 = vld [vmem:[%s7450_s1 + $0xd0] sm:$0xff] }
 0x2bc   :  { %1217 = vmatprep.subr.mxu1 %v7793_v30  ;;  %7884 = vst [vmem:[#allocation43_spill] sm:$0xff] %v5875_v44 }
 0x2bd   :  { %1218 = vmatpush1.msra.mxu1 %v1175_v60  ;;  %v5881_v60 = vld [vmem:[%s7450_s1 + $0xe8] sm:$0xff] }
 0x2be   :  { %1219 = vmatprep.subr.mxu1 %v7793_v30  ;;  %7885 = vst [vmem:[#allocation44_spill] sm:$0xff] %v5881_v60 }
 0x2bf   :  { %1220 = vmatpush1.msra.mxu1 %v1174_v12  ;;  %v5888_v12 = vld [vmem:[%s7450_s1 + $0xe0] sm:$0xff] }
 0x2c0   :  { %1221 = vmatprep.subr.mxu1 %v7793_v30  ;;  %7886 = vst [vmem:[#allocation45_spill] sm:$0xff] %v5888_v12 }
 0x2c1   :  { %1222 = vmatpush1.msra.mxu1 %v5460_v21  ;;  %v5638_v21 = vld [vmem:[#allocation2 + $0x130] sm:$0xff] }
 0x2c2   :  { %1223 = vmatprep.subr.mxu1 %v7793_v30  ;;  %7855 = vst [vmem:[#allocation14_spill] sm:$0xff] %v5638_v21 }
 0x2c3   :  { %1224 = vmatpush1.msra.mxu1 %v5464_v25  ;;  %v5642_v25 = vld [vmem:[#allocation2 + $0x128] sm:$0xff] }
 0x2c4   :  { %1247 = vmatprep.subr.mxu1 %v7793_v30  ;;  %7856 = vst [vmem:[#allocation15_spill] sm:$0xff] %v5642_v25 }
 0x2c5   :  { %1248 = vmatpush2.msra.mxu1 %v5626_v1 }
 0x2c6   :  { %1249 = vmatprep.subr.mxu1 %v7793_v30 }
 0x2c7   :  { %1250 = vmatpush2.msra.mxu1 %v5630_v63 }
 0x2c8   :  { %1251 = vmatprep.subr.mxu1 %v7793_v30 }
 0x2c9   :  { %1252 = vmatpush2.msra.mxu1 %v5634_v26 }
 0x2ca   :  { %1253 = vmatprep.subr.mxu1 %v7793_v30 }
 0x2cb   :  { %1254 = vmatpush2.msra.mxu1 %v5638_v21 }
 0x2cc   :  { %1255 = vmatprep.subr.mxu1 %v7793_v30 }
 0x2cd   :  { %1256 = vmatpush2.msra.mxu1 %v5642_v25 }
 0x2ce   :  { %1258 = vmatmul.mubr.f32.vlgmr.msra.gmra.mxu1 %v5652_v47  ;;  %1500 = vmatprep.subr.mxu1 %v7793_v30 }
 0x2cf   :  { %4071 = vmatprep.mubr.msk.f32.mxu1 %vm216_vm0, %v5661_v48  ;;  %1501 = vmatpush1.msra.mxu1 %v5646_v37  ;;  %v5946_v37 = vld [vmem:[%s7450_s1 + $0x138] sm:$0xff] }
 0x2d0   :  { %1502 = vmatprep.subr.mxu1 %v7793_v30  ;;  %7895 = vst [vmem:[#allocation57_spill] sm:$0xff] %v5946_v37 }
 0x2d1   :  { %1503 = vmatpush1.msra.mxu1 %v5656_v54  ;;  %v5940_v54 = vld [vmem:[%s7450_s1 + $0x120] sm:$0xff] }
 0x2d2   :  { %1263 = vmatmul.mubr.f32.gmra.mxu1 %v5671_v40  ;;  %1504 = vmatprep.subr.mxu1 %v7793_v30  ;;  %7894 = vst [vmem:[#allocation63_spill] sm:$0xff] %v5940_v54 }
 0x2d3   :  { %4072 = vmatprep.mubr.msk.f32.mxu1 %vm216_vm0, %v5678_v16  ;;  %1505 = vmatpush1.msra.mxu1 %v5626_v1  ;;  %v5933_v1 = vld [vmem:[%s7450_s1 + $0x128] sm:$0xff] }
 0x2d4   :  { %1506 = vmatprep.subr.mxu1 %v7793_v30  ;;  %7893 = vst [vmem:[#allocation60_spill] sm:$0xff] %v5933_v1 }
 0x2d5   :  { %1507 = vmatpush1.msra.mxu1 %v5630_v63  ;;  %v5927_v63 = vld [vmem:[%s7450_s1 + $0x110] sm:$0xff] }
 0x2d6   :  { %1268 = vmatmul.mubr.f32.gmra.mxu1 %v5688_v55  ;;  %1508 = vmatprep.subr.mxu1 %v7793_v30  ;;  %7892 = vst [vmem:[#allocation62_spill] sm:$0xff] %v5927_v63 }
 0x2d7   :  { %4073 = vmatprep.mubr.msk.f32.mxu1 %vm216_vm0, %v5695_v33  ;;  %1509 = vmatpush1.msra.mxu1 %v5634_v26  ;;  %v5920_v26 = vld [vmem:[%s7450_s1 + $0x118] sm:$0xff] }
 0x2d8   :  { %1510 = vmatprep.subr.mxu1 %v7793_v30  ;;  %7891 = vst [vmem:[#allocation50_spill] sm:$0xff] %v5920_v26 }
 0x2d9   :  { %1511 = vmatpush1.msra.mxu1 %v5638_v21  ;;  %v5914_v21 = vld [vmem:[%s7450_s1 + $0x100] sm:$0xff] }
 0x2da   :  { %1273 = vmatmul.mubr.f32.gmra.mxu1 %v5705_v46  ;;  %1512 = vmatprep.subr.mxu1 %v7793_v30  ;;  %7890 = vst [vmem:[#allocation49_spill] sm:$0xff] %v5914_v21 }
 0x2db   :  { %4074 = vmatprep.mubr.msk.f32.mxu1 %vm216_vm0, %v5712_v32  ;;  %1513 = vmatpush1.msra.mxu1 %v5642_v25  ;;  %v5907_v25 = vld [vmem:[%s7450_s1 + $0x108] sm:$0xff] }
 0x2dc   :  { %1514 = vmatprep.subr.mxu1 %v7793_v30  ;;  %7889 = vst [vmem:[#allocation48_spill] sm:$0xff] %v5907_v25 }
 0x2dd   :  { %1515 = vmatpush1.msra.mxu1 %v5588_v0  ;;  %v5901_v0 = vld [vmem:[%s7450_s1 + $0xf0] sm:$0xff] }
 0x2de   :  { %1278 = vmatmul.mubr.f32.gmra.mxu1 %v5722_v18  ;;  %1516 = vmatprep.subr.mxu1 %v7793_v30  ;;  %7888 = vst [vmem:[#allocation47_spill] sm:$0xff] %v5901_v0 }
 0x2df   :  { %4075 = vmatprep.mubr.msk.f32.mxu1 %vm216_vm0, %v5729_v39  ;;  %1517 = vmatpush1.msra.mxu1 %v5592_v50  ;;  %v5894_v50 = vld [vmem:[%s7450_s1 + $0xf8] sm:$0xff] }
 0x2e0   :  { %1518 = vmatprep.subr.mxu1 %v7793_v30  ;;  %7887 = vst [vmem:[#allocation46_spill] sm:$0xff] %v5894_v50 }
 0x2e1   :  { %1519 = vmatpush1.msra.mxu1 %v5476_v52  ;;  %v5756_v52 = vld [vmem:[%s7450_s1 + $0x60] sm:$0xff] }
 0x2e2   :  { %1283 = vmatmul.mubr.f32.gmra.mxu1 %v5739_v61  ;;  %1520 = vmatprep.subr.mxu1 %v7793_v30  ;;  %7869 = vst [vmem:[#allocation28_spill] sm:$0xff] %v5756_v52 }
 0x2e3   :  { %4076 = vmatprep.mubr.msk.f32.mxu1 %vm216_vm0, %v5746_v45  ;;  %1521 = vmatpush1.msra.mxu1 %v5479_v51  ;;  %v5773_v51 = vld [vmem:[%s7450_s1 + $0x70] sm:$0xff] }
 0x2e4   :  { %1522 = vmatprep.subr.mxu1 %v7793_v30  ;;  %7871 = vst [vmem:[#allocation30_spill] sm:$0xff] %v5773_v51 }
 0x2e5   :  { %1523 = vmatpush1.msra.mxu1 %v5483_v38  ;;  %v5780_v38 = vld [vmem:[%s7450_s1 + $0x88] sm:$0xff] }
 0x2e6   :  { %1288 = vmatmul.mubr.f32.gmra.mxu1 %v5756_v52  ;;  %1524 = vmatprep.subr.mxu1 %v7793_v30  ;;  %7872 = vst [vmem:[#allocation31_spill] sm:$0xff] %v5780_v38 }
 0x2e7   :  { %4077 = vmatprep.mubr.msk.f32.mxu1 %vm216_vm0, %v5763_v5  ;;  %1525 = vmatpush1.msra.mxu1 %v5487_v22  ;;  %v5786_v22 = vld [vmem:[#allocation2 + $0x180] sm:$0xff] }
 0x2e8   :  { %1526 = vmatprep.subr.mxu1 %v7793_v30 }
 0x2e9   :  { %1527 = vmatpush1.msra.mxu1 %v5491_v14  ;;  %v5792_v14 = vld [vmem:[%s7450_s1 + $0x80] sm:$0xff] }
 0x2ea   :  { %1293 = vmatmul.mubr.f32.gmra.mxu1 %v5773_v51  ;;  %1528 = vmatprep.subr.mxu1 %v7793_v30  ;;  %7873 = vst [vmem:[#allocation32_spill] sm:$0xff] %v5792_v14 }
 0x2eb   :  { %4078 = vmatprep.mubr.msk.f32.mxu1 %vm216_vm0, %v5780_v38  ;;  %1529 = vmatpush1.msra.mxu1 %v5439_v56  ;;  %v5801_v56 = vld [vmem:[%s7450_s1 + $0x98] sm:$0xff] }
 0x2ec   :  { %1530 = vmatprep.subr.mxu1 %v7793_v30  ;;  %7874 = vst [vmem:[#allocation33_spill] sm:$0xff] %v5801_v56 }
 0x2ed   :  { %1531 = vmatpush1.msra.mxu1 %v5444_v41  ;;  %v5807_v41 = vld [vmem:[#allocation2 + $0x170] sm:$0xff] }
 0x2ee   :  { %1298 = vmatmul.mubr.f32.gmra.mxu1 %v5792_v14  ;;  %1554 = vmatprep.subr.mxu1 %v7793_v30 }
 0x2ef   :  { %4079 = vmatprep.mubr.msk.f32.mxu1 %vm216_vm0, %v5801_v56  ;;  %1555 = vmatpush2.msra.mxu1 %v5786_v22 }
 0x2f0   :  { %1556 = vmatprep.subr.mxu1 %v7793_v30 }
 0x2f1   :  { %1557 = vmatpush2.msra.mxu1 %v5796_v3 }
 0x2f2   :  { %1303 = vmatmul.mubr.f32.gmra.mxu1 %v5813_v8  ;;  %1558 = vmatprep.subr.mxu1 %v7793_v30 }
 0x2f3   :  { %4080 = vmatprep.mubr.msk.f32.mxu1 %vm216_vm0, %v5822_v28  ;;  %1559 = vmatpush2.msra.mxu1 %v5807_v41 }
 0x2f4   :  { %1560 = vmatprep.subr.mxu1 %v7793_v30 }
 0x2f5   :  { %1561 = vmatpush2.msra.mxu1 %v5817_v15 }
 0x2f6   :  { %1308 = vmatmul.mubr.f32.gmra.mxu1 %v5834_v13  ;;  %1562 = vmatprep.subr.mxu1 %v7793_v30 }
 0x2f7   :  { %4081 = vmatprep.mubr.msk.f32.mxu1 %vm216_vm0, %v5841_v17  ;;  %1563 = vmatpush2.msra.mxu1 %v5828_v6  ;;  %v5953_v6 = vld [vmem:[%s7450_s1 + $0x130] sm:$0xff] }
 0x2f8   :  { %7896 = vst [vmem:[#allocation53_spill] sm:$0xff] %v5953_v6 }
 0x2fa   :  { %1313 = vmatmul.mubr.f32.gmra.mxu1 %v5849_v35 }
 0x2fb   :  { %4082 = vmatprep.mubr.msk.f32.mxu1 %vm216_vm0, %v5855_v53 }
 0x2fe   :  { %1318 = vmatmul.mubr.f32.gmra.mxu1 %v5862_v4 }
 0x2ff   :  { %4083 = vmatprep.mubr.msk.f32.mxu1 %vm216_vm0, %v5868_v29 }
 0x302   :  { %1323 = vmatmul.mubr.f32.gmra.mxu1 %v5875_v44 }
 0x303   :  { %4084 = vmatprep.mubr.msk.f32.mxu1 %vm216_vm0, %v5881_v60 }
 0x306   :  { %1328 = vmatmul.mubr.f32.gmra.mxu1 %v5888_v12 }
 0x307   :  { %4085 = vmatprep.mubr.msk.f32.mxu1 %vm216_vm0, %v5894_v50 }
 0x30a   :  { %1333 = vmatmul.mubr.f32.gmra.mxu1 %v5901_v0 }
 0x30b   :  { %4086 = vmatprep.mubr.msk.f32.mxu1 %vm216_vm0, %v5907_v25 }
 0x30e   :  { %1338 = vmatmul.mubr.f32.gmra.mxu1 %v5914_v21 }
 0x30f   :  { %4087 = vmatprep.mubr.msk.f32.mxu1 %vm216_vm0, %v5920_v26 }
 0x312   :  { %1343 = vmatmul.mubr.f32.gmra.mxu1 %v5927_v63 }
 0x313   :  { %4088 = vmatprep.mubr.msk.f32.mxu1 %vm216_vm0, %v5933_v1 }
 0x316   :  { %1348 = vmatmul.mubr.f32.gmra.mxu1 %v5940_v54 }
 0x317   :  { %4089 = vmatprep.mubr.msk.f32.mxu1 %vm216_vm0, %v5946_v37 }
 0x31a   :  { %1353 = vmatmul.mubr.f32.gmra.mxu1 %v5953_v6 }
 0x31b   :  { %4094 = vmatprep.mubr.msk.f32.mxu1 %vm216_vm0, %v5598_v57 }
 0x31e   :  { %1565 = vmatmul.mubr.f32.vlgmr.msra.gmra.mxu1 %v5652_v47 }
 0x31f   :  { %4095 = vmatprep.mubr.msk.f32.mxu1 %vm216_vm0, %v5661_v48 }
 0x322   :  { %1570 = vmatmul.mubr.f32.gmra.mxu1 %v5671_v40 }
 0x323   :  { %4096 = vmatprep.mubr.msk.f32.mxu1 %vm216_vm0, %v5678_v16 }
 0x326   :  { %1575 = vmatmul.mubr.f32.gmra.mxu1 %v5688_v55 }
 0x327   :  { %4097 = vmatprep.mubr.msk.f32.mxu1 %vm216_vm0, %v5695_v33 }
 0x32a   :  { %1580 = vmatmul.mubr.f32.gmra.mxu1 %v5705_v46 }
 0x32b   :  { %4098 = vmatprep.mubr.msk.f32.mxu1 %vm216_vm0, %v5712_v32 }
 0x32e   :  { %1585 = vmatmul.mubr.f32.gmra.mxu1 %v5722_v18 }
 0x32f   :  { %4099 = vmatprep.mubr.msk.f32.mxu1 %vm216_vm0, %v5729_v39 }
 0x332   :  { %1590 = vmatmul.mubr.f32.gmra.mxu1 %v5739_v61 }
 0x333   :  { %4100 = vmatprep.mubr.msk.f32.mxu1 %vm216_vm0, %v5746_v45 }
 0x336   :  { %1595 = vmatmul.mubr.f32.gmra.mxu1 %v5756_v52 }
 0x337   :  { %4101 = vmatprep.mubr.msk.f32.mxu1 %vm216_vm0, %v5763_v5 }
 0x33a   :  { %1600 = vmatmul.mubr.f32.gmra.mxu1 %v5773_v51 }
 0x33b   :  { %4102 = vmatprep.mubr.msk.f32.mxu1 %vm216_vm0, %v5780_v38 }
 0x33e   :  { %1605 = vmatmul.mubr.f32.gmra.mxu1 %v5792_v14 }
 0x33f   :  { %4103 = vmatprep.mubr.msk.f32.mxu1 %vm216_vm0, %v5801_v56 }
 0x342   :  { %1610 = vmatmul.mubr.f32.gmra.mxu1 %v5813_v8 }
 0x343   :  { %4104 = vmatprep.mubr.msk.f32.mxu1 %vm216_vm0, %v5822_v28 }
 0x346   :  { %1615 = vmatmul.mubr.f32.gmra.mxu1 %v5834_v13 }
 0x347   :  { %4105 = vmatprep.mubr.msk.f32.mxu1 %vm216_vm0, %v5841_v17 }
 0x34a   :  { %1620 = vmatmul.mubr.f32.gmra.mxu1 %v5849_v35 }
 0x34b   :  { %4106 = vmatprep.mubr.msk.f32.mxu1 %vm216_vm0, %v5855_v53 }
 0x34e   :  { %1625 = vmatmul.mubr.f32.gmra.mxu1 %v5862_v4 }
 0x34f   :  { %4107 = vmatprep.mubr.msk.f32.mxu1 %vm216_vm0, %v5868_v29  ;;  %v6009_v29 = vpop.f32.mrf.mxu1 }
 0x350   :  { %7897 = vst [vmem:[#allocation51_spill] sm:$0xff] %v6009_v29  ;;  %v4090_v29 = vld [vmem:[%s7452_s3 + $0x30] sm:$0xff] }
 0x351   :  { %4419 = vmatprep.mubr.msk.f32.mxu0 %vm216_vm0, %v4090_v29 }
 0x352   :  { %1630 = vmatmul.mubr.f32.gmra.mxu1 %v5875_v44 }
 0x353   :  { %4108 = vmatprep.mubr.msk.f32.mxu1 %vm216_vm0, %v5881_v60 }
 0x356   :  { %1635 = vmatmul.mubr.f32.gmra.mxu1 %v5888_v12 }
 0x357   :  { %4109 = vmatprep.mubr.msk.f32.mxu1 %vm216_vm0, %v5894_v50 }
 0x35a   :  { %1640 = vmatmul.mubr.f32.gmra.mxu1 %v5901_v0 }
 0x35b   :  { %4110 = vmatprep.mubr.msk.f32.mxu1 %vm216_vm0, %v5907_v25 }
 0x35e   :  { %1645 = vmatmul.mubr.f32.gmra.mxu1 %v5914_v21 }
 0x35f   :  { %4111 = vmatprep.mubr.msk.f32.mxu1 %vm216_vm0, %v5920_v26 }
 0x362   :  { %1650 = vmatmul.mubr.f32.gmra.mxu1 %v5927_v63 }
 0x363   :  { %4112 = vmatprep.mubr.msk.f32.mxu1 %vm216_vm0, %v5933_v1 }
 0x364   :  { %v4408_v12 = vpop.f32.mrf.mxu1 }
 0x365   :  { %v6015_v50 = vadd.f32 %v4408_v12, %v5554_v11 }
 0x366   :  { %1655 = vmatmul.mubr.f32.gmra.mxu1 %v5940_v54  ;;  %v6025_v63 = vpop.f32.mrf.mxu1 }
 0x367   :  { %7898 = vst [vmem:[#allocation55_spill] sm:$0xff] %v6015_v50  ;;  %4113 = vmatprep.mubr.msk.f32.mxu1 %vm216_vm0, %v5946_v37  ;;  %7899 = vst [vmem:[#allocation54_spill] sm:$0xff] %v6025_v63 }
 0x36a   :  { %1660 = vmatmul.mubr.f32.gmra.mxu1 %v5953_v6 }
 0x38e   :  { %v1259_v1 = vpop.f32.mrf.mxu1 }
 0x390   :  { %v1261_v26 = vpop.f32.mrf.mxu1 }
 0x392   :  { %v6027_v21 = vpop.f32.mrf.mxu1 }
 0x394   :  { %v1266_v11 = vpop.f32.mrf.mxu1 }
 0x396   :  { %v1269_v12 = vpop.f32.mrf.mxu1 }
 0x398   :  { %v1271_v54 = vpop.f32.mrf.mxu1 }
 0x39a   :  { %v1274_v50 = vpop.f32.mrf.mxu1 }
 0x39c   :  { %v1276_v25 = vpop.f32.mrf.mxu1 }
 0x39e   :  { %v1279_v37 = vpop.f32.mrf.mxu1 }
 0x3a0   :  { %v1281_v0 = vpop.f32.mrf.mxu1 }
 0x3a2   :  { %v1284_v6 = vpop.f32.mrf.mxu1 }
 0x3a4   :  { %v1286_v60 = vpop.f32.mrf.mxu1 }
 0x3a6   :  { %v1289_v44 = vpop.f32.mrf.mxu1 }
 0x3a8   :  { %v1291_v4 = vpop.f32.mrf.mxu1 }
 0x3a9   :  { %v1260_v4 = vadd.f32 %v1259_v1, %v7839_v19 }
 0x3aa   :  { %v1294_v53 = vpop.f32.mrf.mxu1 }
 0x3ac   :  { %v1296_v35 = vpop.f32.mrf.mxu1 }
 0x3ad   :  { %v1285_v35 = vadd.f32 %v1284_v6, %v7840_v42 }
 0x3ae   :  { %v1299_v29 = vpop.f32.mrf.mxu1 }
 0x3af   :  { %v1363_v52 = vmax.f32 %v1285_v35, 0.0 }
 0x3b0   :  { %v1301_v17 = vpop.f32.mrf.mxu1 }
 0x3b2   :  { %v1304_v63 = vpop.f32.mrf.mxu1 }
 0x3b4   :  { %v1306_v13 = vpop.f32.mrf.mxu1 }
 0x3b6   :  { %v1309_v26 = vpop.f32.mrf.mxu1 }
 0x3b7   :  { %v1310_v0 = vadd.f32 %v1309_v26, %v7838_v27 }
 0x3b8   :  { %v1311_v28 = vpop.f32.mrf.mxu1 }
 0x3b9   :  { %v1368_v17 = vmax.f32 %v1310_v0, 0.0  ;;  %v1358_v28 = vmax.f32 %v1260_v4, 0.0  ;;  %v1280_v0 = vadd.f32 %v1279_v37, %v5221_v49 }
 0x3ba   :  { %v1314_v8 = vpop.f32.mrf.mxu1 }
 0x3bc   :  { %v1316_v11 = vpop.f32.mrf.mxu1 }
 0x3be   :  { %v1319_v56 = vpop.f32.mrf.mxu1 }
 0x3c0   :  { %v1321_v54 = vpop.f32.mrf.mxu1 }
 0x3c1   :  { %v1378_v54 = vmax.f32 %v1358_v28, %v1368_v17  ;;  %v1275_v17 = vadd.f32 %v1274_v50, %v7843_v24 }
 0x3c2   :  { %v1324_v14 = vpop.f32.mrf.mxu1 }
 0x3c3   :  { %v1325_v35 = vadd.f32 %v1324_v14, %v5247_v34 }
 0x3c4   :  { %v1326_v25 = vpop.f32.mrf.mxu1 }
 0x3c5   :  { %v1371_v50 = vmax.f32 %v1325_v35, 0.0 }
 0x3c6   :  { %v1329_v38 = vpop.f32.mrf.mxu1 }
 0x3c7   :  { %v1330_v1 = vadd.f32 %v1329_v38, %v5229_v2  ;;  %v1320_v38 = vadd.f32 %v1319_v56, %v7845_v23  ;;  %v1265_v56 = vadd.f32 %v6027_v21, %v7849_v59 }
 0x3c8   :  { %v1331_v60 = vpop.f32.mrf.mxu1 }
 0x3c9   :  { %v1372_v28 = vmax.f32 %v1330_v1, 0.0  ;;  %v1361_v1 = vmax.f32 %v1275_v17, 0.0 }
 0x3ca   :  { %v1334_v51 = vpop.f32.mrf.mxu1 }
 0x3cb   :  { %v1335_v13 = vadd.f32 %v1334_v51, %v5315_v31  ;;  %v1305_v51 = vadd.f32 %v1304_v63, %v5227_v62  ;;  %v1381_v16 = vmax.f32 %v1361_v1, %v1371_v50 }
 0x3cc   :  { %v1336_v5 = vpop.f32.mrf.mxu1 }
 0x3cd   :  { %v1373_v11 = vmax.f32 %v1335_v13, 0.0  ;;  %v1300_v5 = vadd.f32 %v1299_v29, %v5249_v7  ;;  %v1295_v13 = vadd.f32 %v1294_v53, %v7844_v9 }
 0x3ce   :  { %v1339_v45 = vpop.f32.mrf.mxu1 }
 0x3cf   :  { %v1383_v61 = vmax.f32 %v1363_v52, %v1373_v11  ;;  %v1340_v37 = vadd.f32 %v1339_v45, %v7846_v43  ;;  %v7900_v11 = vld [vmem:[#allocation52_spill] sm:$0xff]  ;;  %v1365_v46 = vmax.f32 %v1295_v13, 0.0  ;;  %v1370_v45 = vmax.f32 %v1320_v38, 0.0 }
 0x3d0   :  { %v1341_v25 = vpop.f32.mrf.mxu1 }
 0x3d1   :  { %v6033_v39 = vmax.f32 %v1378_v54, %v1383_v61  ;;  %v1270_v61 = vadd.f32 %v1269_v12, %v7842_v10  ;;  %v1362_v54 = vmax.f32 %v1280_v0, 0.0  ;;  %v7901_v25 = vld [vmem:[#allocation59_spill] sm:$0xff]  ;;  %v1315_v12 = vadd.f32 %v1314_v8, %v7848_v36 }
 0x3d2   :  { %v1344_v26 = vpop.f32.mrf.mxu1  ;;  %v1290_v14 = vadd.f32 %v1289_v44, %v7901_v25 }
 0x3d3   :  { %v1345_v52 = vadd.f32 %v1344_v26, %v7841_v20  ;;  %v1367_v26 = vmax.f32 %v1305_v51, 0.0  ;;  %v1382_v33 = vmax.f32 %v1362_v54, %v1372_v28  ;;  %v1360_v44 = vmax.f32 %v1270_v61, 0.0 }
 0x3d4   :  { %v1346_v60 = vpop.f32.mrf.mxu1 }
 0x3d5   :  { %v1366_v60 = vmax.f32 %v1300_v5, 0.0  ;;  %v1375_v32 = vmax.f32 %v1345_v52, 0.0  ;;  %v1364_v5 = vmax.f32 %v1290_v14, 0.0  ;;  %v1380_v40 = vmax.f32 %v1360_v44, %v1370_v45 }
 0x3d6   :  { %v1349_v18 = vpop.f32.mrf.mxu1 }
 0x3d7   :  { %v1350_v6 = vadd.f32 %v1349_v18, %v5257_v58  ;;  %v1385_v8 = vmax.f32 %v1365_v46, %v1375_v32 }
 0x3d8   :  { %v1351_v4 = vpop.f32.mrf.mxu1 }
 0x3d9   :  { %v1376_v29 = vmax.f32 %v1350_v6, 0.0  ;;  %v1390_v28 = vmax.f32 %v1380_v40, %v1385_v8  ;;  %v4114_v40 = vld [vmem:[%s7452_s3 + $0x40] sm:$0xff] }
 0x3da   :  { %v1354_v18 = vpop.f32.mrf.mxu1 }
 0x3db   :  { %v1355_v63 = vadd.f32 %v1354_v18, %v7900_v11  ;;  %v1374_v18 = vmax.f32 %v1340_v37, 0.0  ;;  %v1386_v0 = vmax.f32 %v1366_v60, %v1376_v29 }
 0x3dc   :  { %v1356_v4 = vpop.f32.mrf.mxu1 }
 0x3dd   :  { %v1377_v53 = vmax.f32 %v1355_v63, 0.0  ;;  %v1369_v4 = vmax.f32 %v1315_v12, 0.0  ;;  %v1359_v63 = vmax.f32 %v1265_v56, 0.0  ;;  %v1384_v21 = vmax.f32 %v1364_v5, %v1374_v18 }
 0x3de   :  { %v1566_v6 = vpop.f32.mrf.mxu1  ;;  %v1391_v17 = vmax.f32 %v1381_v16, %v1386_v0 }
 0x3df   :  { %v1387_v55 = vmax.f32 %v1367_v26, %v1377_v53  ;;  %v1379_v38 = vmax.f32 %v1359_v63, %v1369_v4 }
 0x3e0   :  { %v1568_v51 = vpop.f32.mrf.mxu1 }
 0x3e1   :  { %v1392_v35 = vmax.f32 %v1382_v33, %v1387_v55  ;;  %v1389_v37 = vmax.f32 %v1379_v38, %v1384_v21  ;;  %v4091_v33 = vld [vmem:[%s7452_s3 + $0x38] sm:$0x3] }
 0x3e2   :  { %v6052_v52 = vpop.f32.mrf.mxu1 }
 0x3e3   :  { %4409 = vmatprep.subr.mxu0 %v1392_v35 }
 0x3e4   :  { %4410 = vmatpush3.msra.mxu0 %v1392_v35  ;;  %v1573_v13 = vpop.f32.mrf.mxu1 }
 0x3e5   :  { %4411 = vmatprep.subr.mxu0 %v1391_v17 }
 0x3e6   :  { %4412 = vmatpush3.msra.mxu0 %v1391_v17  ;;  %v6054_v61 = vpop.f32.mrf.mxu1  ;;  %v1567_v17 = vadd.f32 %v1566_v6, %v7839_v19 }
 0x3e7   :  { %4413 = vmatprep.subr.mxu0 %v1390_v28 }
 0x3e8   :  { %4414 = vmatpush3.msra.mxu0 %v1390_v28  ;;  %v1578_v46 = vpop.f32.mrf.mxu1 }
 0x3e9   :  { %4415 = vmatprep.subr.mxu0 %v1389_v37 }
 0x3ea   :  { %4416 = vmatpush3.msra.mxu0 %v1389_v37  ;;  %v1581_v55 = vpop.f32.mrf.mxu1 }
 0x3eb   :  { %4417 = vmatprep.subr.mxu0 %v6033_v39 }
 0x3ec   :  { %4418 = vmatpush3.msra.mxu0 %v6033_v39  ;;  %v1583_v16 = vpop.f32.mrf.mxu1 }
 0x3ed   :  { %4420 = vmatmul.mubr.msk.f32.vlgmr.msra.gmra.mxu0 %vm216_vm0, %v4091_v33  ;;  %v1665_v33 = vmax.f32 %v1567_v17, 0.0 }
 0x3ee   :  { %v1586_v32 = vpop.f32.mrf.mxu1  ;;  %4432 = vmatprep.mubr.msk.f32.mxu0 %vm216_vm0, %v4114_v40 }
 0x3f0   :  { %v1588_v29 = vpop.f32.mrf.mxu1 }
 0x3f2   :  { %v1591_v54 = vpop.f32.mrf.mxu1 }
 0x3f3   :  { %v1592_v13 = vadd.f32 %v1591_v54, %v7840_v42 }
 0x3f4   :  { %v1593_v14 = vpop.f32.mrf.mxu1 }
 0x3f5   :  { %v1670_v40 = vmax.f32 %v1592_v13, 0.0  ;;  %v1577_v13 = vadd.f32 %v6054_v61, %v7842_v10 }
 0x3f6   :  { %v1596_v60 = vpop.f32.mrf.mxu1 }
 0x3f8   :  { %v1598_v26 = vpop.f32.mrf.mxu1 }
 0x3fa   :  { %v1601_v12 = vpop.f32.mrf.mxu1 }
 0x3fc   :  { %v1603_v50 = vpop.f32.mrf.mxu1 }
 0x3fe   :  { %v1606_v53 = vpop.f32.mrf.mxu1 }
 0x400   :  { %v1608_v56 = vpop.f32.mrf.mxu1 }
 0x402   :  { %v1611_v1 = vpop.f32.mrf.mxu1 }
 0x404   :  { %v1613_v45 = vpop.f32.mrf.mxu1 }
 0x406   :  { %v1616_v18 = vpop.f32.mrf.mxu1 }
 0x407   :  { %v1617_v63 = vadd.f32 %v1616_v18, %v7838_v27 }
 0x408   :  { %v1618_v0 = vpop.f32.mrf.mxu1 }
 0x409   :  { %v1675_v28 = vmax.f32 %v1617_v63, 0.0 }
 0x40a   :  { %v1621_v39 = vpop.f32.mrf.mxu1 }
 0x40b   :  { %v1685_v14 = vmax.f32 %v1665_v33, %v1675_v28  ;;  %v1622_v61 = vadd.f32 %v1621_v39, %v7848_v36 }
 0x40c   :  { %v1623_v44 = vpop.f32.mrf.mxu1 }
 0x40d   :  { %v1587_v44 = vadd.f32 %v1586_v32, %v5221_v49 }
 0x40e   :  { %v1626_v5 = vpop.f32.mrf.mxu1 }
 0x40f   :  { %v1627_v28 = vadd.f32 %v1626_v5, %v7845_v23  ;;  %v1669_v33 = vmax.f32 %v1587_v44, 0.0  ;;  %v1572_v5 = vadd.f32 %v6052_v52, %v7849_v59  ;;  %v1667_v44 = vmax.f32 %v1577_v13, 0.0  ;;  %v4115_v13 = vld [vmem:[%s7452_s3 + $0x48] sm:$0x3] }
 0x410   :  { %v1628_v51 = vpop.f32.mrf.mxu1 }
 0x411   :  { %v1607_v51 = vadd.f32 %v1606_v53, %v5249_v7  ;;  %v1666_v39 = vmax.f32 %v1572_v5, 0.0  ;;  %v6141_v5 = vld [vmem:[#allocation2 + $0x1a0] sm:$0xff] }
 0x412   :  { %v1631_v4 = vpop.f32.mrf.mxu1 }
 0x414   :  { %v1633_v8 = vpop.f32.mrf.mxu1 }
 0x415   :  { %v1612_v8 = vadd.f32 %v1611_v1, %v5227_v62 }
 0x416   :  { %v1636_v35 = vpop.f32.mrf.mxu1 }
 0x417   :  { %v1637_v6 = vadd.f32 %v1636_v35, %v5229_v2  ;;  %v1602_v35 = vadd.f32 %v1601_v12, %v7844_v9 }
 0x418   :  { %v1638_v21 = vpop.f32.mrf.mxu1 }
 0x419   :  { %v1632_v21 = vadd.f32 %v1631_v4, %v5247_v34  ;;  %v1679_v32 = vmax.f32 %v1637_v6, 0.0  ;;  %v1597_v4 = vadd.f32 %v1596_v60, %v7901_v25 }
 0x41a   :  { %v1641_v38 = vpop.f32.mrf.mxu1 }
 0x41b   :  { %v1642_v37 = vadd.f32 %v1641_v38, %v5315_v31  ;;  %v1582_v38 = vadd.f32 %v1581_v55, %v7843_v24  ;;  %v1678_v55 = vmax.f32 %v1632_v21, 0.0  ;;  %v1671_v60 = vmax.f32 %v1597_v4, 0.0  ;;  %v7909_v4 = vld [vmem:[#allocation13_spill] sm:$0xff] }
 0x41c   :  { %v1643_v46 = vpop.f32.mrf.mxu1 }
 0x41d   :  { %v1680_v16 = vmax.f32 %v1642_v37, 0.0 }
 0x41e   :  { %v1646_v29 = vpop.f32.mrf.mxu1 }
 0x41f   :  { %v1690_v26 = vmax.f32 %v1670_v40, %v1680_v16  ;;  %v1647_v53 = vadd.f32 %v1646_v29, %v7846_v43  ;;  %v1673_v40 = vmax.f32 %v1607_v51, 0.0  ;;  %v1674_v16 = vmax.f32 %v1612_v8, 0.0 }
 0x420   :  { %v1648_v50 = vpop.f32.mrf.mxu1  ;;  %v1677_v29 = vmax.f32 %v1627_v28, 0.0  ;;  %v1676_v51 = vmax.f32 %v1622_v61, 0.0  ;;  %v6091_v28 = vld [vmem:[#allocation2 + $0x190] sm:$0xff]  ;;  %v6129_v61 = vld [vmem:[#allocation2 + $0x1b8] sm:$0xff] }
 0x421   :  { %v1695_v56 = vmax.f32 %v1685_v14, %v1690_v26  ;;  %v1668_v50 = vmax.f32 %v1582_v38, 0.0  ;;  %7902 = vst [vmem:[#allocation61_spill] sm:$0xff] %v6091_v28  ;;  %7913 = vst [vmem:[#allocation56_spill] sm:$0xff] %v6129_v61 }
 0x422   :  { %v1651_v45 = vpop.f32.mrf.mxu1  ;;  %v1687_v21 = vmax.f32 %v1667_v44, %v1677_v29  ;;  %v1686_v52 = vmax.f32 %v1666_v39, %v1676_v51  ;;  %v6154_v29 = vld [vmem:[#allocation2 + $0x1c0] sm:$0xff]  ;;  %v7925_v44 = vld [vmem:[#allocation22_spill] sm:$0xff] }
 0x423   :  { %v1652_v17 = vadd.f32 %v1651_v45, %v7841_v20  ;;  %v1672_v45 = vmax.f32 %v1602_v35, 0.0  ;;  %v1688_v8 = vmax.f32 %v1668_v50, %v1678_v55  ;;  %v7914_v55 = vld [vmem:[#allocation10_spill] sm:$0xff]  ;;  %v6145_v50 = vld [vmem:[#allocation2 + $0x198] sm:$0xff]  ;;  %v7927_v51 = vld [vmem:[#allocation24_spill] sm:$0xff] }
 0x424   :  { %v1653_v18 = vpop.f32.mrf.mxu1  ;;  %v7931_v39 = vld [vmem:[#allocation28_spill] sm:$0xff] }
 0x425   :  { %v1682_v26 = vmax.f32 %v1652_v17, 0.0  ;;  %v1689_v18 = vmax.f32 %v1669_v33, %v1679_v32  ;;  %v6095_v32 = vld [vmem:[#allocation2 + $0x188] sm:$0xff]  ;;  %v7908_v33 = vld [vmem:[#allocation12_spill] sm:$0xff] }
 0x426   :  { %v1656_v0 = vpop.f32.mrf.mxu1  ;;  %7903 = vst [vmem:[#allocation58_spill] sm:$0xff] %v6095_v32 }
 0x427   :  { %v1657_v54 = vadd.f32 %v1656_v0, %v5257_v58  ;;  %v1681_v0 = vmax.f32 %v1647_v53, 0.0  ;;  %v7906_v53 = vld [vmem:[#allocation17_spill] sm:$0xff] }
 0x428   :  { %v1658_v63 = vpop.f32.mrf.mxu1 }
 0x429   :  { %v1683_v46 = vmax.f32 %v1657_v54, 0.0  ;;  %v1692_v63 = vmax.f32 %v1672_v45, %v1682_v26  ;;  %v1691_v17 = vmax.f32 %v1671_v60, %v1681_v0  ;;  %v6133_v26 = vld [vmem:[#allocation2 + $0x1b0] sm:$0xff]  ;;  %v6149_v45 = vld [vmem:[#allocation2 + $0x1c8] sm:$0xff]  ;;  %v7922_v0 = vld [vmem:[#allocation19_spill] sm:$0xff] }
 0x42a   :  { %v1661_v37 = vpop.f32.mrf.mxu1  ;;  %7915 = vst [vmem:[#allocation52_spill] sm:$0xff] %v6133_v26  ;;  %7919 = vst [vmem:[#allocation17_spill] sm:$0xff] %v6149_v45  ;;  %v7926_v60 = vld [vmem:[#allocation23_spill] sm:$0xff] }
 0x42b   :  { %v1662_v1 = vadd.f32 %v1661_v37, %v7900_v11  ;;  %v1693_v6 = vmax.f32 %v1673_v40, %v1683_v46  ;;  %v1697_v38 = vmax.f32 %v1687_v21, %v1692_v63  ;;  %v1696_v35 = vmax.f32 %v1686_v52, %v1691_v17  ;;  %v7907_v46 = vld [vmem:[#allocation11_spill] sm:$0xff]  ;;  %v7910_v40 = vld [vmem:[#allocation14_spill] sm:$0xff]  ;;  %v7932_v21 = vld [vmem:[#allocation29_spill] sm:$0xff] }
 0x42c   :  { %v1663_v14 = vpop.f32.mrf.mxu1  ;;  %7920 = vst [vmem:[#allocation11_spill] sm:$0xff] %v6154_v29  ;;  %v7929_v63 = vld [vmem:[#allocation26_spill] sm:$0xff]  ;;  %v6214_v17 = vld [vmem:[#allocation2 + $0x1e8] sm:$0xff]  ;;  %v6220_v52 = vld [vmem:[#allocation2 + $0x1e0] sm:$0xff] }
 0x42d   :  { %v1684_v12 = vmax.f32 %v1662_v1, 0.0  ;;  %v1698_v1 = vmax.f32 %v1688_v8, %v1693_v6  ;;  %v7912_v14 = vld [vmem:[#allocation9_spill] sm:$0xff]  ;;  %v7923_v6 = vld [vmem:[#allocation20_spill] sm:$0xff]  ;;  %7937 = vst [vmem:[#allocation13_spill] sm:$0xff] %v6214_v17  ;;  %7939 = vst [vmem:[#allocation14_spill] sm:$0xff] %v6220_v52 }
 0x42e   :  { %v7928_v8 = vld [vmem:[#allocation25_spill] sm:$0xff] }
 0x42f   :  { %v1694_v54 = vmax.f32 %v1674_v16, %v1684_v12  ;;  %v7911_v16 = vld [vmem:[#allocation15_spill] sm:$0xff]  ;;  %v6137_v12 = vld [vmem:[#allocation2 + $0x1a8] sm:$0xff] }
 0x430   :  { %7916 = vst [vmem:[#allocation59_spill] sm:$0xff] %v6137_v12 }
 0x431   :  { %v1699_v37 = vmax.f32 %v1689_v18, %v1694_v54  ;;  %v7921_v18 = vld [vmem:[#allocation18_spill] sm:$0xff]  ;;  %v7924_v54 = vld [vmem:[#allocation21_spill] sm:$0xff] }
 0x433   :  { %4422 = vmatprep.subr.mxu0 %v1699_v37 }
 0x434   :  { %4423 = vmatpush3.msra.mxu0 %v1699_v37  ;;  %v7930_v37 = vld [vmem:[#allocation27_spill] sm:$0xff] }
 0x435   :  { %4424 = vmatprep.subr.mxu0 %v1698_v1 }
 0x436   :  { %4425 = vmatpush3.msra.mxu0 %v1698_v1  ;;  %v7938_v1 = vld [vmem:[#allocation33_spill] sm:$0xff] }
 0x437   :  { %4426 = vmatprep.subr.mxu0 %v1697_v38 }
 0x438   :  { %4427 = vmatpush3.msra.mxu0 %v1697_v38  ;;  %v7940_v38 = vld [vmem:[#allocation34_spill] sm:$0xff] }
 0x439   :  { %4428 = vmatprep.subr.mxu0 %v1696_v35 }
 0x43a   :  { %4429 = vmatpush3.msra.mxu0 %v1696_v35  ;;  %v6225_v35 = vld [vmem:[#allocation2 + $0x1d8] sm:$0xff] }
 0x43b   :  { %4430 = vmatprep.subr.mxu0 %v1695_v56  ;;  %7941 = vst [vmem:[#allocation15_spill] sm:$0xff] %v6225_v35 }
 0x43c   :  { %4431 = vmatpush3.msra.mxu0 %v1695_v56  ;;  %v7905_v56 = vld [vmem:[#allocation16_spill] sm:$0xff] }
 0x43d   :  { %4433 = vmatmul.mubr.msk.f32.vlgmr.msra.gmra.mxu0 %vm216_vm0, %v4115_v13  ;;  %1807 = vmatprep.subr.mxu0 %v7793_v30  ;;  %7918 = vst [vmem:[#allocation16_spill] sm:$0xff] %v6145_v50  ;;  %v7942_v13 = vld [vmem:[#allocation35_spill] sm:$0xff] }
 0x43e   :  { %1808 = vmatpush1.msra.mxu0 %v6091_v28  ;;  %4118 = vmatprep.mubr.msk.f32.mxu0 %vm216_vm0, %v5598_v57  ;;  %v7904_v57 = vld [vmem:[#allocation36_spill] sm:$0xff] }
 0x43f   :  { %1809 = vmatprep.subr.mxu0 %v7793_v30  ;;  %7917 = vst [vmem:[#allocation36_spill] sm:$0xff] %v6141_v5 }
 0x440   :  { %1810 = vmatpush1.msra.mxu0 %v6095_v32 }
 0x441   :  { %1811 = vmatprep.subr.mxu0 %v7793_v30 }
 0x442   :  { %1812 = vmatpush1.msra.mxu0 %v5786_v22 }
 0x443   :  { %1813 = vmatprep.subr.mxu0 %v7793_v30 }
 0x444   :  { %1814 = vmatpush1.msra.mxu0 %v5796_v3 }
 0x445   :  { %1815 = vmatprep.subr.mxu0 %v7793_v30 }
 0x446   :  { %1816 = vmatpush1.msra.mxu0 %v5807_v41 }
 0x447   :  { %1817 = vmatprep.subr.mxu0 %v7793_v30 }
 0x448   :  { %1818 = vmatpush1.msra.mxu0 %v5817_v15 }
 0x449   :  { %1819 = vmatprep.subr.mxu0 %v7793_v30 }
 0x44a   :  { %1820 = vmatpush1.msra.mxu0 %v7904_v57 }
 0x44b   :  { %1821 = vmatprep.subr.mxu0 %v7793_v30 }
 0x44c   :  { %1822 = vmatpush1.msra.mxu0 %v7905_v56 }
 0x44d   :  { %1823 = vmatprep.subr.mxu0 %v7793_v30 }
 0x44e   :  { %1824 = vmatpush1.msra.mxu0 %v7906_v53 }
 0x44f   :  { %1825 = vmatprep.subr.mxu0 %v7793_v30 }
 0x450   :  { %1826 = vmatpush1.msra.mxu0 %v7907_v46  ;;  %v7946_v46 = vld [vmem:[#allocation39_spill] sm:$0xff] }
 0x451   :  { %1827 = vmatprep.subr.mxu0 %v7793_v30 }
 0x452   :  { %1828 = vmatpush1.msra.mxu0 %v7908_v33  ;;  %v7947_v33 = vld [vmem:[#allocation40_spill] sm:$0xff] }
 0x453   :  { %1829 = vmatprep.subr.mxu0 %v7793_v30 }
 0x454   :  { %1830 = vmatpush1.msra.mxu0 %v7909_v4  ;;  %v7948_v4 = vld [vmem:[#allocation41_spill] sm:$0xff] }
 0x455   :  { %1831 = vmatprep.subr.mxu0 %v7793_v30 }
 0x456   :  { %1832 = vmatpush1.msra.mxu0 %v7910_v40  ;;  %v7949_v40 = vld [vmem:[#allocation42_spill] sm:$0xff] }
 0x457   :  { %1833 = vmatprep.subr.mxu0 %v7793_v30 }
 0x458   :  { %1834 = vmatpush1.msra.mxu0 %v7911_v16  ;;  %v7950_v16 = vld [vmem:[#allocation43_spill] sm:$0xff] }
 0x459   :  { %1835 = vmatprep.subr.mxu0 %v7793_v30 }
 0x45a   :  { %1836 = vmatpush1.msra.mxu0 %v7912_v14  ;;  %v7951_v14 = vld [vmem:[#allocation44_spill] sm:$0xff] }
 0x45b   :  { %1837 = vmatprep.subr.mxu0 %v7793_v30 }
 0x45c   :  { %1838 = vmatpush1.msra.mxu0 %v7914_v55  ;;  %v7952_v55 = vld [vmem:[#allocation45_spill] sm:$0xff] }
 0x45d   :  { %1861 = vmatprep.subr.mxu0 %v7793_v30 }
 0x45e   :  { %1862 = vmatpush2.msra.mxu0 %v6129_v61 }
 0x45f   :  { %1863 = vmatprep.subr.mxu0 %v7793_v30 }
 0x460   :  { %1864 = vmatpush2.msra.mxu0 %v6133_v26 }
 0x461   :  { %1865 = vmatprep.subr.mxu0 %v7793_v30 }
 0x462   :  { %1866 = vmatpush2.msra.mxu0 %v6137_v12 }
 0x463   :  { %1867 = vmatprep.subr.mxu0 %v7793_v30 }
 0x464   :  { %1868 = vmatpush2.msra.mxu0 %v6141_v5 }
 0x465   :  { %1869 = vmatprep.subr.mxu0 %v7793_v30 }
 0x466   :  { %1870 = vmatpush2.msra.mxu0 %v6145_v50 }
 0x467   :  { %1872 = vmatmul.mubr.f32.vlgmr.msra.gmra.mxu0 %v5652_v47  ;;  %2114 = vmatprep.subr.mxu0 %v7793_v30 }
 0x468   :  { %4119 = vmatprep.mubr.msk.f32.mxu0 %vm216_vm0, %v5661_v48  ;;  %2115 = vmatpush1.msra.mxu0 %v6149_v45  ;;  %v7960_v45 = vld [vmem:[#allocation55_spill] sm:$0xff] }
 0x469   :  { %2116 = vmatprep.subr.mxu0 %v7793_v30 }
 0x46a   :  { %2117 = vmatpush1.msra.mxu0 %v6154_v29 }
 0x46b   :  { %1877 = vmatmul.mubr.f32.gmra.mxu0 %v7921_v18  ;;  %2118 = vmatprep.subr.mxu0 %v7793_v30 }
 0x46c   :  { %4120 = vmatprep.mubr.msk.f32.mxu0 %vm216_vm0, %v7922_v0  ;;  %2119 = vmatpush1.msra.mxu0 %v6129_v61  ;;  %v7959_v61 = vld [vmem:[#allocation60_spill] sm:$0xff] }
 0x46d   :  { %2120 = vmatprep.subr.mxu0 %v7793_v30 }
 0x46e   :  { %2121 = vmatpush1.msra.mxu0 %v6133_v26  ;;  %v7958_v26 = vld [vmem:[#allocation62_spill] sm:$0xff] }
 0x46f   :  { %1882 = vmatmul.mubr.f32.gmra.mxu0 %v7923_v6  ;;  %2122 = vmatprep.subr.mxu0 %v7793_v30 }
 0x470   :  { %4121 = vmatprep.mubr.msk.f32.mxu0 %vm216_vm0, %v7924_v54  ;;  %2123 = vmatpush1.msra.mxu0 %v6137_v12  ;;  %v7957_v12 = vld [vmem:[#allocation50_spill] sm:$0xff] }
 0x471   :  { %2124 = vmatprep.subr.mxu0 %v7793_v30 }
 0x472   :  { %2125 = vmatpush1.msra.mxu0 %v6141_v5  ;;  %v7956_v5 = vld [vmem:[#allocation49_spill] sm:$0xff] }
 0x473   :  { %1887 = vmatmul.mubr.f32.gmra.mxu0 %v7925_v44  ;;  %2126 = vmatprep.subr.mxu0 %v7793_v30 }
 0x474   :  { %4122 = vmatprep.mubr.msk.f32.mxu0 %vm216_vm0, %v7926_v60  ;;  %2127 = vmatpush1.msra.mxu0 %v6145_v50  ;;  %v7955_v50 = vld [vmem:[#allocation48_spill] sm:$0xff] }
 0x475   :  { %2128 = vmatprep.subr.mxu0 %v7793_v30 }
 0x476   :  { %2129 = vmatpush1.msra.mxu0 %v6091_v28  ;;  %v7954_v28 = vld [vmem:[#allocation47_spill] sm:$0xff] }
 0x477   :  { %1892 = vmatmul.mubr.f32.gmra.mxu0 %v7927_v51  ;;  %2130 = vmatprep.subr.mxu0 %v7793_v30 }
 0x478   :  { %4123 = vmatprep.mubr.msk.f32.mxu0 %vm216_vm0, %v7928_v8  ;;  %2131 = vmatpush1.msra.mxu0 %v6095_v32  ;;  %v7953_v32 = vld [vmem:[#allocation46_spill] sm:$0xff] }
 0x479   :  { %2132 = vmatprep.subr.mxu0 %v7793_v30 }
 0x47a   :  { %2133 = vmatpush1.msra.mxu0 %v5786_v22  ;;  %v7933_v22 = vld [vmem:[#allocation30_spill] sm:$0xff] }
 0x47b   :  { %1897 = vmatmul.mubr.f32.gmra.mxu0 %v7929_v63  ;;  %2134 = vmatprep.subr.mxu0 %v7793_v30 }
 0x47c   :  { %4124 = vmatprep.mubr.msk.f32.mxu0 %vm216_vm0, %v7930_v37  ;;  %2135 = vmatpush1.msra.mxu0 %v5796_v3  ;;  %v7934_v3 = vld [vmem:[#allocation31_spill] sm:$0xff] }
 0x47d   :  { %2136 = vmatprep.subr.mxu0 %v7793_v30 }
 0x47e   :  { %2137 = vmatpush1.msra.mxu0 %v5807_v41  ;;  %v6209_v41 = vld [vmem:[#allocation2 + $0x1f0] sm:$0xff] }
 0x47f   :  { %1902 = vmatmul.mubr.f32.gmra.mxu0 %v7931_v39  ;;  %2138 = vmatprep.subr.mxu0 %v7793_v30  ;;  %7935 = vst [vmem:[#allocation12_spill] sm:$0xff] %v6209_v41 }
 0x480   :  { %4125 = vmatprep.mubr.msk.f32.mxu0 %vm216_vm0, %v7932_v21  ;;  %2139 = vmatpush1.msra.mxu0 %v5817_v15  ;;  %v7936_v15 = vld [vmem:[#allocation32_spill] sm:$0xff] }
 0x481   :  { %2140 = vmatprep.subr.mxu0 %v7793_v30 }
 0x482   :  { %2141 = vmatpush1.msra.mxu0 %v7904_v57  ;;  %v6231_v57 = vld [vmem:[#allocation2 + $0x1d0] sm:$0xff] }
 0x483   :  { %1907 = vmatmul.mubr.f32.gmra.mxu0 %v7933_v22  ;;  %2142 = vmatprep.subr.mxu0 %v7793_v30  ;;  %7943 = vst [vmem:[#allocation9_spill] sm:$0xff] %v6231_v57 }
 0x484   :  { %4126 = vmatprep.mubr.msk.f32.mxu0 %vm216_vm0, %v7934_v3  ;;  %2143 = vmatpush1.msra.mxu0 %v7905_v56  ;;  %v7944_v56 = vld [vmem:[#allocation37_spill] sm:$0xff] }
 0x485   :  { %2144 = vmatprep.subr.mxu0 %v7793_v30 }
 0x486   :  { %2145 = vmatpush1.msra.mxu0 %v7906_v53  ;;  %v7945_v53 = vld [vmem:[#allocation38_spill] sm:$0xff] }
 0x487   :  { %1912 = vmatmul.mubr.f32.gmra.mxu0 %v7936_v15  ;;  %2168 = vmatprep.subr.mxu0 %v7793_v30 }
 0x488   :  { %4127 = vmatprep.mubr.msk.f32.mxu0 %vm216_vm0, %v7938_v1  ;;  %2169 = vmatpush2.msra.mxu0 %v6209_v41  ;;  %v6268_v41 = vld [vmem:[%s7450_s1 + $0x8] sm:$0xff] }
 0x489   :  { %2170 = vmatprep.subr.mxu0 %v7793_v30 }
 0x48a   :  { %2171 = vmatpush2.msra.mxu0 %v6214_v17  ;;  %v7963_v17 = vld [vmem:[#allocation53_spill] sm:$0xff] }
 0x48b   :  { %1917 = vmatmul.mubr.f32.gmra.mxu0 %v7940_v38  ;;  %2172 = vmatprep.subr.mxu0 %v7793_v30 }
 0x48c   :  { %4128 = vmatprep.mubr.msk.f32.mxu0 %vm216_vm0, %v7942_v13  ;;  %2173 = vmatpush2.msra.mxu0 %v6220_v52  ;;  %v7962_v52 = vld [vmem:[#allocation57_spill] sm:$0xff] }
 0x48d   :  { %2174 = vmatprep.subr.mxu0 %v7793_v30 }
 0x48e   :  { %2175 = vmatpush2.msra.mxu0 %v6225_v35  ;;  %v7961_v35 = vld [vmem:[#allocation63_spill] sm:$0xff] }
 0x48f   :  { %1922 = vmatmul.mubr.f32.gmra.mxu0 %v7944_v56  ;;  %2176 = vmatprep.subr.mxu0 %v7793_v30 }
 0x490   :  { %4129 = vmatprep.mubr.msk.f32.mxu0 %vm216_vm0, %v7945_v53  ;;  %2177 = vmatpush2.msra.mxu0 %v6231_v57 }
 0x493   :  { %1927 = vmatmul.mubr.f32.gmra.mxu0 %v7946_v46 }
 0x494   :  { %4130 = vmatprep.mubr.msk.f32.mxu0 %vm216_vm0, %v7947_v33 }
 0x497   :  { %1932 = vmatmul.mubr.f32.gmra.mxu0 %v7948_v4 }
 0x498   :  { %4131 = vmatprep.mubr.msk.f32.mxu0 %vm216_vm0, %v7949_v40 }
 0x49b   :  { %1937 = vmatmul.mubr.f32.gmra.mxu0 %v7950_v16 }
 0x49c   :  { %4132 = vmatprep.mubr.msk.f32.mxu0 %vm216_vm0, %v7951_v14 }
 0x49f   :  { %1942 = vmatmul.mubr.f32.gmra.mxu0 %v7952_v55 }
 0x4a0   :  { %4133 = vmatprep.mubr.msk.f32.mxu0 %vm216_vm0, %v7953_v32 }
 0x4a3   :  { %1947 = vmatmul.mubr.f32.gmra.mxu0 %v7954_v28 }
 0x4a4   :  { %4134 = vmatprep.mubr.msk.f32.mxu0 %vm216_vm0, %v7955_v50 }
 0x4a7   :  { %1952 = vmatmul.mubr.f32.gmra.mxu0 %v7956_v5 }
 0x4a8   :  { %4135 = vmatprep.mubr.msk.f32.mxu0 %vm216_vm0, %v7957_v12 }
 0x4ab   :  { %1957 = vmatmul.mubr.f32.gmra.mxu0 %v7958_v26 }
 0x4ac   :  { %4136 = vmatprep.mubr.msk.f32.mxu0 %vm216_vm0, %v7959_v61 }
 0x4ad   :  { %v4421_v29 = vpop.f32.mrf.mxu0 }
 0x4ae   :  { %v1478_v57 = vadd.f32 %v4421_v29, %v7960_v45 }
 0x4af   :  { %1962 = vmatmul.mubr.f32.gmra.mxu0 %v7961_v35 }
 0x4b0   :  { %4137 = vmatprep.mubr.msk.f32.mxu0 %vm216_vm0, %v7962_v52 }
 0x4b3   :  { %1967 = vmatmul.mubr.f32.gmra.mxu0 %v7963_v17 }
 0x4b4   :  { %4142 = vmatprep.mubr.msk.f32.mxu0 %vm216_vm0, %v6268_v41 }
 0x4b7   :  { %2179 = vmatmul.mubr.f32.vlgmr.msra.gmra.mxu0 %v5652_v47  ;;  %v6323_v47 = vpop.f32.mrf.mxu0 }
 0x4b8   :  { %4143 = vmatprep.mubr.msk.f32.mxu0 %vm216_vm0, %v5661_v48  ;;  %7964 = vst [vmem:[#allocation10_spill] sm:$0xff] %v6323_v47  ;;  %v6691_v47 = vld [vmem:[%s7450_s1 + $0xd0] sm:$0xff] }
 0x4b9   :  { %8013 = vst [vmem:[#allocation55_spill] sm:$0xff] %v6691_v47 }
 0x4bb   :  { %2184 = vmatmul.mubr.f32.gmra.mxu0 %v7921_v18 }
 0x4bc   :  { %4144 = vmatprep.mubr.msk.f32.mxu0 %vm216_vm0, %v7922_v0 }
 0x4bf   :  { %2189 = vmatmul.mubr.f32.gmra.mxu0 %v7923_v6 }
 0x4c0   :  { %4145 = vmatprep.mubr.msk.f32.mxu0 %vm216_vm0, %v7924_v54 }
 0x4c3   :  { %2194 = vmatmul.mubr.f32.gmra.mxu0 %v7925_v44 }
 0x4c4   :  { %4146 = vmatprep.mubr.msk.f32.mxu0 %vm216_vm0, %v7926_v60 }
 0x4c7   :  { %2199 = vmatmul.mubr.f32.gmra.mxu0 %v7927_v51 }
 0x4c8   :  { %4147 = vmatprep.mubr.msk.f32.mxu0 %vm216_vm0, %v7928_v8 }
 0x4cb   :  { %2204 = vmatmul.mubr.f32.gmra.mxu0 %v7929_v63 }
 0x4cc   :  { %4148 = vmatprep.mubr.msk.f32.mxu0 %vm216_vm0, %v7930_v37 }
 0x4cf   :  { %2209 = vmatmul.mubr.f32.gmra.mxu0 %v7931_v39 }
 0x4d0   :  { %4149 = vmatprep.mubr.msk.f32.mxu0 %vm216_vm0, %v7932_v21 }
 0x4d3   :  { %2214 = vmatmul.mubr.f32.gmra.mxu0 %v7933_v22 }
 0x4d4   :  { %4150 = vmatprep.mubr.msk.f32.mxu0 %vm216_vm0, %v7934_v3 }
 0x4d7   :  { %2219 = vmatmul.mubr.f32.gmra.mxu0 %v7936_v15 }
 0x4d8   :  { %4151 = vmatprep.mubr.msk.f32.mxu0 %vm216_vm0, %v7938_v1 }
 0x4db   :  { %2224 = vmatmul.mubr.f32.gmra.mxu0 %v7940_v38 }
 0x4dc   :  { %4152 = vmatprep.mubr.msk.f32.mxu0 %vm216_vm0, %v7942_v13 }
 0x4df   :  { %2229 = vmatmul.mubr.f32.gmra.mxu0 %v7944_v56 }
 0x4e0   :  { %4153 = vmatprep.mubr.msk.f32.mxu0 %vm216_vm0, %v7945_v53 }
 0x4e3   :  { %2234 = vmatmul.mubr.f32.gmra.mxu0 %v7946_v46 }
 0x4e4   :  { %4154 = vmatprep.mubr.msk.f32.mxu0 %vm216_vm0, %v7947_v33 }
 0x4e7   :  { %2239 = vmatmul.mubr.f32.gmra.mxu0 %v7948_v4 }
 0x4e8   :  { %4155 = vmatprep.mubr.msk.f32.mxu0 %vm216_vm0, %v7949_v40 }
 0x4eb   :  { %2244 = vmatmul.mubr.f32.gmra.mxu0 %v7950_v16 }
 0x4ec   :  { %4156 = vmatprep.mubr.msk.f32.mxu0 %vm216_vm0, %v7951_v14 }
 0x4ef   :  { %2249 = vmatmul.mubr.f32.gmra.mxu0 %v7952_v55 }
 0x4f0   :  { %4157 = vmatprep.mubr.msk.f32.mxu0 %vm216_vm0, %v7953_v32 }
 0x4f3   :  { %2254 = vmatmul.mubr.f32.gmra.mxu0 %v7954_v28  ;;  %v4138_v28 = vld [vmem:[%s7452_s3 + $0x50] sm:$0xff] }
 0x4f4   :  { %4158 = vmatprep.mubr.msk.f32.mxu0 %vm216_vm0, %v7955_v50  ;;  %4445 = vmatprep.mubr.msk.f32.mxu1 %vm216_vm0, %v4138_v28 }
 0x4f7   :  { %2259 = vmatmul.mubr.f32.gmra.mxu0 %v7956_v5 }
 0x4f8   :  { %4159 = vmatprep.mubr.msk.f32.mxu0 %vm216_vm0, %v7957_v12 }
 0x4fb   :  { %2264 = vmatmul.mubr.f32.gmra.mxu0 %v7958_v26 }
 0x4fc   :  { %4160 = vmatprep.mubr.msk.f32.mxu0 %vm216_vm0, %v7959_v61 }
 0x4fd   :  { %v4434_v48 = vpop.f32.mrf.mxu0 }
 0x4fe   :  { %v6328_v45 = vadd.f32 %v4434_v48, %v1478_v57 }
 0x4ff   :  { %2269 = vmatmul.mubr.f32.gmra.mxu0 %v7961_v35  ;;  %v6338_v32 = vpop.f32.mrf.mxu0 }
 0x500   :  { %4161 = vmatprep.mubr.msk.f32.mxu0 %vm216_vm0, %v7962_v52  ;;  %7965 = vst [vmem:[#allocation18_spill] sm:$0xff] %v6338_v32  ;;  %v6684_v32 = vld [vmem:[%s7450_s1 + $0xd8] sm:$0xff] }
 0x501   :  { %8012 = vst [vmem:[#allocation60_spill] sm:$0xff] %v6684_v32 }
 0x503   :  { %2274 = vmatmul.mubr.f32.gmra.mxu0 %v7963_v17 }
 0x527   :  { %v1873_v26 = vpop.f32.mrf.mxu0 }
 0x528   :  { %v1874_v33 = vadd.f32 %v1873_v26, %v7839_v19 }
 0x529   :  { %v1875_v61 = vpop.f32.mrf.mxu0 }
 0x52a   :  { %v1972_v48 = vmax.f32 %v1874_v33, 0.0 }
 0x52b   :  { %v6340_v12 = vpop.f32.mrf.mxu0 }
 0x52d   :  { %v1880_v5 = vpop.f32.mrf.mxu0 }
 0x52f   :  { %v1883_v50 = vpop.f32.mrf.mxu0 }
 0x531   :  { %v1885_v29 = vpop.f32.mrf.mxu0 }
 0x533   :  { %v1888_v18 = vpop.f32.mrf.mxu0 }
 0x535   :  { %v1890_v0 = vpop.f32.mrf.mxu0 }
 0x537   :  { %v1893_v6 = vpop.f32.mrf.mxu0 }
 0x539   :  { %v1895_v54 = vpop.f32.mrf.mxu0 }
 0x53b   :  { %v1898_v44 = vpop.f32.mrf.mxu0 }
 0x53c   :  { %v1899_v4 = vadd.f32 %v1898_v44, %v7840_v42 }
 0x53d   :  { %v1900_v60 = vpop.f32.mrf.mxu0 }
 0x53e   :  { %v1977_v28 = vmax.f32 %v1899_v4, 0.0 }
 0x53f   :  { %v1903_v51 = vpop.f32.mrf.mxu0 }
 0x541   :  { %v1905_v8 = vpop.f32.mrf.mxu0 }
 0x543   :  { %v1908_v63 = vpop.f32.mrf.mxu0 }
 0x544   :  { %v1909_v33 = vadd.f32 %v1908_v63, %v7844_v9 }
 0x545   :  { %v1910_v37 = vpop.f32.mrf.mxu0 }
 0x547   :  { %v1913_v39 = vpop.f32.mrf.mxu0 }
 0x549   :  { %v1915_v21 = vpop.f32.mrf.mxu0 }
 0x54b   :  { %v1918_v22 = vpop.f32.mrf.mxu0 }
 0x54d   :  { %v1920_v3 = vpop.f32.mrf.mxu0 }
 0x54e   :  { %v1894_v3 = vadd.f32 %v1893_v6, %v5221_v49 }
 0x54f   :  { %v1923_v15 = vpop.f32.mrf.mxu0 }
 0x550   :  { %v1924_v53 = vadd.f32 %v1923_v15, %v7838_v27  ;;  %v1914_v15 = vadd.f32 %v1913_v39, %v5249_v7 }
 0x551   :  { %v1925_v17 = vpop.f32.mrf.mxu0 }
 0x552   :  { %v1982_v16 = vmax.f32 %v1924_v53, 0.0  ;;  %v1919_v17 = vadd.f32 %v1918_v22, %v5227_v62  ;;  %v1884_v53 = vadd.f32 %v1883_v50, %v7842_v10 }
 0x553   :  { %v1928_v1 = vpop.f32.mrf.mxu0 }
 0x554   :  { %v1992_v29 = vmax.f32 %v1972_v48, %v1982_v16  ;;  %v1976_v16 = vmax.f32 %v1894_v3, 0.0  ;;  %v1929_v50 = vadd.f32 %v1928_v1, %v7848_v36 }
 0x555   :  { %v1930_v52 = vpop.f32.mrf.mxu0 }
 0x556   :  { %v1983_v3 = vmax.f32 %v1929_v50, 0.0 }
 0x557   :  { %v1933_v38 = vpop.f32.mrf.mxu0 }
 0x559   :  { %v1935_v35 = vpop.f32.mrf.mxu0 }
 0x55b   :  { %v1938_v13 = vpop.f32.mrf.mxu0 }
 0x55c   :  { %v1939_v35 = vadd.f32 %v1938_v13, %v5247_v34  ;;  %v1904_v13 = vadd.f32 %v1903_v51, %v7901_v25  ;;  %v1974_v51 = vmax.f32 %v1884_v53, 0.0 }
 0x55d   :  { %v1940_v57 = vpop.f32.mrf.mxu0 }
 0x55f   :  { %v1943_v56 = vpop.f32.mrf.mxu0 }
 0x560   :  { %v1944_v26 = vadd.f32 %v1943_v56, %v5229_v2  ;;  %v1934_v56 = vadd.f32 %v1933_v38, %v7845_v23  ;;  %v1879_v38 = vadd.f32 %v6340_v12, %v7849_v59 }
 0x561   :  { %v1945_v46 = vpop.f32.mrf.mxu0 }
 0x562   :  { %v1889_v46 = vadd.f32 %v1888_v18, %v7843_v24  ;;  %v1985_v18 = vmax.f32 %v1939_v35, 0.0  ;;  %v1973_v35 = vmax.f32 %v1879_v38, 0.0 }
 0x563   :  { %v1948_v40 = vpop.f32.mrf.mxu0 }
 0x564   :  { %v1949_v14 = vadd.f32 %v1948_v40, %v5315_v31  ;;  %v1986_v40 = vmax.f32 %v1944_v26, 0.0  ;;  %v1978_v26 = vmax.f32 %v1904_v13, 0.0 }
 0x565   :  { %v1950_v55 = vpop.f32.mrf.mxu0 }
 0x566   :  { %v1987_v61 = vmax.f32 %v1949_v14, 0.0  ;;  %v1980_v14 = vmax.f32 %v1914_v15, 0.0  ;;  %v1981_v55 = vmax.f32 %v1919_v17, 0.0 }
 0x567   :  { %v1953_v5 = vpop.f32.mrf.mxu0 }
 0x568   :  { %v1997_v0 = vmax.f32 %v1977_v28, %v1987_v61  ;;  %v1954_v6 = vadd.f32 %v1953_v5, %v7846_v43  ;;  %v1975_v61 = vmax.f32 %v1889_v46, 0.0  ;;  %v1984_v5 = vmax.f32 %v1934_v56, 0.0 }
 0x569   :  { %v1955_v54 = vpop.f32.mrf.mxu0  ;;  %v1993_v56 = vmax.f32 %v1973_v35, %v1983_v3 }
 0x56a   :  { %v6346_v60 = vmax.f32 %v1992_v29, %v1997_v0  ;;  %v1979_v29 = vmax.f32 %v1909_v33, 0.0  ;;  %v1996_v54 = vmax.f32 %v1976_v16, %v1986_v40  ;;  %v1995_v15 = vmax.f32 %v1975_v61, %v1985_v18  ;;  %v4162_v16 = vld [vmem:[%s7452_s3 + $0x60] sm:$0xff] }
 0x56b   :  { %v1958_v8 = vpop.f32.mrf.mxu0 }
 0x56c   :  { %v1959_v57 = vadd.f32 %v1958_v8, %v7841_v20  ;;  %v1988_v8 = vmax.f32 %v1954_v6, 0.0 }
 0x56d   :  { %v1960_v37 = vpop.f32.mrf.mxu0 }
 0x56e   :  { %v1989_v28 = vmax.f32 %v1959_v57, 0.0  ;;  %v1994_v57 = vmax.f32 %v1974_v51, %v1984_v5  ;;  %v1998_v12 = vmax.f32 %v1978_v26, %v1988_v8 }
 0x56f   :  { %v1963_v21 = vpop.f32.mrf.mxu0 }
 0x570   :  { %v1964_v44 = vadd.f32 %v1963_v21, %v5257_v58  ;;  %v1999_v1 = vmax.f32 %v1979_v29, %v1989_v28  ;;  %v2003_v40 = vmax.f32 %v1993_v56, %v1998_v12 }
 0x571   :  { %v1965_v52 = vpop.f32.mrf.mxu0 }
 0x572   :  { %v1990_v39 = vmax.f32 %v1964_v44, 0.0 }
 0x573   :  { %v1968_v4 = vpop.f32.mrf.mxu0 }
 0x574   :  { %v1969_v22 = vadd.f32 %v1968_v4, %v7900_v11  ;;  %v2000_v37 = vmax.f32 %v1980_v14, %v1990_v39  ;;  %v2004_v4 = vmax.f32 %v1994_v57, %v1999_v1 }
 0x575   :  { %v1970_v48 = vpop.f32.mrf.mxu0 }
 0x576   :  { %v1991_v63 = vmax.f32 %v1969_v22, 0.0  ;;  %v2005_v46 = vmax.f32 %v1995_v15, %v2000_v37  ;;  %v4139_v22 = vld [vmem:[%s7452_s3 + $0x58] sm:$0x3] }
 0x577   :  { %v2180_v0 = vpop.f32.mrf.mxu0 }
 0x578   :  { %v2001_v21 = vmax.f32 %v1981_v55, %v1991_v63  ;;  %v2181_v35 = vadd.f32 %v2180_v0, %v7839_v19 }
 0x579   :  { %v2182_v44 = vpop.f32.mrf.mxu0 }
 0x57a   :  { %v2006_v17 = vmax.f32 %v1996_v54, %v2001_v21 }
 0x57b   :  { %v6365_v52 = vpop.f32.mrf.mxu0 }
 0x57c   :  { %4435 = vmatprep.subr.mxu1 %v2006_v17 }
 0x57d   :  { %4436 = vmatpush3.msra.mxu1 %v2006_v17  ;;  %v2187_v33 = vpop.f32.mrf.mxu0 }
 0x57e   :  { %4437 = vmatprep.subr.mxu1 %v2005_v46 }
 0x57f   :  { %4438 = vmatpush3.msra.mxu1 %v2005_v46  ;;  %v6367_v53 = vpop.f32.mrf.mxu0 }
 0x580   :  { %4439 = vmatprep.subr.mxu1 %v2004_v4 }
 0x581   :  { %4440 = vmatpush3.msra.mxu1 %v2004_v4  ;;  %v2192_v6 = vpop.f32.mrf.mxu0  ;;  %v2279_v4 = vmax.f32 %v2181_v35, 0.0 }
 0x582   :  { %4441 = vmatprep.subr.mxu1 %v2003_v40 }
 0x583   :  { %4442 = vmatpush3.msra.mxu1 %v2003_v40  ;;  %v2195_v39 = vpop.f32.mrf.mxu0 }
 0x584   :  { %4443 = vmatprep.subr.mxu1 %v6346_v60 }
 0x585   :  { %4444 = vmatpush3.msra.mxu1 %v6346_v60  ;;  %v2197_v13 = vpop.f32.mrf.mxu0 }
 0x586   :  { %4446 = vmatmul.mubr.msk.f32.vlgmr.msra.gmra.mxu1 %vm216_vm0, %v4139_v22 }
 0x587   :  { %v2200_v14 = vpop.f32.mrf.mxu0  ;;  %4458 = vmatprep.mubr.msk.f32.mxu1 %vm216_vm0, %v4162_v16 }
 0x589   :  { %v2202_v55 = vpop.f32.mrf.mxu0 }
 0x58b   :  { %v2205_v48 = vpop.f32.mrf.mxu0 }
 0x58c   :  { %v2206_v57 = vadd.f32 %v2205_v48, %v7840_v42 }
 0x58d   :  { %v2207_v50 = vpop.f32.mrf.mxu0 }
 0x58e   :  { %v2284_v40 = vmax.f32 %v2206_v57, 0.0 }
 0x58f   :  { %v2210_v18 = vpop.f32.mrf.mxu0 }
 0x591   :  { %v2212_v28 = vpop.f32.mrf.mxu0 }
 0x593   :  { %v2215_v63 = vpop.f32.mrf.mxu0 }
 0x595   :  { %v2217_v38 = vpop.f32.mrf.mxu0 }
 0x597   :  { %v2220_v61 = vpop.f32.mrf.mxu0 }
 0x599   :  { %v2222_v29 = vpop.f32.mrf.mxu0 }
 0x59b   :  { %v2225_v5 = vpop.f32.mrf.mxu0 }
 0x59d   :  { %v2227_v54 = vpop.f32.mrf.mxu0 }
 0x59e   :  { %v2201_v54 = vadd.f32 %v2200_v14, %v5221_v49 }
 0x59f   :  { %v2230_v8 = vpop.f32.mrf.mxu0 }
 0x5a0   :  { %v2231_v1 = vadd.f32 %v2230_v8, %v7838_v27  ;;  %v2221_v8 = vadd.f32 %v2220_v61, %v5249_v7 }
 0x5a1   :  { %v2232_v37 = vpop.f32.mrf.mxu0 }
 0x5a2   :  { %v2289_v46 = vmax.f32 %v2231_v1, 0.0  ;;  %v2226_v37 = vadd.f32 %v2225_v5, %v5227_v62  ;;  %v2191_v1 = vadd.f32 %v6367_v53, %v7842_v10 }
 0x5a3   :  { %v2235_v60 = vpop.f32.mrf.mxu0 }
 0x5a4   :  { %v2299_v16 = vmax.f32 %v2279_v4, %v2289_v46  ;;  %v2283_v46 = vmax.f32 %v2201_v54, 0.0  ;;  %v2236_v53 = vadd.f32 %v2235_v60, %v7848_v36 }
 0x5a5   :  { %v2237_v21 = vpop.f32.mrf.mxu0 }
 0x5a7   :  { %v2240_v51 = vpop.f32.mrf.mxu0 }
 0x5a8   :  { %v2241_v35 = vadd.f32 %v2240_v51, %v7845_v23  ;;  %v2186_v51 = vadd.f32 %v6365_v52, %v7849_v59 }
 0x5a9   :  { %v2242_v26 = vpop.f32.mrf.mxu0 }
 0x5aa   :  { %v2280_v60 = vmax.f32 %v2186_v51, 0.0  ;;  %v6446_v51 = vld [vmem:[#allocation2 + $0x220] sm:$0xff] }
 0x5ab   :  { %v2245_v44 = vpop.f32.mrf.mxu0  ;;  %7983 = vst [vmem:[#allocation22_spill] sm:$0xff] %v6446_v51 }
 0x5ac   :  { %v2246_v26 = vadd.f32 %v2245_v44, %v5247_v34  ;;  %v2211_v44 = vadd.f32 %v2210_v18, %v7901_v25 }
 0x5ad   :  { %v2247_v3 = vpop.f32.mrf.mxu0 }
 0x5ae   :  { %v2285_v18 = vmax.f32 %v2211_v44, 0.0  ;;  %v7975_v44 = vld [vmem:[#allocation56_spill] sm:$0xff] }
 0x5af   :  { %v2250_v15 = vpop.f32.mrf.mxu0 }
 0x5b0   :  { %v2251_v0 = vadd.f32 %v2250_v15, %v5229_v2  ;;  %v2216_v15 = vadd.f32 %v2215_v63, %v7844_v9 }
 0x5b1   :  { %v2252_v17 = vpop.f32.mrf.mxu0 }
 0x5b2   :  { %v2196_v17 = vadd.f32 %v2195_v39, %v7843_v24  ;;  %v2293_v14 = vmax.f32 %v2251_v0, 0.0  ;;  %v2292_v39 = vmax.f32 %v2246_v26, 0.0  ;;  %v2290_v0 = vmax.f32 %v2236_v53, 0.0  ;;  %v7979_v53 = vld [vmem:[#allocation16_spill] sm:$0xff] }
 0x5b3   :  { %v2255_v12 = vpop.f32.mrf.mxu0 }
 0x5b4   :  { %v2256_v33 = vadd.f32 %v2255_v12, %v5315_v31  ;;  %v2300_v52 = vmax.f32 %v2280_v60, %v2290_v0  ;;  %v6504_v0 = vld [vmem:[%s7450_s1 + $0x20] sm:$0xff] }
 0x5b5   :  { %v2257_v56 = vpop.f32.mrf.mxu0  ;;  %v6538_v60 = vld [vmem:[%s7450_s1 + $0x40] sm:$0xff] }
 0x5b6   :  { %v2294_v6 = vmax.f32 %v2256_v33, 0.0  ;;  %v2287_v33 = vmax.f32 %v2221_v8, 0.0  ;;  %v2288_v56 = vmax.f32 %v2226_v37, 0.0  ;;  %7990 = vst [vmem:[#allocation29_spill] sm:$0xff] %v6538_v60 }
 0x5b7   :  { %v2260_v22 = vpop.f32.mrf.mxu0 }
 0x5b8   :  { %v2304_v13 = vmax.f32 %v2284_v40, %v2294_v6  ;;  %v2261_v61 = vadd.f32 %v2260_v22, %v7846_v43  ;;  %v2282_v6 = vmax.f32 %v2196_v17, 0.0  ;;  %v2291_v22 = vmax.f32 %v2241_v35, 0.0  ;;  %v6408_v35 = vld [vmem:[#allocation2 + $0x1f8] sm:$0xff] }
 0x5b9   :  { %v2262_v55 = vpop.f32.mrf.mxu0  ;;  %7967 = vst [vmem:[#allocation20_spill] sm:$0xff] %v6408_v35 }
 0x5ba   :  { %v2309_v50 = vmax.f32 %v2299_v16, %v2304_v13  ;;  %v2286_v16 = vmax.f32 %v2216_v15, 0.0  ;;  %v2303_v13 = vmax.f32 %v2283_v46, %v2293_v14  ;;  %v2295_v55 = vmax.f32 %v2261_v61, 0.0  ;;  %v6404_v15 = vld [vmem:[#allocation2 + $0x200] sm:$0xff]  ;;  %v7970_v14 = vld [vmem:[#allocation14_spill] sm:$0xff]  ;;  %v7971_v61 = vld [vmem:[#allocation15_spill] sm:$0xff] }
 0x5bb   :  { %v2265_v28 = vpop.f32.mrf.mxu0  ;;  %7966 = vst [vmem:[#allocation19_spill] sm:$0xff] %v6404_v15  ;;  %v7974_v46 = vld [vmem:[#allocation11_spill] sm:$0xff] }
 0x5bc   :  { %v2266_v3 = vadd.f32 %v2265_v28, %v7841_v20 }
 0x5bd   :  { %v2267_v38 = vpop.f32.mrf.mxu0 }
 0x5be   :  { %v2296_v40 = vmax.f32 %v2266_v3, 0.0 }
 0x5bf   :  { %v2270_v29 = vpop.f32.mrf.mxu0 }
 0x5c0   :  { %v2271_v48 = vadd.f32 %v2270_v29, %v5257_v58  ;;  %v2281_v29 = vmax.f32 %v2191_v1, 0.0  ;;  %v2306_v54 = vmax.f32 %v2286_v16, %v2296_v40  ;;  %v4163_v1 = vld [vmem:[%s7452_s3 + $0x68] sm:$0x3]  ;;  %v6454_v16 = vld [vmem:[#allocation2 + $0x210] sm:$0xff] }
 0x5c1   :  { %v2272_v21 = vpop.f32.mrf.mxu0  ;;  %v6442_v40 = vld [vmem:[#allocation2 + $0x228] sm:$0xff]  ;;  %7985 = vst [vmem:[#allocation24_spill] sm:$0xff] %v6454_v16 }
 0x5c2   :  { %v2297_v12 = vmax.f32 %v2271_v48, 0.0  ;;  %v2302_v48 = vmax.f32 %v2282_v6, %v2292_v39  ;;  %v2301_v37 = vmax.f32 %v2281_v29, %v2291_v22  ;;  %v2305_v21 = vmax.f32 %v2285_v18, %v2295_v55  ;;  %v7980_v39 = vld [vmem:[#allocation61_spill] sm:$0xff]  ;;  %7981 = vst [vmem:[#allocation21_spill] sm:$0xff] %v6442_v40  ;;  %v6450_v6 = vld [vmem:[#allocation2 + $0x218] sm:$0xff]  ;;  %v6468_v55 = vld [vmem:[%s7450_s1] sm:$0xff] }
 0x5c3   :  { %v2275_v57 = vpop.f32.mrf.mxu0  ;;  %7984 = vst [vmem:[#allocation23_spill] sm:$0xff] %v6450_v6  ;;  %v6458_v22 = vld [vmem:[#allocation2 + $0x208] sm:$0xff]  ;;  %v6487_v29 = vld [vmem:[%s7450_s1 + $0x10] sm:$0xff] }
 0x5c4   :  { %v2276_v5 = vadd.f32 %v2275_v57, %v7900_v11  ;;  %v2307_v28 = vmax.f32 %v2287_v33, %v2297_v12  ;;  %v2311_v3 = vmax.f32 %v2301_v37, %v2306_v54  ;;  %v2310_v17 = vmax.f32 %v2300_v52, %v2305_v21  ;;  %v7968_v57 = vld [vmem:[#allocation12_spill] sm:$0xff]  ;;  %v7972_v12 = vld [vmem:[#allocation9_spill] sm:$0xff]  ;;  %7986 = vst [vmem:[#allocation25_spill] sm:$0xff] %v6458_v22  ;;  %v6521_v54 = vld [vmem:[%s7450_s1 + $0x30] sm:$0xff] }
 0x5c5   :  { %v2277_v4 = vpop.f32.mrf.mxu0  ;;  %v7976_v33 = vld [vmem:[#allocation52_spill] sm:$0xff]  ;;  %v6494_v18 = vld [vmem:[%s7450_s1 + $0x28] sm:$0xff]  ;;  %v6545_v37 = vld [vmem:[%s7450_s1 + $0x58] sm:$0xff] }
 0x5c6   :  { %v2298_v63 = vmax.f32 %v2276_v5, 0.0  ;;  %v2312_v26 = vmax.f32 %v2302_v48, %v2307_v28  ;;  %v7973_v5 = vld [vmem:[#allocation17_spill] sm:$0xff]  ;;  %v7978_v4 = vld [vmem:[#allocation36_spill] sm:$0xff]  ;;  %v6472_v28 = vld [vmem:[#allocation2 + $0x230] sm:$0xff]  ;;  %7991 = vst [vmem:[#allocation30_spill] sm:$0xff] %v6545_v37 }
 0x5c7   :  { %7988 = vst [vmem:[#allocation27_spill] sm:$0xff] %v6472_v28  ;;  %v6511_v48 = vld [vmem:[%s7450_s1 + $0x38] sm:$0xff]  ;;  %v6555_v21 = vld [vmem:[%s7450_s1 + $0x50] sm:$0xff]  ;;  %v6572_v52 = vld [vmem:[%s7450_s1 + $0x60] sm:$0xff] }
 0x5c8   :  { %v2308_v38 = vmax.f32 %v2288_v56, %v2298_v63  ;;  %v7977_v56 = vld [vmem:[#allocation59_spill] sm:$0xff]  ;;  %v7982_v63 = vld [vmem:[#allocation58_spill] sm:$0xff]  ;;  %7992 = vst [vmem:[#allocation31_spill] sm:$0xff] %v6555_v21  ;;  %7994 = vst [vmem:[#allocation33_spill] sm:$0xff] %v6572_v52 }
 0x5ca   :  { %v2313_v8 = vmax.f32 %v2303_v13, %v2308_v38  ;;  %v6462_v13 = vld [vmem:[#allocation2 + $0x238] sm:$0xff] }
 0x5cb   :  { %7987 = vst [vmem:[#allocation26_spill] sm:$0xff] %v6462_v13  ;;  %v6477_v38 = vld [vmem:[%s7450_s1 + $0x18] sm:$0xff] }
 0x5cc   :  { %4448 = vmatprep.subr.mxu1 %v2313_v8 }
 0x5cd   :  { %4449 = vmatpush3.msra.mxu1 %v2313_v8  ;;  %v6528_v8 = vld [vmem:[%s7450_s1 + $0x48] sm:$0xff] }
 0x5ce   :  { %4450 = vmatprep.subr.mxu1 %v2312_v26  ;;  %7989 = vst [vmem:[#allocation28_spill] sm:$0xff] %v6528_v8 }
 0x5cf   :  { %4451 = vmatpush3.msra.mxu1 %v2312_v26  ;;  %v6562_v26 = vld [vmem:[%s7450_s1 + $0x68] sm:$0xff] }
 0x5d0   :  { %4452 = vmatprep.subr.mxu1 %v2311_v3  ;;  %7993 = vst [vmem:[#allocation32_spill] sm:$0xff] %v6562_v26 }
 0x5d1   :  { %4453 = vmatpush3.msra.mxu1 %v2311_v3  ;;  %v6579_v3 = vld [vmem:[%s7450_s1 + $0x78] sm:$0xff] }
 0x5d2   :  { %4454 = vmatprep.subr.mxu1 %v2310_v17  ;;  %7995 = vst [vmem:[#allocation34_spill] sm:$0xff] %v6579_v3 }
 0x5d3   :  { %4455 = vmatpush3.msra.mxu1 %v2310_v17  ;;  %v6589_v17 = vld [vmem:[%s7450_s1 + $0x70] sm:$0xff] }
 0x5d4   :  { %4456 = vmatprep.subr.mxu1 %v2309_v50  ;;  %7996 = vst [vmem:[#allocation35_spill] sm:$0xff] %v6589_v17 }
 0x5d5   :  { %4457 = vmatpush3.msra.mxu1 %v2309_v50  ;;  %v7969_v50 = vld [vmem:[#allocation13_spill] sm:$0xff] }
 0x5d6   :  { %4459 = vmatmul.mubr.msk.f32.vlgmr.msra.gmra.mxu1 %vm216_vm0, %v4163_v1  ;;  %2421 = vmatprep.subr.mxu1 %v7793_v30  ;;  %v6596_v1 = vld [vmem:[%s7450_s1 + $0x88] sm:$0xff] }
 0x5d7   :  { %2422 = vmatpush1.msra.mxu1 %v6404_v15  ;;  %4166 = vmatprep.mubr.msk.f32.mxu1 %vm216_vm0, %v6268_v41  ;;  %7997 = vst [vmem:[#allocation37_spill] sm:$0xff] %v6596_v1 }
 0x5d8   :  { %2423 = vmatprep.subr.mxu1 %v7793_v30 }
 0x5d9   :  { %2424 = vmatpush1.msra.mxu1 %v6408_v35 }
 0x5da   :  { %2425 = vmatprep.subr.mxu1 %v7793_v30 }
 0x5db   :  { %2426 = vmatpush1.msra.mxu1 %v7968_v57 }
 0x5dc   :  { %2427 = vmatprep.subr.mxu1 %v7793_v30 }
 0x5dd   :  { %2428 = vmatpush1.msra.mxu1 %v7969_v50 }
 0x5de   :  { %2429 = vmatprep.subr.mxu1 %v7793_v30 }
 0x5df   :  { %2430 = vmatpush1.msra.mxu1 %v7970_v14 }
 0x5e0   :  { %2431 = vmatprep.subr.mxu1 %v7793_v30 }
 0x5e1   :  { %2432 = vmatpush1.msra.mxu1 %v7971_v61 }
 0x5e2   :  { %2433 = vmatprep.subr.mxu1 %v7793_v30 }
 0x5e3   :  { %2434 = vmatpush1.msra.mxu1 %v7972_v12 }
 0x5e4   :  { %2435 = vmatprep.subr.mxu1 %v7793_v30 }
 0x5e5   :  { %2436 = vmatpush1.msra.mxu1 %v7973_v5 }
 0x5e6   :  { %2437 = vmatprep.subr.mxu1 %v7793_v30 }
 0x5e7   :  { %2438 = vmatpush1.msra.mxu1 %v7974_v46 }
 0x5e8   :  { %2439 = vmatprep.subr.mxu1 %v7793_v30 }
 0x5e9   :  { %2440 = vmatpush1.msra.mxu1 %v7975_v44  ;;  %v6638_v44 = vld [vmem:[%s7450_s1 + $0xa8] sm:$0xff] }
 0x5ea   :  { %2441 = vmatprep.subr.mxu1 %v7793_v30  ;;  %8005 = vst [vmem:[#allocation45_spill] sm:$0xff] %v6638_v44 }
 0x5eb   :  { %2442 = vmatpush1.msra.mxu1 %v7976_v33  ;;  %v6644_v33 = vld [vmem:[#allocation2 + $0x240] sm:$0xff] }
 0x5ec   :  { %2443 = vmatprep.subr.mxu1 %v7793_v30  ;;  %8006 = vst [vmem:[#allocation46_spill] sm:$0xff] %v6644_v33 }
 0x5ed   :  { %2444 = vmatpush1.msra.mxu1 %v7977_v56  ;;  %v6650_v56 = vld [vmem:[%s7450_s1 + $0xa0] sm:$0xff] }
 0x5ee   :  { %2445 = vmatprep.subr.mxu1 %v7793_v30  ;;  %8007 = vst [vmem:[#allocation47_spill] sm:$0xff] %v6650_v56 }
 0x5ef   :  { %2446 = vmatpush1.msra.mxu1 %v7978_v4  ;;  %v6657_v4 = vld [vmem:[%s7450_s1 + $0xb8] sm:$0xff] }
 0x5f0   :  { %2447 = vmatprep.subr.mxu1 %v7793_v30  ;;  %8008 = vst [vmem:[#allocation48_spill] sm:$0xff] %v6657_v4 }
 0x5f1   :  { %2448 = vmatpush1.msra.mxu1 %v7979_v53  ;;  %v6665_v53 = vld [vmem:[%s7450_s1 + $0xb0] sm:$0xff] }
 0x5f2   :  { %2449 = vmatprep.subr.mxu1 %v7793_v30  ;;  %8009 = vst [vmem:[#allocation49_spill] sm:$0xff] %v6665_v53 }
 0x5f3   :  { %2450 = vmatpush1.msra.mxu1 %v7980_v39  ;;  %v6671_v39 = vld [vmem:[%s7450_s1 + $0xc8] sm:$0xff] }
 0x5f4   :  { %2451 = vmatprep.subr.mxu1 %v7793_v30  ;;  %8010 = vst [vmem:[#allocation50_spill] sm:$0xff] %v6671_v39 }
 0x5f5   :  { %2452 = vmatpush1.msra.mxu1 %v7982_v63  ;;  %v6678_v63 = vld [vmem:[%s7450_s1 + $0xc0] sm:$0xff] }
 0x5f6   :  { %2475 = vmatprep.subr.mxu1 %v7793_v30  ;;  %8011 = vst [vmem:[#allocation62_spill] sm:$0xff] %v6678_v63 }
 0x5f7   :  { %2476 = vmatpush2.msra.mxu1 %v6442_v40 }
 0x5f8   :  { %2477 = vmatprep.subr.mxu1 %v7793_v30 }
 0x5f9   :  { %2478 = vmatpush2.msra.mxu1 %v6446_v51 }
 0x5fa   :  { %2479 = vmatprep.subr.mxu1 %v7793_v30 }
 0x5fb   :  { %2480 = vmatpush2.msra.mxu1 %v6450_v6 }
 0x5fc   :  { %2481 = vmatprep.subr.mxu1 %v7793_v30 }
 0x5fd   :  { %2482 = vmatpush2.msra.mxu1 %v6454_v16 }
 0x5fe   :  { %2483 = vmatprep.subr.mxu1 %v7793_v30 }
 0x5ff   :  { %2484 = vmatpush2.msra.mxu1 %v6458_v22 }
 0x600   :  { %2486 = vmatmul.mubr.f32.vlgmr.msra.gmra.mxu1 %v6468_v55  ;;  %2728 = vmatprep.subr.mxu1 %v7793_v30 }
 0x601   :  { %4167 = vmatprep.mubr.msk.f32.mxu1 %vm216_vm0, %v6477_v38  ;;  %2729 = vmatpush1.msra.mxu1 %v6462_v13  ;;  %v6749_v13 = vld [vmem:[%s7450_s1 + $0x128] sm:$0xff] }
 0x602   :  { %2730 = vmatprep.subr.mxu1 %v7793_v30  ;;  %8022 = vst [vmem:[#allocation17_spill] sm:$0xff] %v6749_v13 }
 0x603   :  { %2731 = vmatpush1.msra.mxu1 %v6472_v28  ;;  %v6743_v28 = vld [vmem:[%s7450_s1 + $0x110] sm:$0xff] }
 0x604   :  { %2491 = vmatmul.mubr.f32.gmra.mxu1 %v6487_v29  ;;  %2732 = vmatprep.subr.mxu1 %v7793_v30  ;;  %8021 = vst [vmem:[#allocation9_spill] sm:$0xff] %v6743_v28 }
 0x605   :  { %4168 = vmatprep.mubr.msk.f32.mxu1 %vm216_vm0, %v6494_v18  ;;  %2733 = vmatpush1.msra.mxu1 %v6442_v40  ;;  %v6736_v40 = vld [vmem:[%s7450_s1 + $0x118] sm:$0xff] }
 0x606   :  { %2734 = vmatprep.subr.mxu1 %v7793_v30  ;;  %8020 = vst [vmem:[#allocation15_spill] sm:$0xff] %v6736_v40 }
 0x607   :  { %2735 = vmatpush1.msra.mxu1 %v6446_v51  ;;  %v6730_v51 = vld [vmem:[%s7450_s1 + $0x100] sm:$0xff] }
 0x608   :  { %2496 = vmatmul.mubr.f32.gmra.mxu1 %v6504_v0  ;;  %2736 = vmatprep.subr.mxu1 %v7793_v30  ;;  %8019 = vst [vmem:[#allocation14_spill] sm:$0xff] %v6730_v51 }
 0x609   :  { %4169 = vmatprep.mubr.msk.f32.mxu1 %vm216_vm0, %v6511_v48  ;;  %2737 = vmatpush1.msra.mxu1 %v6450_v6  ;;  %v6723_v6 = vld [vmem:[%s7450_s1 + $0x108] sm:$0xff] }
 0x60a   :  { %2738 = vmatprep.subr.mxu1 %v7793_v30  ;;  %8018 = vst [vmem:[#allocation13_spill] sm:$0xff] %v6723_v6 }
 0x60b   :  { %2739 = vmatpush1.msra.mxu1 %v6454_v16  ;;  %v6717_v16 = vld [vmem:[%s7450_s1 + $0xf0] sm:$0xff] }
 0x60c   :  { %2501 = vmatmul.mubr.f32.gmra.mxu1 %v6521_v54  ;;  %2740 = vmatprep.subr.mxu1 %v7793_v30  ;;  %8017 = vst [vmem:[#allocation12_spill] sm:$0xff] %v6717_v16 }
 0x60d   :  { %4170 = vmatprep.mubr.msk.f32.mxu1 %vm216_vm0, %v6528_v8  ;;  %2741 = vmatpush1.msra.mxu1 %v6458_v22  ;;  %v6710_v22 = vld [vmem:[%s7450_s1 + $0xf8] sm:$0xff] }
 0x60e   :  { %2742 = vmatprep.subr.mxu1 %v7793_v30  ;;  %8016 = vst [vmem:[#allocation53_spill] sm:$0xff] %v6710_v22 }
 0x60f   :  { %2743 = vmatpush1.msra.mxu1 %v6404_v15  ;;  %v6704_v15 = vld [vmem:[%s7450_s1 + $0xe0] sm:$0xff] }
 0x610   :  { %2506 = vmatmul.mubr.f32.gmra.mxu1 %v6538_v60  ;;  %2744 = vmatprep.subr.mxu1 %v7793_v30  ;;  %8015 = vst [vmem:[#allocation57_spill] sm:$0xff] %v6704_v15 }
 0x611   :  { %4171 = vmatprep.mubr.msk.f32.mxu1 %vm216_vm0, %v6545_v37  ;;  %2745 = vmatpush1.msra.mxu1 %v6408_v35  ;;  %v6697_v35 = vld [vmem:[%s7450_s1 + $0xe8] sm:$0xff] }
 0x612   :  { %2746 = vmatprep.subr.mxu1 %v7793_v30  ;;  %8014 = vst [vmem:[#allocation63_spill] sm:$0xff] %v6697_v35 }
 0x613   :  { %2747 = vmatpush1.msra.mxu1 %v7968_v57  ;;  %v6602_v57 = vld [vmem:[#allocation2 + $0x260] sm:$0xff] }
 0x614   :  { %2511 = vmatmul.mubr.f32.gmra.mxu1 %v6555_v21  ;;  %2748 = vmatprep.subr.mxu1 %v7793_v30  ;;  %7998 = vst [vmem:[#allocation38_spill] sm:$0xff] %v6602_v57 }
 0x615   :  { %4172 = vmatprep.mubr.msk.f32.mxu1 %vm216_vm0, %v6562_v26  ;;  %2749 = vmatpush1.msra.mxu1 %v7969_v50  ;;  %v6608_v50 = vld [vmem:[%s7450_s1 + $0x80] sm:$0xff] }
 0x616   :  { %2750 = vmatprep.subr.mxu1 %v7793_v30  ;;  %7999 = vst [vmem:[#allocation39_spill] sm:$0xff] %v6608_v50 }
 0x617   :  { %2751 = vmatpush1.msra.mxu1 %v7970_v14  ;;  %v6612_v14 = vld [vmem:[#allocation2 + $0x258] sm:$0xff] }
 0x618   :  { %2516 = vmatmul.mubr.f32.gmra.mxu1 %v6572_v52  ;;  %2752 = vmatprep.subr.mxu1 %v7793_v30  ;;  %8000 = vst [vmem:[#allocation40_spill] sm:$0xff] %v6612_v14 }
 0x619   :  { %4173 = vmatprep.mubr.msk.f32.mxu1 %vm216_vm0, %v6579_v3  ;;  %2753 = vmatpush1.msra.mxu1 %v7971_v61  ;;  %v6617_v61 = vld [vmem:[%s7450_s1 + $0x98] sm:$0xff] }
 0x61a   :  { %2754 = vmatprep.subr.mxu1 %v7793_v30  ;;  %8001 = vst [vmem:[#allocation41_spill] sm:$0xff] %v6617_v61 }
 0x61b   :  { %2755 = vmatpush1.msra.mxu1 %v7972_v12  ;;  %v6623_v12 = vld [vmem:[#allocation2 + $0x250] sm:$0xff] }
 0x61c   :  { %2521 = vmatmul.mubr.f32.gmra.mxu1 %v6589_v17  ;;  %2756 = vmatprep.subr.mxu1 %v7793_v30  ;;  %8002 = vst [vmem:[#allocation42_spill] sm:$0xff] %v6623_v12 }
 0x61d   :  { %4174 = vmatprep.mubr.msk.f32.mxu1 %vm216_vm0, %v6596_v1  ;;  %2757 = vmatpush1.msra.mxu1 %v7973_v5  ;;  %v6629_v5 = vld [vmem:[%s7450_s1 + $0x90] sm:$0xff] }
 0x61e   :  { %2758 = vmatprep.subr.mxu1 %v7793_v30  ;;  %8003 = vst [vmem:[#allocation43_spill] sm:$0xff] %v6629_v5 }
 0x61f   :  { %2759 = vmatpush1.msra.mxu1 %v7974_v46  ;;  %v6633_v46 = vld [vmem:[#allocation2 + $0x248] sm:$0xff] }
 0x620   :  { %2526 = vmatmul.mubr.f32.gmra.mxu1 %v6608_v50  ;;  %2782 = vmatprep.subr.mxu1 %v7793_v30  ;;  %8004 = vst [vmem:[#allocation44_spill] sm:$0xff] %v6633_v46 }
 0x621   :  { %4175 = vmatprep.mubr.msk.f32.mxu1 %vm216_vm0, %v6617_v61  ;;  %2783 = vmatpush2.msra.mxu1 %v6602_v57  ;;  %v6770_v57 = vld [vmem:[%s7450_s1 + $0x130] sm:$0xff] }
 0x622   :  { %2784 = vmatprep.subr.mxu1 %v7793_v30  ;;  %8025 = vst [vmem:[#allocation52_spill] sm:$0xff] %v6770_v57 }
 0x623   :  { %2785 = vmatpush2.msra.mxu1 %v6612_v14  ;;  %v6763_v14 = vld [vmem:[%s7450_s1 + $0x138] sm:$0xff] }
 0x624   :  { %2531 = vmatmul.mubr.f32.gmra.mxu1 %v6629_v5  ;;  %2786 = vmatprep.subr.mxu1 %v7793_v30  ;;  %8024 = vst [vmem:[#allocation56_spill] sm:$0xff] %v6763_v14 }
 0x625   :  { %4176 = vmatprep.mubr.msk.f32.mxu1 %vm216_vm0, %v6638_v44  ;;  %2787 = vmatpush2.msra.mxu1 %v6623_v12  ;;  %v6757_v12 = vld [vmem:[%s7450_s1 + $0x120] sm:$0xff] }
 0x626   :  { %2788 = vmatprep.subr.mxu1 %v7793_v30  ;;  %8023 = vst [vmem:[#allocation11_spill] sm:$0xff] %v6757_v12 }
 0x627   :  { %2789 = vmatpush2.msra.mxu1 %v6633_v46 }
 0x628   :  { %2536 = vmatmul.mubr.f32.gmra.mxu1 %v6650_v56  ;;  %2790 = vmatprep.subr.mxu1 %v7793_v30 }
 0x629   :  { %4177 = vmatprep.mubr.msk.f32.mxu1 %vm216_vm0, %v6657_v4  ;;  %2791 = vmatpush2.msra.mxu1 %v6644_v33 }
 0x62c   :  { %2541 = vmatmul.mubr.f32.gmra.mxu1 %v6665_v53 }
 0x62d   :  { %4178 = vmatprep.mubr.msk.f32.mxu1 %vm216_vm0, %v6671_v39 }
 0x630   :  { %2546 = vmatmul.mubr.f32.gmra.mxu1 %v6678_v63 }
 0x631   :  { %4179 = vmatprep.mubr.msk.f32.mxu1 %vm216_vm0, %v6684_v32 }
 0x634   :  { %2551 = vmatmul.mubr.f32.gmra.mxu1 %v6691_v47 }
 0x635   :  { %4180 = vmatprep.mubr.msk.f32.mxu1 %vm216_vm0, %v6697_v35 }
 0x638   :  { %2556 = vmatmul.mubr.f32.gmra.mxu1 %v6704_v15 }
 0x639   :  { %4181 = vmatprep.mubr.msk.f32.mxu1 %vm216_vm0, %v6710_v22 }
 0x63c   :  { %2561 = vmatmul.mubr.f32.gmra.mxu1 %v6717_v16 }
 0x63d   :  { %4182 = vmatprep.mubr.msk.f32.mxu1 %vm216_vm0, %v6723_v6 }
 0x640   :  { %2566 = vmatmul.mubr.f32.gmra.mxu1 %v6730_v51 }
 0x641   :  { %4183 = vmatprep.mubr.msk.f32.mxu1 %vm216_vm0, %v6736_v40 }
 0x644   :  { %2571 = vmatmul.mubr.f32.gmra.mxu1 %v6743_v28 }
 0x645   :  { %4184 = vmatprep.mubr.msk.f32.mxu1 %vm216_vm0, %v6749_v13 }
 0x646   :  { %v4447_v33 = vpop.f32.mrf.mxu1 }
 0x647   :  { %v2092_v46 = vadd.f32 %v4447_v33, %v6328_v45 }
 0x648   :  { %2576 = vmatmul.mubr.f32.gmra.mxu1 %v6757_v12 }
 0x649   :  { %4185 = vmatprep.mubr.msk.f32.mxu1 %vm216_vm0, %v6763_v14 }
 0x64c   :  { %2581 = vmatmul.mubr.f32.gmra.mxu1 %v6770_v57 }
 0x64d   :  { %4190 = vmatprep.mubr.msk.f32.mxu1 %vm216_vm0, %v6268_v41  ;;  %v6826_v41 = vpop.f32.mrf.mxu1 }
 0x64e   :  { %8026 = vst [vmem:[#allocation59_spill] sm:$0xff] %v6826_v41 }
 0x650   :  { %2793 = vmatmul.mubr.f32.vlgmr.msra.gmra.mxu1 %v6468_v55 }
 0x651   :  { %4191 = vmatprep.mubr.msk.f32.mxu1 %vm216_vm0, %v6477_v38 }
 0x654   :  { %2798 = vmatmul.mubr.f32.gmra.mxu1 %v6487_v29 }
 0x655   :  { %4192 = vmatprep.mubr.msk.f32.mxu1 %vm216_vm0, %v6494_v18 }
 0x658   :  { %2803 = vmatmul.mubr.f32.gmra.mxu1 %v6504_v0 }
 0x659   :  { %4193 = vmatprep.mubr.msk.f32.mxu1 %vm216_vm0, %v6511_v48 }
 0x65c   :  { %2808 = vmatmul.mubr.f32.gmra.mxu1 %v6521_v54 }
 0x65d   :  { %4194 = vmatprep.mubr.msk.f32.mxu1 %vm216_vm0, %v6528_v8 }
 0x660   :  { %2813 = vmatmul.mubr.f32.gmra.mxu1 %v6538_v60 }
 0x661   :  { %4195 = vmatprep.mubr.msk.f32.mxu1 %vm216_vm0, %v6545_v37 }
 0x664   :  { %2818 = vmatmul.mubr.f32.gmra.mxu1 %v6555_v21 }
 0x665   :  { %4196 = vmatprep.mubr.msk.f32.mxu1 %vm216_vm0, %v6562_v26 }
 0x668   :  { %2823 = vmatmul.mubr.f32.gmra.mxu1 %v6572_v52 }
 0x669   :  { %4197 = vmatprep.mubr.msk.f32.mxu1 %vm216_vm0, %v6579_v3 }
 0x66c   :  { %2828 = vmatmul.mubr.f32.gmra.mxu1 %v6589_v17 }
 0x66d   :  { %4198 = vmatprep.mubr.msk.f32.mxu1 %vm216_vm0, %v6596_v1 }
 0x670   :  { %2833 = vmatmul.mubr.f32.gmra.mxu1 %v6608_v50 }
 0x671   :  { %4199 = vmatprep.mubr.msk.f32.mxu1 %vm216_vm0, %v6617_v61 }
 0x674   :  { %2838 = vmatmul.mubr.f32.gmra.mxu1 %v6629_v5 }
 0x675   :  { %4200 = vmatprep.mubr.msk.f32.mxu1 %vm216_vm0, %v6638_v44 }
 0x678   :  { %2843 = vmatmul.mubr.f32.gmra.mxu1 %v6650_v56 }
 0x679   :  { %4201 = vmatprep.mubr.msk.f32.mxu1 %vm216_vm0, %v6657_v4 }
 0x67c   :  { %2848 = vmatmul.mubr.f32.gmra.mxu1 %v6665_v53 }
 0x67d   :  { %4202 = vmatprep.mubr.msk.f32.mxu1 %vm216_vm0, %v6671_v39 }
 0x680   :  { %2853 = vmatmul.mubr.f32.gmra.mxu1 %v6678_v63 }
 0x681   :  { %4203 = vmatprep.mubr.msk.f32.mxu1 %vm216_vm0, %v6684_v32 }
 0x684   :  { %2858 = vmatmul.mubr.f32.gmra.mxu1 %v6691_v47 }
 0x685   :  { %4204 = vmatprep.mubr.msk.f32.mxu1 %vm216_vm0, %v6697_v35 }
 0x688   :  { %2863 = vmatmul.mubr.f32.gmra.mxu1 %v6704_v15 }
 0x689   :  { %4205 = vmatprep.mubr.msk.f32.mxu1 %vm216_vm0, %v6710_v22 }
 0x68c   :  { %2868 = vmatmul.mubr.f32.gmra.mxu1 %v6717_v16 }
 0x68d   :  { %4206 = vmatprep.mubr.msk.f32.mxu1 %vm216_vm0, %v6723_v6 }
 0x690   :  { %2873 = vmatmul.mubr.f32.gmra.mxu1 %v6730_v51 }
 0x691   :  { %4207 = vmatprep.mubr.msk.f32.mxu1 %vm216_vm0, %v6736_v40  ;;  %v4186_v40 = vld [vmem:[%s7452_s3 + $0x70] sm:$0xff] }
 0x692   :  { %4471 = vmatprep.mubr.msk.f32.mxu0 %vm216_vm0, %v4186_v40 }
 0x694   :  { %2878 = vmatmul.mubr.f32.gmra.mxu1 %v6743_v28 }
 0x695   :  { %4208 = vmatprep.mubr.msk.f32.mxu1 %vm216_vm0, %v6749_v13 }
 0x696   :  { %v4460_v45 = vpop.f32.mrf.mxu1 }
 0x697   :  { %v6831_v33 = vadd.f32 %v4460_v45, %v2092_v46 }
 0x698   :  { %2883 = vmatmul.mubr.f32.gmra.mxu1 %v6757_v12  ;;  %v6841_v41 = vpop.f32.mrf.mxu1 }
 0x699   :  { %8027 = vst [vmem:[#allocation36_spill] sm:$0xff] %v6831_v33  ;;  %4209 = vmatprep.mubr.msk.f32.mxu1 %vm216_vm0, %v6763_v14  ;;  %8028 = vst [vmem:[#allocation16_spill] sm:$0xff] %v6841_v41 }
 0x69c   :  { %2888 = vmatmul.mubr.f32.gmra.mxu1 %v6770_v57 }
 0x6c0   :  { %v2487_v28 = vpop.f32.mrf.mxu1 }
 0x6c2   :  { %v2489_v13 = vpop.f32.mrf.mxu1 }
 0x6c4   :  { %v6843_v51 = vpop.f32.mrf.mxu1 }
 0x6c6   :  { %v2494_v46 = vpop.f32.mrf.mxu1 }
 0x6c8   :  { %v2497_v45 = vpop.f32.mrf.mxu1 }
 0x6ca   :  { %v2499_v12 = vpop.f32.mrf.mxu1 }
 0x6cc   :  { %v2502_v33 = vpop.f32.mrf.mxu1 }
 0x6ce   :  { %v2504_v6 = vpop.f32.mrf.mxu1 }
 0x6d0   :  { %v2507_v14 = vpop.f32.mrf.mxu1 }
 0x6d2   :  { %v2509_v16 = vpop.f32.mrf.mxu1 }
 0x6d4   :  { %v2512_v57 = vpop.f32.mrf.mxu1 }
 0x6d6   :  { %v2514_v22 = vpop.f32.mrf.mxu1 }
 0x6d8   :  { %v2517_v15 = vpop.f32.mrf.mxu1 }
 0x6da   :  { %v2519_v35 = vpop.f32.mrf.mxu1 }
 0x6db   :  { %v2488_v35 = vadd.f32 %v2487_v28, %v7839_v19 }
 0x6dc   :  { %v2522_v47 = vpop.f32.mrf.mxu1 }
 0x6de   :  { %v2524_v32 = vpop.f32.mrf.mxu1 }
 0x6df   :  { %v2513_v32 = vadd.f32 %v2512_v57, %v7840_v42 }
 0x6e0   :  { %v2527_v40 = vpop.f32.mrf.mxu1 }
 0x6e1   :  { %v2591_v1 = vmax.f32 %v2513_v32, 0.0 }
 0x6e2   :  { %v2529_v63 = vpop.f32.mrf.mxu1 }
 0x6e4   :  { %v2532_v41 = vpop.f32.mrf.mxu1 }
 0x6e6   :  { %v2534_v39 = vpop.f32.mrf.mxu1 }
 0x6e8   :  { %v2537_v13 = vpop.f32.mrf.mxu1 }
 0x6e9   :  { %v2538_v16 = vadd.f32 %v2537_v13, %v7838_v27 }
 0x6ea   :  { %v2539_v53 = vpop.f32.mrf.mxu1 }
 0x6eb   :  { %v2596_v63 = vmax.f32 %v2538_v16, 0.0  ;;  %v2586_v53 = vmax.f32 %v2488_v35, 0.0  ;;  %v2508_v16 = vadd.f32 %v2507_v14, %v5221_v49 }
 0x6ec   :  { %v2542_v4 = vpop.f32.mrf.mxu1 }
 0x6ee   :  { %v2544_v46 = vpop.f32.mrf.mxu1 }
 0x6f0   :  { %v2547_v56 = vpop.f32.mrf.mxu1 }
 0x6f2   :  { %v2549_v12 = vpop.f32.mrf.mxu1 }
 0x6f3   :  { %v2606_v12 = vmax.f32 %v2586_v53, %v2596_v63  ;;  %v2503_v63 = vadd.f32 %v2502_v33, %v7843_v24 }
 0x6f4   :  { %v2552_v44 = vpop.f32.mrf.mxu1 }
 0x6f5   :  { %v2553_v32 = vadd.f32 %v2552_v44, %v5247_v34  ;;  %v2518_v44 = vadd.f32 %v2517_v15, %v7901_v25 }
 0x6f6   :  { %v2554_v6 = vpop.f32.mrf.mxu1 }
 0x6f7   :  { %v2599_v33 = vmax.f32 %v2553_v32, 0.0 }
 0x6f8   :  { %v2557_v5 = vpop.f32.mrf.mxu1 }
 0x6f9   :  { %v2558_v28 = vadd.f32 %v2557_v5, %v5229_v2  ;;  %v2548_v5 = vadd.f32 %v2547_v56, %v7845_v23  ;;  %v2493_v56 = vadd.f32 %v6843_v51, %v7849_v59 }
 0x6fa   :  { %v2559_v22 = vpop.f32.mrf.mxu1 }
 0x6fb   :  { %v2600_v53 = vmax.f32 %v2558_v28, 0.0  ;;  %v2589_v28 = vmax.f32 %v2503_v63, 0.0 }
 0x6fc   :  { %v2562_v61 = vpop.f32.mrf.mxu1 }
 0x6fd   :  { %v2563_v39 = vadd.f32 %v2562_v61, %v5315_v31  ;;  %v2533_v61 = vadd.f32 %v2532_v41, %v5227_v62  ;;  %v2609_v60 = vmax.f32 %v2589_v28, %v2599_v33 }
 0x6fe   :  { %v2564_v50 = vpop.f32.mrf.mxu1 }
 0x6ff   :  { %v2601_v46 = vmax.f32 %v2563_v39, 0.0  ;;  %v2528_v50 = vadd.f32 %v2527_v40, %v5249_v7  ;;  %v2523_v39 = vadd.f32 %v2522_v47, %v7844_v9 }
 0x700   :  { %v2567_v17 = vpop.f32.mrf.mxu1 }
 0x701   :  { %v2611_v3 = vmax.f32 %v2591_v1, %v2601_v46  ;;  %v2568_v14 = vadd.f32 %v2567_v17, %v7846_v43  ;;  %v2590_v46 = vmax.f32 %v2508_v16, 0.0  ;;  %v2598_v17 = vmax.f32 %v2548_v5, 0.0 }
 0x702   :  { %v2569_v6 = vpop.f32.mrf.mxu1 }
 0x703   :  { %v6849_v52 = vmax.f32 %v2606_v12, %v2611_v3  ;;  %v2498_v3 = vadd.f32 %v2497_v45, %v7842_v10  ;;  %v2594_v12 = vmax.f32 %v2528_v50, 0.0  ;;  %v2595_v6 = vmax.f32 %v2533_v61, 0.0 }
 0x704   :  { %v2572_v13 = vpop.f32.mrf.mxu1  ;;  %v2543_v45 = vadd.f32 %v2542_v4, %v7848_v36  ;;  %v2610_v21 = vmax.f32 %v2590_v46, %v2600_v53  ;;  %v2592_v50 = vmax.f32 %v2518_v44, 0.0 }
 0x705   :  { %v2573_v1 = vadd.f32 %v2572_v13, %v7841_v20  ;;  %v2588_v15 = vmax.f32 %v2498_v3, 0.0 }
 0x706   :  { %v2574_v22 = vpop.f32.mrf.mxu1 }
 0x707   :  { %v2603_v22 = vmax.f32 %v2573_v1, 0.0  ;;  %v2608_v8 = vmax.f32 %v2588_v15, %v2598_v17 }
 0x708   :  { %v2577_v26 = vpop.f32.mrf.mxu1 }
 0x709   :  { %v2578_v57 = vadd.f32 %v2577_v26, %v5257_v58 }
 0x70a   :  { %v2579_v35 = vpop.f32.mrf.mxu1 }
 0x70b   :  { %v2604_v40 = vmax.f32 %v2578_v57, 0.0  ;;  %v2593_v35 = vmax.f32 %v2523_v39, 0.0 }
 0x70c   :  { %v2582_v26 = vpop.f32.mrf.mxu1 }
 0x70d   :  { %v2583_v41 = vadd.f32 %v2582_v26, %v7900_v11  ;;  %v2602_v26 = vmax.f32 %v2568_v14, 0.0  ;;  %v2614_v16 = vmax.f32 %v2594_v12, %v2604_v40  ;;  %v2613_v4 = vmax.f32 %v2593_v35, %v2603_v22 }
 0x70e   :  { %v2584_v13 = vpop.f32.mrf.mxu1 }
 0x70f   :  { %v2605_v47 = vmax.f32 %v2583_v41, 0.0  ;;  %v2597_v13 = vmax.f32 %v2543_v45, 0.0  ;;  %v2587_v41 = vmax.f32 %v2493_v56, 0.0  ;;  %v2612_v51 = vmax.f32 %v2592_v50, %v2602_v26 }
 0x710   :  { %v2794_v57 = vpop.f32.mrf.mxu1  ;;  %v2619_v63 = vmax.f32 %v2609_v60, %v2614_v16  ;;  %v2618_v53 = vmax.f32 %v2608_v8, %v2613_v4  ;;  %v4210_v8 = vld [vmem:[%s7452_s3 + $0x80] sm:$0xff] }
 0x711   :  { %v2615_v37 = vmax.f32 %v2595_v6, %v2605_v47  ;;  %v2607_v5 = vmax.f32 %v2587_v41, %v2597_v13 }
 0x712   :  { %v2796_v61 = vpop.f32.mrf.mxu1 }
 0x713   :  { %v2620_v32 = vmax.f32 %v2610_v21, %v2615_v37  ;;  %v2617_v14 = vmax.f32 %v2607_v5, %v2612_v51  ;;  %v4187_v21 = vld [vmem:[%s7452_s3 + $0x78] sm:$0x3] }
 0x714   :  { %v6868_v1 = vpop.f32.mrf.mxu1 }
 0x715   :  { %4461 = vmatprep.subr.mxu0 %v2620_v32 }
 0x716   :  { %4462 = vmatpush3.msra.mxu0 %v2620_v32  ;;  %v2801_v39 = vpop.f32.mrf.mxu1 }
 0x717   :  { %4463 = vmatprep.subr.mxu0 %v2619_v63 }
 0x718   :  { %4464 = vmatpush3.msra.mxu0 %v2619_v63  ;;  %v6870_v3 = vpop.f32.mrf.mxu1  ;;  %v2795_v63 = vadd.f32 %v2794_v57, %v7839_v19 }
 0x719   :  { %4465 = vmatprep.subr.mxu0 %v2618_v53 }
 0x71a   :  { %4466 = vmatpush3.msra.mxu0 %v2618_v53  ;;  %v2806_v40 = vpop.f32.mrf.mxu1 }
 0x71b   :  { %4467 = vmatprep.subr.mxu0 %v2617_v14 }
 0x71c   :  { %4468 = vmatpush3.msra.mxu0 %v2617_v14  ;;  %v2809_v37 = vpop.f32.mrf.mxu1 }
 0x71d   :  { %4469 = vmatprep.subr.mxu0 %v6849_v52 }
 0x71e   :  { %4470 = vmatpush3.msra.mxu0 %v6849_v52  ;;  %v2811_v60 = vpop.f32.mrf.mxu1 }
 0x71f   :  { %4472 = vmatmul.mubr.msk.f32.vlgmr.msra.gmra.mxu0 %vm216_vm0, %v4187_v21  ;;  %v2893_v21 = vmax.f32 %v2795_v63, 0.0 }
 0x720   :  { %v2814_v46 = vpop.f32.mrf.mxu1  ;;  %4484 = vmatprep.mubr.msk.f32.mxu0 %vm216_vm0, %v4210_v8 }
 0x722   :  { %v2816_v44 = vpop.f32.mrf.mxu1 }
 0x724   :  { %v2819_v12 = vpop.f32.mrf.mxu1 }
 0x725   :  { %v2820_v39 = vadd.f32 %v2819_v12, %v7840_v42 }
 0x726   :  { %v2821_v6 = vpop.f32.mrf.mxu1 }
 0x727   :  { %v2898_v8 = vmax.f32 %v2820_v39, 0.0  ;;  %v2805_v39 = vadd.f32 %v6870_v3, %v7842_v10 }
 0x728   :  { %v2824_v45 = vpop.f32.mrf.mxu1 }
 0x72a   :  { %v2826_v33 = vpop.f32.mrf.mxu1 }
 0x72c   :  { %v2829_v22 = vpop.f32.mrf.mxu1 }
 0x72e   :  { %v2831_v47 = vpop.f32.mrf.mxu1 }
 0x730   :  { %v2834_v56 = vpop.f32.mrf.mxu1 }
 0x732   :  { %v2836_v28 = vpop.f32.mrf.mxu1 }
 0x734   :  { %v2839_v35 = vpop.f32.mrf.mxu1 }
 0x736   :  { %v2841_v17 = vpop.f32.mrf.mxu1 }
 0x738   :  { %v2844_v26 = vpop.f32.mrf.mxu1 }
 0x739   :  { %v2845_v41 = vadd.f32 %v2844_v26, %v7838_v27 }
 0x73a   :  { %v2846_v16 = vpop.f32.mrf.mxu1 }
 0x73b   :  { %v2903_v53 = vmax.f32 %v2845_v41, 0.0 }
 0x73c   :  { %v2849_v52 = vpop.f32.mrf.mxu1 }
 0x73d   :  { %v2913_v6 = vmax.f32 %v2893_v21, %v2903_v53  ;;  %v2850_v3 = vadd.f32 %v2849_v52, %v7848_v36 }
 0x73e   :  { %v2851_v15 = vpop.f32.mrf.mxu1 }
 0x73f   :  { %v2815_v15 = vadd.f32 %v2814_v46, %v5221_v49 }
 0x740   :  { %v2854_v50 = vpop.f32.mrf.mxu1 }
 0x741   :  { %v2855_v53 = vadd.f32 %v2854_v50, %v7845_v23  ;;  %v2897_v21 = vmax.f32 %v2815_v15, 0.0  ;;  %v2800_v50 = vadd.f32 %v6868_v1, %v7849_v59  ;;  %v2895_v15 = vmax.f32 %v2805_v39, 0.0  ;;  %v4211_v39 = vld [vmem:[%s7452_s3 + $0x88] sm:$0x3] }
 0x742   :  { %v2856_v61 = vpop.f32.mrf.mxu1 }
 0x743   :  { %v2835_v61 = vadd.f32 %v2834_v56, %v5249_v7  ;;  %v2894_v52 = vmax.f32 %v2800_v50, 0.0  ;;  %v8042_v50 = vld [vmem:[#allocation25_spill] sm:$0xff] }
 0x744   :  { %v2859_v13 = vpop.f32.mrf.mxu1 }
 0x746   :  { %v2861_v4 = vpop.f32.mrf.mxu1 }
 0x747   :  { %v2840_v4 = vadd.f32 %v2839_v35, %v5227_v62 }
 0x748   :  { %v2864_v32 = vpop.f32.mrf.mxu1 }
 0x749   :  { %v2865_v57 = vadd.f32 %v2864_v32, %v5229_v2  ;;  %v2830_v32 = vadd.f32 %v2829_v22, %v7844_v9 }
 0x74a   :  { %v2866_v51 = vpop.f32.mrf.mxu1 }
 0x74b   :  { %v2860_v51 = vadd.f32 %v2859_v13, %v5247_v34  ;;  %v2907_v46 = vmax.f32 %v2865_v57, 0.0  ;;  %v2825_v13 = vadd.f32 %v2824_v45, %v7901_v25 }
 0x74c   :  { %v2869_v5 = vpop.f32.mrf.mxu1 }
 0x74d   :  { %v2870_v14 = vadd.f32 %v2869_v5, %v5315_v31  ;;  %v2810_v5 = vadd.f32 %v2809_v37, %v7843_v24  ;;  %v2906_v37 = vmax.f32 %v2860_v51, 0.0  ;;  %v2899_v45 = vmax.f32 %v2825_v13, 0.0  ;;  %v8034_v13 = vld [vmem:[#allocation44_spill] sm:$0xff] }
 0x74e   :  { %v2871_v40 = vpop.f32.mrf.mxu1 }
 0x74f   :  { %v2908_v60 = vmax.f32 %v2870_v14, 0.0 }
 0x750   :  { %v2874_v44 = vpop.f32.mrf.mxu1 }
 0x751   :  { %v2918_v33 = vmax.f32 %v2898_v8, %v2908_v60  ;;  %v2875_v56 = vadd.f32 %v2874_v44, %v7846_v43  ;;  %v2901_v8 = vmax.f32 %v2835_v61, 0.0  ;;  %v2902_v60 = vmax.f32 %v2840_v4, 0.0 }
 0x752   :  { %v2876_v47 = vpop.f32.mrf.mxu1  ;;  %v2905_v44 = vmax.f32 %v2855_v53, 0.0  ;;  %v2904_v61 = vmax.f32 %v2850_v3, 0.0  ;;  %v6907_v53 = vld [vmem:[#allocation2 + $0x270] sm:$0xff]  ;;  %v8038_v3 = vld [vmem:[#allocation21_spill] sm:$0xff] }
 0x753   :  { %v2923_v28 = vmax.f32 %v2913_v6, %v2918_v33  ;;  %v2896_v47 = vmax.f32 %v2810_v5, 0.0  ;;  %8029 = vst [vmem:[#allocation61_spill] sm:$0xff] %v6907_v53 }
 0x754   :  { %v2879_v17 = vpop.f32.mrf.mxu1  ;;  %v2915_v51 = vmax.f32 %v2895_v15, %v2905_v44  ;;  %v2914_v1 = vmax.f32 %v2894_v52, %v2904_v61  ;;  %v8045_v44 = vld [vmem:[#allocation20_spill] sm:$0xff]  ;;  %v6970_v15 = vld [vmem:[#allocation2 + $0x2a8] sm:$0xff] }
 0x755   :  { %v2880_v63 = vadd.f32 %v2879_v17, %v7841_v20  ;;  %v2900_v17 = vmax.f32 %v2830_v32, 0.0  ;;  %v2916_v4 = vmax.f32 %v2896_v47, %v2906_v37  ;;  %v8039_v37 = vld [vmem:[#allocation22_spill] sm:$0xff]  ;;  %v8043_v47 = vld [vmem:[#allocation19_spill] sm:$0xff]  ;;  %v8052_v61 = vld [vmem:[#allocation28_spill] sm:$0xff] }
 0x756   :  { %v2881_v26 = vpop.f32.mrf.mxu1  ;;  %v8056_v52 = vld [vmem:[#allocation32_spill] sm:$0xff] }
 0x757   :  { %v2910_v33 = vmax.f32 %v2880_v63, 0.0  ;;  %v2917_v26 = vmax.f32 %v2897_v21, %v2907_v46  ;;  %v6911_v46 = vld [vmem:[#allocation2 + $0x268] sm:$0xff]  ;;  %v8033_v21 = vld [vmem:[#allocation42_spill] sm:$0xff] }
 0x758   :  { %v2884_v16 = vpop.f32.mrf.mxu1  ;;  %8030 = vst [vmem:[#allocation58_spill] sm:$0xff] %v6911_v46 }
 0x759   :  { %v2885_v12 = vadd.f32 %v2884_v16, %v5257_v58  ;;  %v2909_v16 = vmax.f32 %v2875_v56, 0.0  ;;  %v6917_v56 = vld [vmem:[%s7450_s1 + $0x8] sm:$0xff] }
 0x75a   :  { %v2886_v41 = vpop.f32.mrf.mxu1 }
 0x75b   :  { %v2911_v40 = vmax.f32 %v2885_v12, 0.0  ;;  %v2920_v41 = vmax.f32 %v2900_v17, %v2910_v33  ;;  %v2919_v63 = vmax.f32 %v2899_v45, %v2909_v16  ;;  %v8040_v33 = vld [vmem:[#allocation23_spill] sm:$0xff]  ;;  %v6958_v16 = vld [vmem:[#allocation2 + $0x288] sm:$0xff]  ;;  %v6975_v45 = vld [vmem:[#allocation2 + $0x2a0] sm:$0xff] }
 0x75c   :  { %v2889_v14 = vpop.f32.mrf.mxu1  ;;  %v6950_v17 = vld [vmem:[#allocation2 + $0x298] sm:$0xff]  ;;  %8047 = vst [vmem:[#allocation42_spill] sm:$0xff] %v6958_v16 }
 0x75d   :  { %v2890_v35 = vadd.f32 %v2889_v14, %v7900_v11  ;;  %v2921_v57 = vmax.f32 %v2901_v8, %v2911_v40  ;;  %v2925_v5 = vmax.f32 %v2915_v51, %v2920_v41  ;;  %v2924_v32 = vmax.f32 %v2914_v1, %v2919_v63  ;;  %v8032_v40 = vld [vmem:[#allocation40_spill] sm:$0xff]  ;;  %v8035_v8 = vld [vmem:[#allocation46_spill] sm:$0xff]  ;;  %v8057_v51 = vld [vmem:[#allocation33_spill] sm:$0xff] }
 0x75e   :  { %v2891_v6 = vpop.f32.mrf.mxu1  ;;  %v8054_v41 = vld [vmem:[#allocation30_spill] sm:$0xff]  ;;  %v8060_v1 = vld [vmem:[#allocation37_spill] sm:$0xff] }
 0x75f   :  { %v2912_v22 = vmax.f32 %v2890_v35, 0.0  ;;  %v2926_v35 = vmax.f32 %v2916_v4, %v2921_v57  ;;  %v8037_v6 = vld [vmem:[#allocation27_spill] sm:$0xff]  ;;  %v6962_v57 = vld [vmem:[#allocation2 + $0x280] sm:$0xff]  ;;  %v8053_v4 = vld [vmem:[#allocation29_spill] sm:$0xff] }
 0x760   :  { %8048 = vst [vmem:[#allocation44_spill] sm:$0xff] %v6962_v57  ;;  %8051 = vst [vmem:[#allocation27_spill] sm:$0xff] %v6975_v45  ;;  %v8058_v63 = vld [vmem:[#allocation34_spill] sm:$0xff] }
 0x761   :  { %v2922_v12 = vmax.f32 %v2902_v60, %v2912_v22  ;;  %v8036_v60 = vld [vmem:[#allocation26_spill] sm:$0xff]  ;;  %v8041_v22 = vld [vmem:[#allocation24_spill] sm:$0xff] }
 0x762   :  { %8050 = vst [vmem:[#allocation26_spill] sm:$0xff] %v6970_v15 }
 0x763   :  { %v2927_v14 = vmax.f32 %v2917_v26, %v2922_v12  ;;  %v6954_v26 = vld [vmem:[#allocation2 + $0x290] sm:$0xff]  ;;  %v6966_v12 = vld [vmem:[#allocation2 + $0x278] sm:$0xff] }
 0x764   :  { %8046 = vst [vmem:[#allocation40_spill] sm:$0xff] %v6954_v26  ;;  %8049 = vst [vmem:[#allocation46_spill] sm:$0xff] %v6966_v12 }
 0x765   :  { %4474 = vmatprep.subr.mxu0 %v2927_v14 }
 0x766   :  { %4475 = vmatpush3.msra.mxu0 %v2927_v14  ;;  %v8055_v14 = vld [vmem:[#allocation31_spill] sm:$0xff] }
 0x767   :  { %4476 = vmatprep.subr.mxu0 %v2926_v35 }
 0x768   :  { %4477 = vmatpush3.msra.mxu0 %v2926_v35  ;;  %v8059_v35 = vld [vmem:[#allocation35_spill] sm:$0xff] }
 0x769   :  { %4478 = vmatprep.subr.mxu0 %v2925_v5 }
 0x76a   :  { %4479 = vmatpush3.msra.mxu0 %v2925_v5  ;;  %v7030_v5 = vld [vmem:[#allocation2 + $0x2d0] sm:$0xff] }
 0x76b   :  { %4480 = vmatprep.subr.mxu0 %v2924_v32  ;;  %8061 = vst [vmem:[#allocation21_spill] sm:$0xff] %v7030_v5 }
 0x76c   :  { %4481 = vmatpush3.msra.mxu0 %v2924_v32  ;;  %v8062_v32 = vld [vmem:[#allocation39_spill] sm:$0xff] }
 0x76d   :  { %4482 = vmatprep.subr.mxu0 %v2923_v28 }
 0x76e   :  { %4483 = vmatpush3.msra.mxu0 %v2923_v28  ;;  %v8031_v28 = vld [vmem:[#allocation38_spill] sm:$0xff] }
 0x76f   :  { %4485 = vmatmul.mubr.msk.f32.vlgmr.msra.gmra.mxu0 %vm216_vm0, %v4211_v39  ;;  %3035 = vmatprep.subr.mxu0 %v7793_v30  ;;  %8044 = vst [vmem:[#allocation38_spill] sm:$0xff] %v6950_v17  ;;  %v7035_v39 = vld [vmem:[#allocation2 + $0x2c8] sm:$0xff] }
 0x770   :  { %3036 = vmatpush1.msra.mxu0 %v6907_v53  ;;  %4214 = vmatprep.mubr.msk.f32.mxu0 %vm216_vm0, %v6917_v56  ;;  %8063 = vst [vmem:[#allocation22_spill] sm:$0xff] %v7035_v39 }
 0x771   :  { %3037 = vmatprep.subr.mxu0 %v7793_v30 }
 0x772   :  { %3038 = vmatpush1.msra.mxu0 %v6911_v46 }
 0x773   :  { %3039 = vmatprep.subr.mxu0 %v7793_v30 }
 0x774   :  { %3040 = vmatpush1.msra.mxu0 %v8031_v28 }
 0x775   :  { %3041 = vmatprep.subr.mxu0 %v7793_v30 }
 0x776   :  { %3042 = vmatpush1.msra.mxu0 %v8032_v40 }
 0x777   :  { %3043 = vmatprep.subr.mxu0 %v7793_v30 }
 0x778   :  { %3044 = vmatpush1.msra.mxu0 %v8033_v21 }
 0x779   :  { %3045 = vmatprep.subr.mxu0 %v7793_v30 }
 0x77a   :  { %3046 = vmatpush1.msra.mxu0 %v8034_v13 }
 0x77b   :  { %3047 = vmatprep.subr.mxu0 %v7793_v30 }
 0x77c   :  { %3048 = vmatpush1.msra.mxu0 %v8035_v8 }
 0x77d   :  { %3049 = vmatprep.subr.mxu0 %v7793_v30 }
 0x77e   :  { %3050 = vmatpush1.msra.mxu0 %v8036_v60 }
 0x77f   :  { %3051 = vmatprep.subr.mxu0 %v7793_v30 }
 0x780   :  { %3052 = vmatpush1.msra.mxu0 %v8037_v6 }
 0x781   :  { %3053 = vmatprep.subr.mxu0 %v7793_v30 }
 0x782   :  { %3054 = vmatpush1.msra.mxu0 %v8038_v3  ;;  %v8071_v3 = vld [vmem:[#allocation48_spill] sm:$0xff] }
 0x783   :  { %3055 = vmatprep.subr.mxu0 %v7793_v30 }
 0x784   :  { %3056 = vmatpush1.msra.mxu0 %v8039_v37  ;;  %v8072_v37 = vld [vmem:[#allocation49_spill] sm:$0xff] }
 0x785   :  { %3057 = vmatprep.subr.mxu0 %v7793_v30 }
 0x786   :  { %3058 = vmatpush1.msra.mxu0 %v8040_v33  ;;  %v8073_v33 = vld [vmem:[#allocation50_spill] sm:$0xff] }
 0x787   :  { %3059 = vmatprep.subr.mxu0 %v7793_v30 }
 0x788   :  { %3060 = vmatpush1.msra.mxu0 %v8041_v22  ;;  %v8074_v22 = vld [vmem:[#allocation62_spill] sm:$0xff] }
 0x789   :  { %3061 = vmatprep.subr.mxu0 %v7793_v30 }
 0x78a   :  { %3062 = vmatpush1.msra.mxu0 %v8042_v50  ;;  %v8075_v50 = vld [vmem:[#allocation60_spill] sm:$0xff] }
 0x78b   :  { %3063 = vmatprep.subr.mxu0 %v7793_v30 }
 0x78c   :  { %3064 = vmatpush1.msra.mxu0 %v8043_v47  ;;  %v8076_v47 = vld [vmem:[#allocation55_spill] sm:$0xff] }
 0x78d   :  { %3065 = vmatprep.subr.mxu0 %v7793_v30 }
 0x78e   :  { %3066 = vmatpush1.msra.mxu0 %v8045_v44  ;;  %v8077_v44 = vld [vmem:[#allocation63_spill] sm:$0xff] }
 0x78f   :  { %3089 = vmatprep.subr.mxu0 %v7793_v30 }
 0x790   :  { %3090 = vmatpush2.msra.mxu0 %v6950_v17 }
 0x791   :  { %3091 = vmatprep.subr.mxu0 %v7793_v30 }
 0x792   :  { %3092 = vmatpush2.msra.mxu0 %v6954_v26 }
 0x793   :  { %3093 = vmatprep.subr.mxu0 %v7793_v30 }
 0x794   :  { %3094 = vmatpush2.msra.mxu0 %v6958_v16 }
 0x795   :  { %3095 = vmatprep.subr.mxu0 %v7793_v30 }
 0x796   :  { %3096 = vmatpush2.msra.mxu0 %v6962_v57 }
 0x797   :  { %3097 = vmatprep.subr.mxu0 %v7793_v30 }
 0x798   :  { %3098 = vmatpush2.msra.mxu0 %v6966_v12 }
 0x799   :  { %3100 = vmatmul.mubr.f32.vlgmr.msra.gmra.mxu0 %v6468_v55  ;;  %3342 = vmatprep.subr.mxu0 %v7793_v30 }
 0x79a   :  { %4215 = vmatprep.mubr.msk.f32.mxu0 %vm216_vm0, %v6477_v38  ;;  %3343 = vmatpush1.msra.mxu0 %v6970_v15 }
 0x79b   :  { %3344 = vmatprep.subr.mxu0 %v7793_v30 }
 0x79c   :  { %3345 = vmatpush1.msra.mxu0 %v6975_v45  ;;  %v8085_v45 = vld [vmem:[#allocation17_spill] sm:$0xff] }
 0x79d   :  { %3105 = vmatmul.mubr.f32.gmra.mxu0 %v6487_v29  ;;  %3346 = vmatprep.subr.mxu0 %v7793_v30 }
 0x79e   :  { %4216 = vmatprep.mubr.msk.f32.mxu0 %vm216_vm0, %v6494_v18  ;;  %3347 = vmatpush1.msra.mxu0 %v6950_v17  ;;  %v8084_v17 = vld [vmem:[#allocation9_spill] sm:$0xff] }
 0x79f   :  { %3348 = vmatprep.subr.mxu0 %v7793_v30 }
 0x7a0   :  { %3349 = vmatpush1.msra.mxu0 %v6954_v26  ;;  %v8083_v26 = vld [vmem:[#allocation15_spill] sm:$0xff] }
 0x7a1   :  { %3110 = vmatmul.mubr.f32.gmra.mxu0 %v6504_v0  ;;  %3350 = vmatprep.subr.mxu0 %v7793_v30 }
 0x7a2   :  { %4217 = vmatprep.mubr.msk.f32.mxu0 %vm216_vm0, %v6511_v48  ;;  %3351 = vmatpush1.msra.mxu0 %v6958_v16  ;;  %v8082_v16 = vld [vmem:[#allocation14_spill] sm:$0xff] }
 0x7a3   :  { %3352 = vmatprep.subr.mxu0 %v7793_v30 }
 0x7a4   :  { %3353 = vmatpush1.msra.mxu0 %v6962_v57  ;;  %v8081_v57 = vld [vmem:[#allocation13_spill] sm:$0xff] }
 0x7a5   :  { %3115 = vmatmul.mubr.f32.gmra.mxu0 %v6521_v54  ;;  %3354 = vmatprep.subr.mxu0 %v7793_v30 }
 0x7a6   :  { %4218 = vmatprep.mubr.msk.f32.mxu0 %vm216_vm0, %v8052_v61  ;;  %3355 = vmatpush1.msra.mxu0 %v6966_v12  ;;  %v8080_v12 = vld [vmem:[#allocation12_spill] sm:$0xff] }
 0x7a7   :  { %3356 = vmatprep.subr.mxu0 %v7793_v30 }
 0x7a8   :  { %3357 = vmatpush1.msra.mxu0 %v6907_v53  ;;  %v8079_v53 = vld [vmem:[#allocation53_spill] sm:$0xff] }
 0x7a9   :  { %3120 = vmatmul.mubr.f32.gmra.mxu0 %v8053_v4  ;;  %3358 = vmatprep.subr.mxu0 %v7793_v30 }
 0x7aa   :  { %4219 = vmatprep.mubr.msk.f32.mxu0 %vm216_vm0, %v8054_v41  ;;  %3359 = vmatpush1.msra.mxu0 %v6911_v46  ;;  %v8078_v46 = vld [vmem:[#allocation57_spill] sm:$0xff] }
 0x7ab   :  { %3360 = vmatprep.subr.mxu0 %v7793_v30 }
 0x7ac   :  { %3361 = vmatpush1.msra.mxu0 %v8031_v28  ;;  %v8064_v28 = vld [vmem:[#allocation41_spill] sm:$0xff] }
 0x7ad   :  { %3125 = vmatmul.mubr.f32.gmra.mxu0 %v8055_v14  ;;  %3362 = vmatprep.subr.mxu0 %v7793_v30 }
 0x7ae   :  { %4220 = vmatprep.mubr.msk.f32.mxu0 %vm216_vm0, %v8056_v52  ;;  %3363 = vmatpush1.msra.mxu0 %v8032_v40  ;;  %v7041_v40 = vld [vmem:[#allocation2 + $0x2c0] sm:$0xff] }
 0x7af   :  { %3364 = vmatprep.subr.mxu0 %v7793_v30  ;;  %8065 = vst [vmem:[#allocation23_spill] sm:$0xff] %v7041_v40 }
 0x7b0   :  { %3365 = vmatpush1.msra.mxu0 %v8033_v21  ;;  %v8066_v21 = vld [vmem:[#allocation43_spill] sm:$0xff] }
 0x7b1   :  { %3130 = vmatmul.mubr.f32.gmra.mxu0 %v8057_v51  ;;  %3366 = vmatprep.subr.mxu0 %v7793_v30 }
 0x7b2   :  { %4221 = vmatprep.mubr.msk.f32.mxu0 %vm216_vm0, %v8058_v63  ;;  %3367 = vmatpush1.msra.mxu0 %v8034_v13  ;;  %v7046_v13 = vld [vmem:[#allocation2 + $0x2b8] sm:$0xff] }
 0x7b3   :  { %3368 = vmatprep.subr.mxu0 %v7793_v30  ;;  %8067 = vst [vmem:[#allocation24_spill] sm:$0xff] %v7046_v13 }
 0x7b4   :  { %3369 = vmatpush1.msra.mxu0 %v8035_v8  ;;  %v8068_v8 = vld [vmem:[#allocation45_spill] sm:$0xff] }
 0x7b5   :  { %3135 = vmatmul.mubr.f32.gmra.mxu0 %v8059_v35  ;;  %3370 = vmatprep.subr.mxu0 %v7793_v30 }
 0x7b6   :  { %4222 = vmatprep.mubr.msk.f32.mxu0 %vm216_vm0, %v8060_v1  ;;  %3371 = vmatpush1.msra.mxu0 %v8036_v60  ;;  %v7052_v60 = vld [vmem:[#allocation2 + $0x2b0] sm:$0xff] }
 0x7b7   :  { %3372 = vmatprep.subr.mxu0 %v7793_v30  ;;  %8069 = vst [vmem:[#allocation25_spill] sm:$0xff] %v7052_v60 }
 0x7b8   :  { %3373 = vmatpush1.msra.mxu0 %v8037_v6  ;;  %v8070_v6 = vld [vmem:[#allocation47_spill] sm:$0xff] }
 0x7b9   :  { %3140 = vmatmul.mubr.f32.gmra.mxu0 %v8062_v32  ;;  %3396 = vmatprep.subr.mxu0 %v7793_v30 }
 0x7ba   :  { %4223 = vmatprep.mubr.msk.f32.mxu0 %vm216_vm0, %v8064_v28  ;;  %3397 = vmatpush2.msra.mxu0 %v7030_v5  ;;  %v8089_v5 = vld [vmem:[#allocation52_spill] sm:$0xff] }
 0x7bb   :  { %3398 = vmatprep.subr.mxu0 %v7793_v30 }
 0x7bc   :  { %3399 = vmatpush2.msra.mxu0 %v7035_v39  ;;  %v8088_v39 = vld [vmem:[#allocation56_spill] sm:$0xff] }
 0x7bd   :  { %3145 = vmatmul.mubr.f32.gmra.mxu0 %v8066_v21  ;;  %3400 = vmatprep.subr.mxu0 %v7793_v30 }
 0x7be   :  { %4224 = vmatprep.mubr.msk.f32.mxu0 %vm216_vm0, %v8068_v8  ;;  %3401 = vmatpush2.msra.mxu0 %v7041_v40  ;;  %v8087_v40 = vld [vmem:[#allocation11_spill] sm:$0xff] }
 0x7bf   :  { %3402 = vmatprep.subr.mxu0 %v7793_v30 }
 0x7c0   :  { %3403 = vmatpush2.msra.mxu0 %v7046_v13 }
 0x7c1   :  { %3150 = vmatmul.mubr.f32.gmra.mxu0 %v8070_v6  ;;  %3404 = vmatprep.subr.mxu0 %v7793_v30 }
 0x7c2   :  { %4225 = vmatprep.mubr.msk.f32.mxu0 %vm216_vm0, %v8071_v3  ;;  %3405 = vmatpush2.msra.mxu0 %v7052_v60  ;;  %v8086_v60 = vld [vmem:[#allocation36_spill] sm:$0xff] }
 0x7c5   :  { %3155 = vmatmul.mubr.f32.gmra.mxu0 %v8072_v37 }
 0x7c6   :  { %4226 = vmatprep.mubr.msk.f32.mxu0 %vm216_vm0, %v8073_v33 }
 0x7c9   :  { %3160 = vmatmul.mubr.f32.gmra.mxu0 %v8074_v22 }
 0x7ca   :  { %4227 = vmatprep.mubr.msk.f32.mxu0 %vm216_vm0, %v8075_v50 }
 0x7cd   :  { %3165 = vmatmul.mubr.f32.gmra.mxu0 %v8076_v47 }
 0x7ce   :  { %4228 = vmatprep.mubr.msk.f32.mxu0 %vm216_vm0, %v8077_v44 }
 0x7d1   :  { %3170 = vmatmul.mubr.f32.gmra.mxu0 %v8078_v46 }
 0x7d2   :  { %4229 = vmatprep.mubr.msk.f32.mxu0 %vm216_vm0, %v8079_v53 }
 0x7d5   :  { %3175 = vmatmul.mubr.f32.gmra.mxu0 %v8080_v12 }
 0x7d6   :  { %4230 = vmatprep.mubr.msk.f32.mxu0 %vm216_vm0, %v8081_v57 }
 0x7d9   :  { %3180 = vmatmul.mubr.f32.gmra.mxu0 %v8082_v16 }
 0x7da   :  { %4231 = vmatprep.mubr.msk.f32.mxu0 %vm216_vm0, %v8083_v26 }
 0x7dd   :  { %3185 = vmatmul.mubr.f32.gmra.mxu0 %v8084_v17 }
 0x7de   :  { %4232 = vmatprep.mubr.msk.f32.mxu0 %vm216_vm0, %v8085_v45 }
 0x7df   :  { %v4473_v15 = vpop.f32.mrf.mxu0 }
 0x7e0   :  { %v2706_v13 = vadd.f32 %v4473_v15, %v8086_v60 }
 0x7e1   :  { %3190 = vmatmul.mubr.f32.gmra.mxu0 %v8087_v40 }
 0x7e2   :  { %4233 = vmatprep.mubr.msk.f32.mxu0 %vm216_vm0, %v8088_v39 }
 0x7e5   :  { %3195 = vmatmul.mubr.f32.gmra.mxu0 %v8089_v5 }
 0x7e6   :  { %4238 = vmatprep.mubr.msk.f32.mxu0 %vm216_vm0, %v6917_v56 }
 0x7e9   :  { %3407 = vmatmul.mubr.f32.vlgmr.msra.gmra.mxu0 %v6468_v55  ;;  %v7139_v55 = vpop.f32.mrf.mxu0 }
 0x7ea   :  { %4239 = vmatprep.mubr.msk.f32.mxu0 %vm216_vm0, %v6477_v38 }
 0x7ed   :  { %3412 = vmatmul.mubr.f32.gmra.mxu0 %v6487_v29 }
 0x7ee   :  { %4240 = vmatprep.mubr.msk.f32.mxu0 %vm216_vm0, %v6494_v18  ;;  %v4234_v18 = vld [vmem:[%s7452_s3 + $0x90] sm:$0xff] }
 0x7ef   :  { %4497 = vmatprep.mubr.msk.f32.mxu1 %vm216_vm0, %v4234_v18 }
 0x7f1   :  { %3417 = vmatmul.mubr.f32.gmra.mxu0 %v6504_v0 }
 0x7f2   :  { %4241 = vmatprep.mubr.msk.f32.mxu0 %vm216_vm0, %v6511_v48 }
 0x7f5   :  { %3422 = vmatmul.mubr.f32.gmra.mxu0 %v6521_v54 }
 0x7f6   :  { %4242 = vmatprep.mubr.msk.f32.mxu0 %vm216_vm0, %v8052_v61 }
 0x7f9   :  { %3427 = vmatmul.mubr.f32.gmra.mxu0 %v8053_v4 }
 0x7fa   :  { %4243 = vmatprep.mubr.msk.f32.mxu0 %vm216_vm0, %v8054_v41 }
 0x7fd   :  { %3432 = vmatmul.mubr.f32.gmra.mxu0 %v8055_v14 }
 0x7fe   :  { %4244 = vmatprep.mubr.msk.f32.mxu0 %vm216_vm0, %v8056_v52 }
 0x801   :  { %3437 = vmatmul.mubr.f32.gmra.mxu0 %v8057_v51 }
 0x802   :  { %4245 = vmatprep.mubr.msk.f32.mxu0 %vm216_vm0, %v8058_v63 }
 0x805   :  { %3442 = vmatmul.mubr.f32.gmra.mxu0 %v8059_v35 }
 0x806   :  { %4246 = vmatprep.mubr.msk.f32.mxu0 %vm216_vm0, %v8060_v1 }
 0x809   :  { %3447 = vmatmul.mubr.f32.gmra.mxu0 %v8062_v32 }
 0x80a   :  { %4247 = vmatprep.mubr.msk.f32.mxu0 %vm216_vm0, %v8064_v28 }
 0x80d   :  { %3452 = vmatmul.mubr.f32.gmra.mxu0 %v8066_v21 }
 0x80e   :  { %4248 = vmatprep.mubr.msk.f32.mxu0 %vm216_vm0, %v8068_v8 }
 0x811   :  { %3457 = vmatmul.mubr.f32.gmra.mxu0 %v8070_v6 }
 0x812   :  { %4249 = vmatprep.mubr.msk.f32.mxu0 %vm216_vm0, %v8071_v3 }
 0x815   :  { %3462 = vmatmul.mubr.f32.gmra.mxu0 %v8072_v37 }
 0x816   :  { %4250 = vmatprep.mubr.msk.f32.mxu0 %vm216_vm0, %v8073_v33 }
 0x819   :  { %3467 = vmatmul.mubr.f32.gmra.mxu0 %v8074_v22 }
 0x81a   :  { %4251 = vmatprep.mubr.msk.f32.mxu0 %vm216_vm0, %v8075_v50 }
 0x81d   :  { %3472 = vmatmul.mubr.f32.gmra.mxu0 %v8076_v47 }
 0x81e   :  { %4252 = vmatprep.mubr.msk.f32.mxu0 %vm216_vm0, %v8077_v44 }
 0x821   :  { %3477 = vmatmul.mubr.f32.gmra.mxu0 %v8078_v46 }
 0x822   :  { %4253 = vmatprep.mubr.msk.f32.mxu0 %vm216_vm0, %v8079_v53 }
 0x825   :  { %3482 = vmatmul.mubr.f32.gmra.mxu0 %v8080_v12 }
 0x826   :  { %4254 = vmatprep.mubr.msk.f32.mxu0 %vm216_vm0, %v8081_v57 }
 0x829   :  { %3487 = vmatmul.mubr.f32.gmra.mxu0 %v8082_v16 }
 0x82a   :  { %4255 = vmatprep.mubr.msk.f32.mxu0 %vm216_vm0, %v8083_v26 }
 0x82d   :  { %3492 = vmatmul.mubr.f32.gmra.mxu0 %v8084_v17 }
 0x82e   :  { %4256 = vmatprep.mubr.msk.f32.mxu0 %vm216_vm0, %v8085_v45 }
 0x82f   :  { %v4486_v38 = vpop.f32.mrf.mxu0 }
 0x830   :  { %v7144_v29 = vadd.f32 %v4486_v38, %v2706_v13 }
 0x831   :  { %3497 = vmatmul.mubr.f32.gmra.mxu0 %v8087_v40  ;;  %v7154_v0 = vpop.f32.mrf.mxu0 }
 0x832   :  { %4257 = vmatprep.mubr.msk.f32.mxu0 %vm216_vm0, %v8088_v39 }
 0x835   :  { %3502 = vmatmul.mubr.f32.gmra.mxu0 %v8089_v5 }
 0x859   :  { %v3101_v48 = vpop.f32.mrf.mxu0 }
 0x85a   :  { %v3102_v37 = vadd.f32 %v3101_v48, %v7839_v19 }
 0x85b   :  { %v3103_v54 = vpop.f32.mrf.mxu0 }
 0x85c   :  { %v3200_v38 = vmax.f32 %v3102_v37, 0.0 }
 0x85d   :  { %v7156_v53 = vpop.f32.mrf.mxu0 }
 0x85f   :  { %v3108_v46 = vpop.f32.mrf.mxu0 }
 0x861   :  { %v3111_v17 = vpop.f32.mrf.mxu0 }
 0x863   :  { %v3113_v26 = vpop.f32.mrf.mxu0 }
 0x865   :  { %v3116_v16 = vpop.f32.mrf.mxu0 }
 0x867   :  { %v3118_v57 = vpop.f32.mrf.mxu0 }
 0x869   :  { %v3121_v12 = vpop.f32.mrf.mxu0 }
 0x86b   :  { %v3123_v15 = vpop.f32.mrf.mxu0 }
 0x86d   :  { %v3126_v45 = vpop.f32.mrf.mxu0 }
 0x86e   :  { %v3127_v33 = vadd.f32 %v3126_v45, %v7840_v42 }
 0x86f   :  { %v3128_v61 = vpop.f32.mrf.mxu0 }
 0x870   :  { %v3205_v18 = vmax.f32 %v3127_v33, 0.0 }
 0x871   :  { %v3131_v4 = vpop.f32.mrf.mxu0 }
 0x873   :  { %v3133_v41 = vpop.f32.mrf.mxu0 }
 0x875   :  { %v3136_v14 = vpop.f32.mrf.mxu0 }
 0x876   :  { %v3137_v37 = vadd.f32 %v3136_v14, %v7844_v9 }
 0x877   :  { %v3138_v52 = vpop.f32.mrf.mxu0 }
 0x879   :  { %v3141_v51 = vpop.f32.mrf.mxu0 }
 0x87b   :  { %v3143_v63 = vpop.f32.mrf.mxu0 }
 0x87d   :  { %v3146_v35 = vpop.f32.mrf.mxu0 }
 0x87f   :  { %v3148_v1 = vpop.f32.mrf.mxu0 }
 0x880   :  { %v3122_v1 = vadd.f32 %v3121_v12, %v5221_v49 }
 0x881   :  { %v3151_v5 = vpop.f32.mrf.mxu0 }
 0x882   :  { %v3152_v6 = vadd.f32 %v3151_v5, %v7838_v27  ;;  %v3142_v5 = vadd.f32 %v3141_v51, %v5249_v7 }
 0x883   :  { %v3153_v32 = vpop.f32.mrf.mxu0 }
 0x884   :  { %v3210_v50 = vmax.f32 %v3152_v6, 0.0  ;;  %v3147_v32 = vadd.f32 %v3146_v35, %v5227_v62  ;;  %v3112_v6 = vadd.f32 %v3111_v17, %v7842_v10 }
 0x885   :  { %v3156_v39 = vpop.f32.mrf.mxu0 }
 0x886   :  { %v3220_v26 = vmax.f32 %v3200_v38, %v3210_v50  ;;  %v3204_v50 = vmax.f32 %v3122_v1, 0.0  ;;  %v3157_v17 = vadd.f32 %v3156_v39, %v7848_v36 }
 0x887   :  { %v3158_v28 = vpop.f32.mrf.mxu0 }
 0x888   :  { %v3211_v1 = vmax.f32 %v3157_v17, 0.0 }
 0x889   :  { %v3161_v40 = vpop.f32.mrf.mxu0 }
 0x88b   :  { %v3163_v21 = vpop.f32.mrf.mxu0 }
 0x88d   :  { %v3166_v13 = vpop.f32.mrf.mxu0 }
 0x88e   :  { %v3167_v21 = vadd.f32 %v3166_v13, %v5247_v34  ;;  %v3132_v13 = vadd.f32 %v3131_v4, %v7901_v25  ;;  %v3202_v4 = vmax.f32 %v3112_v6, 0.0 }
 0x88f   :  { %v3168_v8 = vpop.f32.mrf.mxu0 }
 0x891   :  { %v3171_v60 = vpop.f32.mrf.mxu0 }
 0x892   :  { %v3172_v48 = vadd.f32 %v3171_v60, %v5229_v2  ;;  %v3162_v60 = vadd.f32 %v3161_v40, %v7845_v23  ;;  %v3107_v40 = vadd.f32 %v7156_v53, %v7849_v59 }
 0x893   :  { %v3173_v3 = vpop.f32.mrf.mxu0 }
 0x894   :  { %v3117_v3 = vadd.f32 %v3116_v16, %v7843_v24  ;;  %v3213_v16 = vmax.f32 %v3167_v21, 0.0  ;;  %v3201_v21 = vmax.f32 %v3107_v40, 0.0 }
 0x895   :  { %v3176_v22 = vpop.f32.mrf.mxu0 }
 0x896   :  { %v3177_v47 = vadd.f32 %v3176_v22, %v5315_v31  ;;  %v3214_v22 = vmax.f32 %v3172_v48, 0.0  ;;  %v3206_v48 = vmax.f32 %v3132_v13, 0.0 }
 0x897   :  { %v3178_v44 = vpop.f32.mrf.mxu0 }
 0x898   :  { %v3215_v54 = vmax.f32 %v3177_v47, 0.0  ;;  %v3208_v47 = vmax.f32 %v3142_v5, 0.0  ;;  %v3209_v44 = vmax.f32 %v3147_v32, 0.0 }
 0x899   :  { %v3181_v46 = vpop.f32.mrf.mxu0 }
 0x89a   :  { %v3225_v57 = vmax.f32 %v3205_v18, %v3215_v54  ;;  %v3182_v12 = vadd.f32 %v3181_v46, %v7846_v43  ;;  %v3203_v54 = vmax.f32 %v3117_v3, 0.0  ;;  %v3212_v46 = vmax.f32 %v3162_v60, 0.0 }
 0x89b   :  { %v3183_v15 = vpop.f32.mrf.mxu0  ;;  %v3221_v60 = vmax.f32 %v3201_v21, %v3211_v1 }
 0x89c   :  { %v7162_v61 = vmax.f32 %v3220_v26, %v3225_v57  ;;  %v3207_v26 = vmax.f32 %v3137_v37, 0.0  ;;  %v3224_v15 = vmax.f32 %v3204_v50, %v3214_v22  ;;  %v3223_v5 = vmax.f32 %v3203_v54, %v3213_v16  ;;  %v4258_v50 = vld [vmem:[%s7452_s3 + $0xa0] sm:$0xff] }
 0x89d   :  { %v3186_v41 = vpop.f32.mrf.mxu0 }
 0x89e   :  { %v3187_v8 = vadd.f32 %v3186_v41, %v7841_v20  ;;  %v3216_v41 = vmax.f32 %v3182_v12, 0.0 }
 0x89f   :  { %v3188_v52 = vpop.f32.mrf.mxu0 }
 0x8a0   :  { %v3217_v18 = vmax.f32 %v3187_v8, 0.0  ;;  %v3222_v8 = vmax.f32 %v3202_v4, %v3212_v46  ;;  %v3226_v53 = vmax.f32 %v3206_v48, %v3216_v41 }
 0x8a1   :  { %v3191_v63 = vpop.f32.mrf.mxu0 }
 0x8a2   :  { %v3192_v45 = vadd.f32 %v3191_v63, %v5257_v58  ;;  %v3227_v39 = vmax.f32 %v3207_v26, %v3217_v18  ;;  %v3231_v22 = vmax.f32 %v3221_v60, %v3226_v53 }
 0x8a3   :  { %v3193_v28 = vpop.f32.mrf.mxu0 }
 0x8a4   :  { %v3218_v51 = vmax.f32 %v3192_v45, 0.0 }
 0x8a5   :  { %v3196_v33 = vpop.f32.mrf.mxu0 }
 0x8a6   :  { %v3197_v35 = vadd.f32 %v3196_v33, %v7900_v11  ;;  %v3228_v52 = vmax.f32 %v3208_v47, %v3218_v51  ;;  %v3232_v33 = vmax.f32 %v3222_v8, %v3227_v39 }
 0x8a7   :  { %v3198_v38 = vpop.f32.mrf.mxu0 }
 0x8a8   :  { %v3219_v14 = vmax.f32 %v3197_v35, 0.0  ;;  %v3233_v3 = vmax.f32 %v3223_v5, %v3228_v52  ;;  %v4235_v35 = vld [vmem:[%s7452_s3 + $0x98] sm:$0x3] }
 0x8a9   :  { %v3408_v57 = vpop.f32.mrf.mxu0 }
 0x8aa   :  { %v3229_v63 = vmax.f32 %v3209_v44, %v3219_v14  ;;  %v3409_v21 = vadd.f32 %v3408_v57, %v7839_v19 }
 0x8ab   :  { %v3410_v45 = vpop.f32.mrf.mxu0 }
 0x8ac   :  { %v3234_v32 = vmax.f32 %v3224_v15, %v3229_v63 }
 0x8ad   :  { %v7181_v28 = vpop.f32.mrf.mxu0 }
 0x8ae   :  { %4487 = vmatprep.subr.mxu1 %v3234_v32 }
 0x8af   :  { %4488 = vmatpush3.msra.mxu1 %v3234_v32  ;;  %v3415_v37 = vpop.f32.mrf.mxu0 }
 0x8b0   :  { %4489 = vmatprep.subr.mxu1 %v3233_v3 }
 0x8b1   :  { %4490 = vmatpush3.msra.mxu1 %v3233_v3  ;;  %v7183_v6 = vpop.f32.mrf.mxu0 }
 0x8b2   :  { %4491 = vmatprep.subr.mxu1 %v3232_v33 }
 0x8b3   :  { %4492 = vmatpush3.msra.mxu1 %v3232_v33  ;;  %v3420_v12 = vpop.f32.mrf.mxu0  ;;  %v3507_v33 = vmax.f32 %v3409_v21, 0.0 }
 0x8b4   :  { %4493 = vmatprep.subr.mxu1 %v3231_v22 }
 0x8b5   :  { %4494 = vmatpush3.msra.mxu1 %v3231_v22  ;;  %v3423_v51 = vpop.f32.mrf.mxu0 }
 0x8b6   :  { %4495 = vmatprep.subr.mxu1 %v7162_v61 }
 0x8b7   :  { %4496 = vmatpush3.msra.mxu1 %v7162_v61  ;;  %v3425_v13 = vpop.f32.mrf.mxu0 }
 0x8b8   :  { %4498 = vmatmul.mubr.msk.f32.vlgmr.msra.gmra.mxu1 %vm216_vm0, %v4235_v35 }
 0x8b9   :  { %v3428_v47 = vpop.f32.mrf.mxu0  ;;  %4510 = vmatprep.mubr.msk.f32.mxu1 %vm216_vm0, %v4258_v50 }
 0x8bb   :  { %v3430_v44 = vpop.f32.mrf.mxu0 }
 0x8bd   :  { %v3433_v38 = vpop.f32.mrf.mxu0 }
 0x8be   :  { %v3434_v8 = vadd.f32 %v3433_v38, %v7840_v42 }
 0x8bf   :  { %v3435_v17 = vpop.f32.mrf.mxu0 }
 0x8c0   :  { %v3512_v22 = vmax.f32 %v3434_v8, 0.0 }
 0x8c1   :  { %v3438_v16 = vpop.f32.mrf.mxu0 }
 0x8c3   :  { %v3440_v18 = vpop.f32.mrf.mxu0 }
 0x8c5   :  { %v3443_v14 = vpop.f32.mrf.mxu0 }
 0x8c7   :  { %v3445_v40 = vpop.f32.mrf.mxu0 }
 0x8c9   :  { %v3448_v54 = vpop.f32.mrf.mxu0 }
 0x8cb   :  { %v3450_v26 = vpop.f32.mrf.mxu0 }
 0x8cd   :  { %v3453_v46 = vpop.f32.mrf.mxu0 }
 0x8cf   :  { %v3455_v15 = vpop.f32.mrf.mxu0 }
 0x8d0   :  { %v3429_v15 = vadd.f32 %v3428_v47, %v5221_v49 }
 0x8d1   :  { %v3458_v41 = vpop.f32.mrf.mxu0 }
 0x8d2   :  { %v3459_v39 = vadd.f32 %v3458_v41, %v7838_v27  ;;  %v3449_v41 = vadd.f32 %v3448_v54, %v5249_v7 }
 0x8d3   :  { %v3460_v52 = vpop.f32.mrf.mxu0 }
 0x8d4   :  { %v3517_v3 = vmax.f32 %v3459_v39, 0.0  ;;  %v3454_v52 = vadd.f32 %v3453_v46, %v5227_v62  ;;  %v3419_v39 = vadd.f32 %v7183_v6, %v7842_v10 }
 0x8d5   :  { %v3463_v61 = vpop.f32.mrf.mxu0 }
 0x8d6   :  { %v3527_v50 = vmax.f32 %v3507_v33, %v3517_v3  ;;  %v3511_v3 = vmax.f32 %v3429_v15, 0.0  ;;  %v3464_v6 = vadd.f32 %v3463_v61, %v7848_v36 }
 0x8d7   :  { %v3465_v63 = vpop.f32.mrf.mxu0 }
 0x8d9   :  { %v3468_v4 = vpop.f32.mrf.mxu0 }
 0x8da   :  { %v3469_v21 = vadd.f32 %v3468_v4, %v7845_v23  ;;  %v3414_v4 = vadd.f32 %v7181_v28, %v7849_v59 }
 0x8db   :  { %v3470_v48 = vpop.f32.mrf.mxu0 }
 0x8dc   :  { %v3508_v61 = vmax.f32 %v3414_v4, 0.0  ;;  %v3646_v4 = vld [vmem:[#allocation2 + $0x2f8] sm:$0xff] }
 0x8dd   :  { %v3473_v45 = vpop.f32.mrf.mxu0 }
 0x8de   :  { %v3474_v48 = vadd.f32 %v3473_v45, %v5247_v34  ;;  %v3439_v45 = vadd.f32 %v3438_v16, %v7901_v25 }
 0x8df   :  { %v3475_v1 = vpop.f32.mrf.mxu0 }
 0x8e0   :  { %v3513_v16 = vmax.f32 %v3439_v45, 0.0  ;;  %v8098_v45 = vld [vmem:[#allocation40_spill] sm:$0xff] }
 0x8e1   :  { %v3478_v5 = vpop.f32.mrf.mxu0 }
 0x8e2   :  { %v3479_v57 = vadd.f32 %v3478_v5, %v5229_v2  ;;  %v3444_v5 = vadd.f32 %v3443_v14, %v7844_v9 }
 0x8e3   :  { %v3480_v32 = vpop.f32.mrf.mxu0 }
 0x8e4   :  { %v3424_v32 = vadd.f32 %v3423_v51, %v7843_v24  ;;  %v3521_v47 = vmax.f32 %v3479_v57, 0.0  ;;  %v3520_v51 = vmax.f32 %v3474_v48, 0.0  ;;  %v3518_v57 = vmax.f32 %v3464_v6, 0.0  ;;  %v8102_v6 = vld [vmem:[#allocation61_spill] sm:$0xff] }
 0x8e5   :  { %v3483_v53 = vpop.f32.mrf.mxu0 }
 0x8e6   :  { %v3484_v37 = vadd.f32 %v3483_v53, %v5315_v31  ;;  %v3528_v28 = vmax.f32 %v3508_v61, %v3518_v57  ;;  %v4629_v57 = vld [vmem:[%s7450_s1 + $0x40] sm:$0xff] }
 0x8e7   :  { %v3485_v60 = vpop.f32.mrf.mxu0  ;;  %v4633_v61 = vld [vmem:[%s7450_s1 + $0x60] sm:$0xff] }
 0x8e8   :  { %v3522_v12 = vmax.f32 %v3484_v37, 0.0  ;;  %v3515_v37 = vmax.f32 %v3449_v41, 0.0  ;;  %v3516_v60 = vmax.f32 %v3454_v52, 0.0 }
 0x8e9   :  { %v3488_v35 = vpop.f32.mrf.mxu0 }
 0x8ea   :  { %v3532_v13 = vmax.f32 %v3512_v22, %v3522_v12  ;;  %v3489_v54 = vadd.f32 %v3488_v35, %v7846_v43  ;;  %v3510_v12 = vmax.f32 %v3424_v32, 0.0  ;;  %v3519_v35 = vmax.f32 %v3469_v21, 0.0  ;;  %v3642_v21 = vld [vmem:[#allocation2 + $0x2d8] sm:$0xff] }
 0x8eb   :  { %v3490_v44 = vpop.f32.mrf.mxu0 }
 0x8ec   :  { %v3537_v17 = vmax.f32 %v3527_v50, %v3532_v13  ;;  %v3514_v50 = vmax.f32 %v3444_v5, 0.0  ;;  %v3531_v13 = vmax.f32 %v3511_v3, %v3521_v47  ;;  %v3523_v44 = vmax.f32 %v3489_v54, 0.0  ;;  %v3643_v5 = vld [vmem:[#allocation2 + $0x2e0] sm:$0xff]  ;;  %v8091_v47 = vld [vmem:[#allocation22_spill] sm:$0xff] }
 0x8ed   :  { %v3493_v18 = vpop.f32.mrf.mxu0  ;;  %v8093_v54 = vld [vmem:[#allocation24_spill] sm:$0xff]  ;;  %v8097_v3 = vld [vmem:[#allocation38_spill] sm:$0xff] }
 0x8ee   :  { %v3494_v1 = vadd.f32 %v3493_v18, %v7841_v20 }
 0x8ef   :  { %v3495_v40 = vpop.f32.mrf.mxu0 }
 0x8f0   :  { %v3524_v22 = vmax.f32 %v3494_v1, 0.0 }
 0x8f1   :  { %v3498_v26 = vpop.f32.mrf.mxu0 }
 0x8f2   :  { %v3499_v38 = vadd.f32 %v3498_v26, %v5257_v58  ;;  %v3509_v26 = vmax.f32 %v3419_v39, 0.0  ;;  %v3534_v15 = vmax.f32 %v3514_v50, %v3524_v22  ;;  %v4259_v39 = vld [vmem:[%s7452_s3 + $0xa8] sm:$0x3]  ;;  %v8103_v22 = vld [vmem:[#allocation58_spill] sm:$0xff] }
 0x8f3   :  { %v3500_v63 = vpop.f32.mrf.mxu0  ;;  %v3644_v50 = vld [vmem:[#allocation2 + $0x2e8] sm:$0xff] }
 0x8f4   :  { %v3525_v53 = vmax.f32 %v3499_v38, 0.0  ;;  %v3530_v38 = vmax.f32 %v3510_v12, %v3520_v51  ;;  %v3529_v52 = vmax.f32 %v3509_v26, %v3519_v35  ;;  %v3533_v63 = vmax.f32 %v3513_v16, %v3523_v44  ;;  %v3648_v51 = vld [vmem:[#allocation2 + $0x308] sm:$0xff]  ;;  %v3645_v12 = vld [vmem:[#allocation2 + $0x2f0] sm:$0xff]  ;;  %v4621_v35 = vld [vmem:[%s7450_s1] sm:$0xff] }
 0x8f5   :  { %v3503_v8 = vpop.f32.mrf.mxu0  ;;  %v4623_v44 = vld [vmem:[%s7450_s1 + $0x10] sm:$0xff]  ;;  %v4628_v16 = vld [vmem:[%s7450_s1 + $0x48] sm:$0xff] }
 0x8f6   :  { %v3504_v46 = vadd.f32 %v3503_v8, %v7900_v11  ;;  %v3535_v18 = vmax.f32 %v3515_v37, %v3525_v53  ;;  %v3539_v1 = vmax.f32 %v3529_v52, %v3534_v15  ;;  %v3538_v32 = vmax.f32 %v3528_v28, %v3533_v63  ;;  %v8090_v8 = vld [vmem:[#allocation21_spill] sm:$0xff]  ;;  %v8095_v53 = vld [vmem:[#allocation26_spill] sm:$0xff]  ;;  %v4634_v52 = vld [vmem:[%s7450_s1 + $0x78] sm:$0xff] }
 0x8f7   :  { %v3505_v33 = vpop.f32.mrf.mxu0  ;;  %v8099_v37 = vld [vmem:[#allocation42_spill] sm:$0xff]  ;;  %v4637_v28 = vld [vmem:[%s7450_s1 + $0x80] sm:$0xff] }
 0x8f8   :  { %v3526_v14 = vmax.f32 %v3504_v46, 0.0  ;;  %v3540_v48 = vmax.f32 %v3530_v38, %v3535_v18  ;;  %v8096_v46 = vld [vmem:[#allocation27_spill] sm:$0xff]  ;;  %v8101_v33 = vld [vmem:[#allocation46_spill] sm:$0xff]  ;;  %v4625_v18 = vld [vmem:[%s7450_s1 + $0x20] sm:$0xff] }
 0x8f9   :  { %v4627_v26 = vld [vmem:[%s7450_s1 + $0x30] sm:$0xff]  ;;  %v4630_v38 = vld [vmem:[%s7450_s1 + $0x58] sm:$0xff] }
 0x8fa   :  { %v3536_v40 = vmax.f32 %v3516_v60, %v3526_v14  ;;  %v8100_v60 = vld [vmem:[#allocation44_spill] sm:$0xff]  ;;  %v4631_v15 = vld [vmem:[%s7450_s1 + $0x50] sm:$0xff] }
 0x8fb   :  { %v3647_v14 = vld [vmem:[#allocation2 + $0x300] sm:$0xff]  ;;  %v4635_v63 = vld [vmem:[%s7450_s1 + $0x70] sm:$0xff] }
 0x8fc   :  { %v3541_v41 = vmax.f32 %v3531_v13, %v3536_v40  ;;  %v4622_v13 = vld [vmem:[%s7450_s1 + $0x18] sm:$0xff] }
 0x8fd   :  { %v4626_v40 = vld [vmem:[%s7450_s1 + $0x38] sm:$0xff] }
 0x8fe   :  { %4500 = vmatprep.subr.mxu1 %v3541_v41 }
 0x8ff   :  { %4501 = vmatpush3.msra.mxu1 %v3541_v41  ;;  %v4632_v41 = vld [vmem:[%s7450_s1 + $0x68] sm:$0xff] }
 0x900   :  { %4502 = vmatprep.subr.mxu1 %v3540_v48 }
 0x901   :  { %4503 = vmatpush3.msra.mxu1 %v3540_v48  ;;  %v4636_v48 = vld [vmem:[%s7450_s1 + $0x88] sm:$0xff] }
 0x902   :  { %4504 = vmatprep.subr.mxu1 %v3539_v1 }
 0x903   :  { %4505 = vmatpush3.msra.mxu1 %v3539_v1  ;;  %v4638_v1 = vld [vmem:[%s7450_s1 + $0x98] sm:$0xff] }
 0x904   :  { %4506 = vmatprep.subr.mxu1 %v3538_v32 }
 0x905   :  { %4507 = vmatpush3.msra.mxu1 %v3538_v32  ;;  %v4639_v32 = vld [vmem:[%s7450_s1 + $0x90] sm:$0xff] }
 0x906   :  { %4508 = vmatprep.subr.mxu1 %v3537_v17 }
 0x907   :  { %4509 = vmatpush3.msra.mxu1 %v3537_v17  ;;  %v8092_v17 = vld [vmem:[#allocation23_spill] sm:$0xff] }
 0x908   :  { %4511 = vmatmul.mubr.msk.f32.vlgmr.msra.gmra.mxu1 %vm216_vm0, %v4259_v39  ;;  %3649 = vmatprep.subr.mxu1 %v7793_v30  ;;  %v4640_v39 = vld [vmem:[%s7450_s1 + $0xa8] sm:$0xff] }
 0x909   :  { %3650 = vmatpush1.msra.mxu1 %v3643_v5  ;;  %4262 = vmatprep.mubr.msk.f32.mxu1 %vm216_vm0, %v6917_v56  ;;  %v8094_v56 = vld [vmem:[#allocation25_spill] sm:$0xff]  ;;  %v4641_v5 = vld [vmem:[%s7450_s1 + $0xa0] sm:$0xff] }
 0x90a   :  { %3651 = vmatprep.subr.mxu1 %v7793_v30 }
 0x90b   :  { %3652 = vmatpush1.msra.mxu1 %v3642_v21  ;;  %v4642_v21 = vld [vmem:[%s7450_s1 + $0xb8] sm:$0xff] }
 0x90c   :  { %3653 = vmatprep.subr.mxu1 %v7793_v30 }
 0x90d   :  { %3654 = vmatpush1.msra.mxu1 %v8090_v8  ;;  %v4643_v8 = vld [vmem:[%s7450_s1 + $0xb0] sm:$0xff] }
 0x90e   :  { %3655 = vmatprep.subr.mxu1 %v7793_v30 }
 0x90f   :  { %3656 = vmatpush1.msra.mxu1 %v8091_v47  ;;  %v4644_v47 = vld [vmem:[%s7450_s1 + $0xc8] sm:$0xff] }
 0x910   :  { %3657 = vmatprep.subr.mxu1 %v7793_v30 }
 0x911   :  { %3658 = vmatpush1.msra.mxu1 %v8092_v17  ;;  %v4645_v17 = vld [vmem:[%s7450_s1 + $0xc0] sm:$0xff] }
 0x912   :  { %3659 = vmatprep.subr.mxu1 %v7793_v30 }
 0x913   :  { %3660 = vmatpush1.msra.mxu1 %v8093_v54  ;;  %v4646_v54 = vld [vmem:[%s7450_s1 + $0xd8] sm:$0xff] }
 0x914   :  { %3661 = vmatprep.subr.mxu1 %v7793_v30 }
 0x915   :  { %3662 = vmatpush1.msra.mxu1 %v8094_v56  ;;  %v4647_v56 = vld [vmem:[%s7450_s1 + $0xd0] sm:$0xff] }
 0x916   :  { %3663 = vmatprep.subr.mxu1 %v7793_v30 }
 0x917   :  { %3664 = vmatpush1.msra.mxu1 %v8095_v53  ;;  %v4648_v53 = vld [vmem:[%s7450_s1 + $0xe8] sm:$0xff] }
 0x918   :  { %3665 = vmatprep.subr.mxu1 %v7793_v30 }
 0x919   :  { %3666 = vmatpush1.msra.mxu1 %v8096_v46  ;;  %v4649_v46 = vld [vmem:[%s7450_s1 + $0xe0] sm:$0xff] }
 0x91a   :  { %3667 = vmatprep.subr.mxu1 %v7793_v30 }
 0x91b   :  { %3668 = vmatpush1.msra.mxu1 %v8097_v3  ;;  %v4650_v3 = vld [vmem:[%s7450_s1 + $0xf8] sm:$0xff] }
 0x91c   :  { %3669 = vmatprep.subr.mxu1 %v7793_v30 }
 0x91d   :  { %3670 = vmatpush1.msra.mxu1 %v8098_v45  ;;  %v4651_v45 = vld [vmem:[%s7450_s1 + $0xf0] sm:$0xff] }
 0x91e   :  { %3671 = vmatprep.subr.mxu1 %v7793_v30 }
 0x91f   :  { %3672 = vmatpush1.msra.mxu1 %v8099_v37  ;;  %v4652_v37 = vld [vmem:[%s7450_s1 + $0x108] sm:$0xff] }
 0x920   :  { %3673 = vmatprep.subr.mxu1 %v7793_v30 }
 0x921   :  { %3674 = vmatpush1.msra.mxu1 %v8100_v60  ;;  %v4653_v60 = vld [vmem:[%s7450_s1 + $0x100] sm:$0xff] }
 0x922   :  { %3675 = vmatprep.subr.mxu1 %v7793_v30 }
 0x923   :  { %3676 = vmatpush1.msra.mxu1 %v8101_v33  ;;  %v4654_v33 = vld [vmem:[%s7450_s1 + $0x118] sm:$0xff] }
 0x924   :  { %3677 = vmatprep.subr.mxu1 %v7793_v30 }
 0x925   :  { %3678 = vmatpush1.msra.mxu1 %v8102_v6  ;;  %v4655_v6 = vld [vmem:[%s7450_s1 + $0x110] sm:$0xff] }
 0x926   :  { %3679 = vmatprep.subr.mxu1 %v7793_v30 }
 0x927   :  { %3680 = vmatpush1.msra.mxu1 %v8103_v22 }
 0x928   :  { %3703 = vmatprep.subr.mxu1 %v7793_v30 }
 0x929   :  { %3704 = vmatpush2.msra.mxu1 %v3648_v51  ;;  %v4656_v51 = vld [vmem:[%s7450_s1 + $0x128] sm:$0xff] }
 0x92a   :  { %3705 = vmatprep.subr.mxu1 %v7793_v30 }
 0x92b   :  { %3706 = vmatpush2.msra.mxu1 %v3647_v14 }
 0x92c   :  { %3707 = vmatprep.subr.mxu1 %v7793_v30 }
 0x92d   :  { %3708 = vmatpush2.msra.mxu1 %v3646_v4  ;;  %v4657_v4 = vld [vmem:[%s7450_s1 + $0x120] sm:$0xff] }
 0x92e   :  { %3709 = vmatprep.subr.mxu1 %v7793_v30 }
 0x92f   :  { %3710 = vmatpush2.msra.mxu1 %v3645_v12  ;;  %v4658_v12 = vld [vmem:[%s7450_s1 + $0x138] sm:$0xff] }
 0x930   :  { %3711 = vmatprep.subr.mxu1 %v7793_v30  ;;  %v4624_v30 = vld [vmem:[%s7450_s1 + $0x28] sm:$0xff] }
 0x931   :  { %3712 = vmatpush2.msra.mxu1 %v3644_v50  ;;  %v4659_v50 = vld [vmem:[%s7450_s1 + $0x130] sm:$0xff] }
 0x932   :  { %3714 = vmatmul.mubr.f32.vlgmr.msra.gmra.mxu1 %v4621_v35  ;;  %v8104_v35 = vld [vmem:[#allocation8_spill] sm:$0xff] }
 0x933   :  { %4263 = vmatprep.mubr.msk.f32.mxu1 %vm216_vm0, %v4622_v13  ;;  %v8105_v13 = vld [vmem:[#allocation51_spill] sm:$0xff] }
 0x936   :  { %3719 = vmatmul.mubr.f32.gmra.mxu1 %v4623_v44  ;;  %v857_v44 = vadd.f32 %v8105_v13, %v8104_v35 }
 0x937   :  { %4264 = vmatprep.mubr.msk.f32.mxu1 %vm216_vm0, %v4624_v30 }
 0x93a   :  { %3724 = vmatmul.mubr.f32.gmra.mxu1 %v4625_v18  ;;  %v8107_v18 = vld [vmem:[#allocation10_spill] sm:$0xff] }
 0x93b   :  { %4265 = vmatprep.mubr.msk.f32.mxu1 %vm216_vm0, %v4626_v40 }
 0x93e   :  { %3729 = vmatmul.mubr.f32.gmra.mxu1 %v4627_v26  ;;  %v8108_v26 = vld [vmem:[#allocation18_spill] sm:$0xff] }
 0x93f   :  { %4266 = vmatprep.mubr.msk.f32.mxu1 %vm216_vm0, %v4628_v16 }
 0x942   :  { %3734 = vmatmul.mubr.f32.gmra.mxu1 %v4629_v57  ;;  %v8109_v57 = vld [vmem:[#allocation59_spill] sm:$0xff] }
 0x943   :  { %4267 = vmatprep.mubr.msk.f32.mxu1 %vm216_vm0, %v4630_v38 }
 0x946   :  { %3739 = vmatmul.mubr.f32.gmra.mxu1 %v4631_v15  ;;  %v8110_v15 = vld [vmem:[#allocation16_spill] sm:$0xff] }
 0x947   :  { %4268 = vmatprep.mubr.msk.f32.mxu1 %vm216_vm0, %v4632_v41 }
 0x94a   :  { %3744 = vmatmul.mubr.f32.gmra.mxu1 %v4633_v61 }
 0x94b   :  { %4269 = vmatprep.mubr.msk.f32.mxu1 %vm216_vm0, %v4634_v52 }
 0x94e   :  { %3749 = vmatmul.mubr.f32.gmra.mxu1 %v4635_v63 }
 0x94f   :  { %4270 = vmatprep.mubr.msk.f32.mxu1 %vm216_vm0, %v4636_v48 }
 0x952   :  { %3754 = vmatmul.mubr.f32.gmra.mxu1 %v4637_v28 }
 0x953   :  { %4271 = vmatprep.mubr.msk.f32.mxu1 %vm216_vm0, %v4638_v1 }
 0x956   :  { %3759 = vmatmul.mubr.f32.gmra.mxu1 %v4639_v32 }
 0x957   :  { %4272 = vmatprep.mubr.msk.f32.mxu1 %vm216_vm0, %v4640_v39 }
 0x95a   :  { %3764 = vmatmul.mubr.f32.gmra.mxu1 %v4641_v5  ;;  %v4282_v5 = vld [vmem:[%s7452_s3 + $0xb0] sm:$0xff] }
 0x95b   :  { %4273 = vmatprep.mubr.msk.f32.mxu1 %vm216_vm0, %v4642_v21  ;;  %4523 = vmatprep.mubr.msk.f32.mxu0 %vm216_vm0, %v4282_v5 }
 0x95e   :  { %3769 = vmatmul.mubr.f32.gmra.mxu1 %v4643_v8 }
 0x95f   :  { %4274 = vmatprep.mubr.msk.f32.mxu1 %vm216_vm0, %v4644_v47 }
 0x962   :  { %3774 = vmatmul.mubr.f32.gmra.mxu1 %v4645_v17 }
 0x963   :  { %4275 = vmatprep.mubr.msk.f32.mxu1 %vm216_vm0, %v4646_v54 }
 0x966   :  { %3779 = vmatmul.mubr.f32.gmra.mxu1 %v4647_v56 }
 0x967   :  { %4276 = vmatprep.mubr.msk.f32.mxu1 %vm216_vm0, %v4648_v53 }
 0x96a   :  { %3784 = vmatmul.mubr.f32.gmra.mxu1 %v4649_v46 }
 0x96b   :  { %4277 = vmatprep.mubr.msk.f32.mxu1 %vm216_vm0, %v4650_v3 }
 0x96e   :  { %3789 = vmatmul.mubr.f32.gmra.mxu1 %v4651_v45 }
 0x96f   :  { %4278 = vmatprep.mubr.msk.f32.mxu1 %vm216_vm0, %v4652_v37 }
 0x972   :  { %3794 = vmatmul.mubr.f32.gmra.mxu1 %v4653_v60 }
 0x973   :  { %4279 = vmatprep.mubr.msk.f32.mxu1 %vm216_vm0, %v4654_v33 }
 0x976   :  { %3799 = vmatmul.mubr.f32.gmra.mxu1 %v4655_v6 }
 0x977   :  { %4280 = vmatprep.mubr.msk.f32.mxu1 %vm216_vm0, %v4656_v51 }
 0x978   :  { %v4499_v22 = vpop.f32.mrf.mxu1 }
 0x979   :  { %v3320_v14 = vadd.f32 %v4499_v22, %v7144_v29  ;;  %v8106_v29 = vld [vmem:[#allocation54_spill] sm:$0xff] }
 0x97a   :  { %3804 = vmatmul.mubr.f32.gmra.mxu1 %v4657_v4  ;;  %v1170_v30 = vadd.f32 %v8106_v29, %v857_v44  ;;  %v3310_v52 = vpop.f32.mrf.mxu1 }
 0x97b   :  { %4281 = vmatprep.mubr.msk.f32.mxu1 %vm216_vm0, %v4658_v12 }
 0x97c   :  { %v1477_v40 = vadd.f32 %v8107_v18, %v1170_v30 }
 0x97e   :  { %3809 = vmatmul.mubr.f32.gmra.mxu1 %v4659_v50  ;;  %v1784_v16 = vadd.f32 %v8108_v26, %v1477_v40 }
 0x980   :  { %v2091_v38 = vadd.f32 %v8109_v57, %v1784_v16 }
 0x982   :  { %v2398_v41 = vadd.f32 %v8110_v15, %v2091_v38 }
 0x984   :  { %v2705_v61 = vadd.f32 %v7139_v55, %v2398_v41 }
 0x986   :  { %v3012_v63 = vadd.f32 %v7154_v0, %v2705_v61 }
 0x988   :  { %v3319_v28 = vadd.f32 %v3310_v52, %v3012_v63 }
 0x9c8   :  { %v4512_v48 = vpop.f32.mrf.mxu1 }
 0x9c9   :  { %v7404_v1 = vadd.f32 %v4512_v48, %v3320_v14 }
 0x9ca   :  { %v3617_v32 = vpop.f32.mrf.mxu1 }
 0x9cb   :  { %v7406_v39 = vadd.f32 %v3617_v32, %v3319_v28 }
 0x9f2   :  { %v3715_v21 = vpop.f32.mrf.mxu1 }
 0x9f3   :  { %v3716_v57 = vadd.f32 %v3715_v21, %v7839_v19 }
 0x9f4   :  { %v3717_v8 = vpop.f32.mrf.mxu1 }
 0x9f5   :  { %v3814_v63 = vmax.f32 %v3716_v57, 0.0 }
 0x9f6   :  { %v7412_v47 = vpop.f32.mrf.mxu1 }
 0x9f8   :  { %v3722_v55 = vpop.f32.mrf.mxu1 }
 0x9fa   :  { %v3725_v17 = vpop.f32.mrf.mxu1 }
 0x9fc   :  { %v3727_v0 = vpop.f32.mrf.mxu1 }
 0x9fe   :  { %v3730_v54 = vpop.f32.mrf.mxu1 }
 0xa00   :  { %v3732_v56 = vpop.f32.mrf.mxu1 }
 0xa02   :  { %v3735_v53 = vpop.f32.mrf.mxu1 }
 0xa03   :  { %v3736_v21 = vadd.f32 %v3735_v53, %v5221_v49 }
 0xa04   :  { %v3737_v46 = vpop.f32.mrf.mxu1 }
 0xa05   :  { %v3818_v53 = vmax.f32 %v3736_v21, 0.0 }
 0xa06   :  { %v3740_v3 = vpop.f32.mrf.mxu1 }
 0xa07   :  { %v3741_v38 = vadd.f32 %v3740_v3, %v7840_v42 }
 0xa08   :  { %v3742_v45 = vpop.f32.mrf.mxu1 }
 0xa09   :  { %v3819_v48 = vmax.f32 %v3741_v38, 0.0 }
 0xa0a   :  { %v3745_v37 = vpop.f32.mrf.mxu1 }
 0xa0c   :  { %v3747_v60 = vpop.f32.mrf.mxu1 }
 0xa0e   :  { %v3750_v33 = vpop.f32.mrf.mxu1 }
 0xa10   :  { %v3752_v6 = vpop.f32.mrf.mxu1 }
 0xa12   :  { %v3755_v51 = vpop.f32.mrf.mxu1 }
 0xa14   :  { %v3757_v22 = vpop.f32.mrf.mxu1 }
 0xa15   :  { %v3726_v22 = vadd.f32 %v3725_v17, %v7842_v10 }
 0xa16   :  { %v3760_v14 = vpop.f32.mrf.mxu1 }
 0xa17   :  { %v3761_v3 = vadd.f32 %v3760_v14, %v5227_v62 }
 0xa18   :  { %v3762_v4 = vpop.f32.mrf.mxu1 }
 0xa19   :  { %v3731_v4 = vadd.f32 %v3730_v54, %v7843_v24 }
 0xa1a   :  { %v3765_v12 = vpop.f32.mrf.mxu1 }
 0xa1b   :  { %v3766_v26 = vadd.f32 %v3765_v12, %v7838_v27  ;;  %v3751_v12 = vadd.f32 %v3750_v33, %v7844_v9  ;;  %v3817_v54 = vmax.f32 %v3731_v4, 0.0 }
 0xa1c   :  { %v3767_v50 = vpop.f32.mrf.mxu1 }
 0xa1d   :  { %v3824_v41 = vmax.f32 %v3766_v26, 0.0  ;;  %v3821_v33 = vmax.f32 %v3751_v12, 0.0 }
 0xa1e   :  { %v3770_v35 = vpop.f32.mrf.mxu1 }
 0xa1f   :  { %v3834_v5 = vmax.f32 %v3814_v63, %v3824_v41  ;;  %v3771_v10 = vadd.f32 %v3770_v35, %v7848_v36 }
 0xa20   :  { %v3772_v13 = vpop.f32.mrf.mxu1 }
 0xa22   :  { %v3775_v44 = vpop.f32.mrf.mxu1 }
 0xa24   :  { %v3777_v29 = vpop.f32.mrf.mxu1 }
 0xa26   :  { %v3780_v30 = vpop.f32.mrf.mxu1 }
 0xa27   :  { %v3781_v60 = vadd.f32 %v3780_v30, %v5247_v34  ;;  %v3746_v34 = vadd.f32 %v3745_v37, %v7901_v25  ;;  %v3816_v30 = vmax.f32 %v3726_v22, 0.0  ;;  %v3825_v37 = vmax.f32 %v3771_v10, 0.0 }
 0xa28   :  { %v3782_v18 = vpop.f32.mrf.mxu1 }
 0xa29   :  { %v3827_v24 = vmax.f32 %v3781_v60, 0.0  ;;  %v3820_v25 = vmax.f32 %v3746_v34, 0.0 }
 0xa2a   :  { %v3785_v40 = vpop.f32.mrf.mxu1 }
 0xa2b   :  { %v3786_v19 = vadd.f32 %v3785_v40, %v5229_v2  ;;  %v3776_v2 = vadd.f32 %v3775_v44, %v7845_v23  ;;  %v3721_v23 = vadd.f32 %v7412_v47, %v7849_v59  ;;  %v3837_v18 = vmax.f32 %v3817_v54, %v3827_v24 }
 0xa2c   :  { %v3787_v16 = vpop.f32.mrf.mxu1 }
 0xa2d   :  { %v3828_v50 = vmax.f32 %v3786_v19, 0.0  ;;  %v3815_v36 = vmax.f32 %v3721_v23, 0.0 }
 0xa2e   :  { %v3790_v15 = vpop.f32.mrf.mxu1 }
 0xa2f   :  { %v3791_v61 = vadd.f32 %v3790_v15, %v5315_v31  ;;  %v3756_v31 = vadd.f32 %v3755_v51, %v5249_v7  ;;  %v3838_v13 = vmax.f32 %v3818_v53, %v3828_v50  ;;  %v3835_v59 = vmax.f32 %v3815_v36, %v3825_v37  ;;  %v4283_v15 = vld [vmem:[%s7452_s3 + $0xb8] sm:$0x3]  ;;  %s4709_s3 = smov [#allocation5]  }
 0xa30   :  { %v3792_v52 = vpop.f32.mrf.mxu1  ;;  %s3988_s25 = sshll.u32 %s4709_s3, 4  ;;  %s3989_s25 = int_to_ptr.vmem [resolvable:$true] %s3988_s25 }
 0xa31   :  { %v3829_v28 = vmax.f32 %v3791_v61, 0.0  ;;  %v3822_v51 = vmax.f32 %v3756_v31, 0.0  ;;  %v3945_v52 = vpop.permute.xlu0 %3944  ;;  %s4680_s26 = scalar_lea.vmem %s3989_s25, 256  ;;  %p4685_p6 = scmp.lt.s32.totalorder %s3989_s25, %s3989_s25 }
 0xa32   :  { %v3795_v32 = vpop.f32.mrf.mxu1  ;;  %p4681_p5 = scmp.ne.s32.totalorder %s3989_s25, %s4680_s26  ;;  %p4686_p7 = scmp.lt.s32.totalorder %s4680_s26, %s4680_s26 }
 0xa33   :  { %v3839_v8 = vmax.f32 %v3819_v48, %v3829_v28  ;;  %v3796_v49 = vadd.f32 %v3795_v32, %v7846_v43  ;;  %v3826_v43 = vmax.f32 %v3776_v2, 0.0  ;;  %v3940_v32 = vpop.permute.xlu1 %3939 }
 0xa34   :  { %v3797_v55 = vpop.f32.mrf.mxu1  ;;  %p4687_p8 = por %p4686_p7, %p4685_p6 }
 0xa35   :  { %v3844_v0 = vmax.f32 %v3834_v5, %v3839_v8  ;;  %v3830_v44 = vmax.f32 %v3796_v49, 0.0  ;;  %v3836_v35 = vmax.f32 %v3816_v30, %v3826_v43 }
 0xa36   :  { %v3800_v56 = vpop.f32.mrf.mxu1  ;;  %p4688_p9 = pnand %p4687_p8, %p4681_p5 }
 0xa37   :  { %v3801_v6 = vadd.f32 %v3800_v56, %v7841_v20  ;;  %v3823_v20 = vmax.f32 %v3761_v3, 0.0  ;;  %v3840_v16 = vmax.f32 %v3820_v25, %v3830_v44 }
 0xa38   :  { %v3802_v27 = vpop.f32.mrf.mxu1 }
 0xa39   :  { %v3831_v17 = vmax.f32 %v3801_v6, 0.0  ;;  %v3845_v38 = vmax.f32 %v3835_v59, %v3840_v16 }
 0xa3a   :  { %v3805_v46 = vpop.f32.mrf.mxu1 }
 0xa3b   :  { %v3806_v42 = vadd.f32 %v3805_v46, %v5257_v58  ;;  %v3841_v40 = vmax.f32 %v3821_v33, %v3831_v17 }
 0xa3c   :  { %v3807_v45 = vpop.f32.mrf.mxu1 }
 0xa3d   :  { %v3832_v7 = vmax.f32 %v3806_v42, 0.0  ;;  %v3846_v47 = vmax.f32 %v3836_v35, %v3841_v40 }
 0xa3e   :  { %v3810_v58 = vpop.f32.mrf.mxu1 }
 0xa3f   :  { %v3811_v62 = vadd.f32 %v3810_v58, %v7900_v11  ;;  %v3842_v11 = vmax.f32 %v3822_v51, %v3832_v7 }
 0xa40   :  { %v3812_v14 = vpop.f32.mrf.mxu1 }
 0xa41   :  { %v3833_v9 = vmax.f32 %v3811_v62, 0.0  ;;  %v3847_v57 = vmax.f32 %v3837_v18, %v3842_v11 }
 0xa43   :  { %v3843_v29 = vmax.f32 %v3823_v20, %v3833_v9 }
 0xa45   :  { %v3848_v26 = vmax.f32 %v3838_v13, %v3843_v29 }
 0xa47   :  { %4513 = vmatprep.subr.mxu0 %v3848_v26 }
 0xa48   :  { %4514 = vmatpush3.msra.mxu0 %v3848_v26 }
 0xa49   :  { %4515 = vmatprep.subr.mxu0 %v3847_v57 }
 0xa4a   :  { %4516 = vmatpush3.msra.mxu0 %v3847_v57 }
 0xa4b   :  { %4517 = vmatprep.subr.mxu0 %v3846_v47 }
 0xa4c   :  { %4518 = vmatpush3.msra.mxu0 %v3846_v47 }
 0xa4d   :  { %4519 = vmatprep.subr.mxu0 %v3845_v38 }
 0xa4e   :  { %4520 = vmatpush3.msra.mxu0 %v3845_v38 }
 0xa4f   :  { %4521 = vmatprep.subr.mxu0 %v3844_v0 }
 0xa50   :  { %4522 = vmatpush3.msra.mxu0 %v3844_v0 }
 0xa51   :  { %4524 = vmatmul.mubr.msk.f32.vlgmr.msra.gmra.mxu0 %vm216_vm0, %v4283_v15 }
 0xb11   :  { %v4525_v41 = vpop.f32.mrf.mxu0 }
 0xb12   :  { %v3934_v61 = vadd.f32 %v4525_v41, %v7404_v1 }
 0xb13   :  { %v3924_v63 = vpop.f32.mrf.mxu0 }
 0xb14   :  { %v3948_v48 = vadd.f32 %v3945_v52, %v3934_v61  ;;  %v3933_v28 = vadd.f32 %v3924_v63, %v7406_v39 }
 0xb16   :  { %v3950_v5 = vsel %vm3949_vm1, %v3948_v48, -inf  ;;  %v3947_v8 = vadd.f32 %v3940_v32, %v3933_v28 }
 0xb18   :  { %v3951_v55 = vmax.f32 %v3947_v8, %v3950_v5 }
 0xb1a   :  { %v3952_v56 = vrot.slane %v3951_v55, 4 }
 0xb1c   :  { %v3953_v27 = vmax.f32 %v3951_v55, %v3952_v56 }
 0xb1e   :  { %v3954_v46 = vrot.slane %v3953_v27, 2 }
 0xb20   :  { %v3955_v0 = vmax.f32 %v3953_v27, %v3954_v46 }
 0xb22   :  { %v3956_v19 = vrot.slane %v3955_v0, 1 }
 0xb24   :  { %v3957_v42 = vmax.f32 %v3955_v0, %v3956_v19 }
 0xb26   :  { %v3958_v21 = vsub.f32 %v3947_v8, %v3957_v42  ;;  %v3959_v31 = vsub.f32 %v3948_v48, %v3957_v42 }
 0xb28   :  { %v3960_v1 = vmul.f32 1.442695, %v3958_v21  ;;  %v3962_v3 = vmul.f32 1.442695, %v3959_v31 }
 0xb2a   :  { %4534 = vpow2.f32 %v3960_v1 }
 0xb2b   :  { %4536 = vpow2.f32 %v3962_v3 }
 0xb37   :  { %v4535_v45 = vpop.eup %4534 }
 0xb38   :  { %v4537_v60 = vpop.eup %4536 }
 0xb39   :  { %v3964_v39 = vsel %vm3949_vm1, %v4537_v60, 0.0 }
 0xb3a   :  { %v3965_v6 = vadd.f32 %v4535_v45, %v3964_v39 }
 0xb3c   :  { %v3966_v22 = vrot.slane %v3965_v6, 4 }
 0xb3e   :  { %v3967_v4 = vadd.f32 %v3966_v22, %v3965_v6 }
 0xb40   :  { %v3968_v12 = vrot.slane %v3967_v4, 2 }
 0xb42   :  { %v3969_v2 = vadd.f32 %v3968_v12, %v3967_v4 }
 0xb44   :  { %v3970_v58 = vrot.slane %v3969_v2, 1 }
 0xb46   :  { %v3971_v50 = vadd.f32 %v3970_v58, %v3969_v2 }
 0xb48   :  { %4538 = vrcp.f32 %v3971_v50 }
 0xb55   :  { %v4539_v49 = vpop.eup %4538 }
 0xb56   :  { %v3973_v7 = vmul.f32 %v4539_v49, %v3971_v50 }
 0xb58   :  { %v3974_v62 = vsub.f32 2.0, %v3973_v7 }
 0xb5a   :  { %v3975_v53 = vmul.f32 %v4539_v49, %v3974_v62 }
 0xb5c   :  { %v3976_v34 = vmul.f32 %v3975_v53, %v3971_v50 }
 0xb5e   :  { %v3977_v51 = vsub.f32 2.0, %v3976_v34 }
 0xb60   :  { %v3978_v20 = vmul.f32 %v3977_v51, %v3975_v53 }
 0xb62   :  { %v3979_v14 = vmul.f32 %v4535_v45, %v3978_v20  ;;  %v3980_v10 = vmul.f32 %v4537_v60, %v3978_v20 }
 0xb64   :  { %3981 = vst [vmem:[#allocation5] sm:$0xff] %v3979_v14  ;;  %3982 = vst [vmem:[#allocation5 + $0x8] sm:$0x3] %v3980_v10 }
 0xb65   :  { %4691 = shalt.err (!%p4688_p9)
}
 0xb66   :  { %3994 = dma.vmem_to_hbm [thread:$0]  %s3989_s25, 256, %s7454_s5, [#allocation4], %s4705_s21, %s4705_s21, %s4706_s22  }
 0xb67   :  { %4702 = dma.done.wait [#allocation4], 256  }
 0xb68   :  { %4703 = vsyncadd [#allocation4], 4294967040 }
 0xb69   :  { %3998 = vsyncpa [#allocation3], 1 }
 0xb6a   :  { %3999 = vsyncpa [#allocation4], 1 }

</bundles_post_ra>
